<compile_context>
chip_gen: v7x
topology: tpu7x:2x2x1
jax: 0.10.0
libtpu: 0.0.40
codegen_flags: <defaults>
</compile_context>

<pallas_src>
import functools

import jax
import jax.numpy as jnp
from jax import lax
from jax.experimental import pallas as pl
from jax.experimental.pallas import tpu as pltpu

# ---- small model dims consistent with a CLIP text encoder + image features ----
VOCAB = 64
CTX_LEN = 8          # L (context length)
WIDTH = 32           # D (transformer width)
HEADS = 2
HEAD_DIM = WIDTH // HEADS
LAYERS = 2
HID = 4 * WIDTH      # MLP hidden (also the common packed-slab lane width)
EMBED = 32           # E (joint embedding dim == text_projection output)
N_PROMPTS = 4        # rows of token_ids (number of class prompts)
BATCH = 2            # image batch; batch_img is [B, E] pre-extracted features
DTYPE = jnp.float32
MM_DTYPE = jnp.bfloat16   # MXU operand dtype (f32 accumulation everywhere)


# ----------------------------- kernel ----------------------------------------


def _layer_norm(v, w, b, eps=1e-5):
    mu = jnp.mean(v, axis=-1, keepdims=True)
    var = jnp.mean(jnp.square(v - mu), axis=-1, keepdims=True)
    return (v - mu) * lax.rsqrt(var + eps) * w + b


def _nt_dot(a, bt):
    """a (M, K) . bt (N, K)^T -> (M, N); NT form, no explicit transpose op."""
    return lax.dot_general(a.astype(MM_DTYPE), bt.astype(MM_DTYPE),
                           dimension_numbers=(((1,), (1,)), ((), ())),
                           preferred_element_type=jnp.float32)


def clip_fused_kernel(scale_ref, x_ref, eotmask_ref, img_ref,
                      w_ref, bvec_ref, bwide_ref, lnf_ref, proj_ref,
                      logits_ref, txt_ref):
    """Full text path + cosine logits for all prompts, one grid-less invocation.

    Packed-slab layout (all static leading-dim indexing, no lane slicing):
      w_ref     (LAYERS*4, D, HID) bf16 : [4l+0]=wqkv (cols 3D:HID zero-padded)
                                          [4l+1]=wo   (cols  D:HID zero-padded)
                                          [4l+2]=w1
                                          [4l+3]=w2^T
      bvec_ref  (LAYERS*6, D) f32       : [6l+0..5] = ln1_w, ln1_b, ln2_w, ln2_b, bo, b2
      bwide_ref (LAYERS*2, HID) f32     : [2l+0]=bqkv (zero-padded), [2l+1]=b1
      lnf_ref   (2, D) f32              : ln_final weight / bias
      proj_ref  (D, E) bf16             : text_projection
    """
    f32 = jnp.float32
    n, l, d = x_ref.shape
    n_layers = w_ref.shape[0] // 4
    m = n * l

    def mm(a, w):  # bf16 operands on the MXU, f32 accumulation
        return jnp.dot(a.astype(MM_DTYPE), w.astype(MM_DTYPE),
                       preferred_element_type=f32)

    # activation slab: all prompts stacked -> (N*L, D), f32
    x = x_ref[...].astype(f32).reshape(m, d)

    # additive causal mask (shared across prompts / heads)
    rows = lax.broadcasted_iota(jnp.int32, (l, l), 0)
    cols = lax.broadcasted_iota(jnp.int32, (l, l), 1)
    neg = jnp.where(rows >= cols, 0.0, -1e9).astype(f32)

    attn_scale = HEAD_DIM ** -0.5

    def to_heads(t):  # (M, D) -> (HEADS*N, L, HEAD_DIM); batch index = h*N + prompt
        t3 = t.reshape(n, l, d)
        return jnp.concatenate(
            [t3[:, :, h * HEAD_DIM:(h + 1) * HEAD_DIM] for h in range(HEADS)],
            axis=0)

    for layer in range(n_layers):   # static unroll; all weights resident in VMEM
        # ---- multi-head causal self-attention ----
        xn = _layer_norm(x, bvec_ref[6 * layer + 0], bvec_ref[6 * layer + 1])
        # one MXU push; cols 3D:HID of the padded wqkv / bqkv are zero and unused
        qkv = mm(xn, w_ref[4 * layer + 0]) + bwide_ref[2 * layer + 0]   # (M, HID) f32
        q = qkv[:, :d] * attn_scale                                     # scale once
        k = qkv[:, d:2 * d]
        v = qkv[:, 2 * d:3 * d]
        qh, kh, vh = to_heads(q), to_heads(k), to_heads(v)              # (H*N, L, hd)

        s = jnp.einsum('bqd,bkd->bqk', qh.astype(MM_DTYPE), kh.astype(MM_DTYPE),
                       preferred_element_type=f32)
        s = s + neg[None]
        s = s - jnp.max(s, axis=-1, keepdims=True)
        p = jnp.exp(s)
        p = p * pl.reciprocal(jnp.sum(p, axis=-1, keepdims=True), approx=True)
        o = jnp.einsum('bqk,bkd->bqd', p.astype(MM_DTYPE), vh,
                       preferred_element_type=f32)                      # (H*N, L, hd)

        # output projection: per-head matmuls vs. row-blocks of wo, VPU-accumulated
        # (replaces the lane-dim head concat; leading-dim reshape only).
        o_heads = o.reshape(HEADS, m, HEAD_DIM)                         # (H, M, hd)
        woh = w_ref[4 * layer + 1][:, :d].reshape(HEADS, HEAD_DIM, d)   # (H, hd, D)
        proj_h = jnp.einsum('hmk,hkd->hmd', o_heads.astype(MM_DTYPE), woh,
                            preferred_element_type=f32)                 # (H, M, D)
        x = x + proj_h.sum(axis=0) + bvec_ref[6 * layer + 4]            # + bo

        # ---- MLP (QuickGELU, as in CLIP) ----
        xn = _layer_norm(x, bvec_ref[6 * layer + 2], bvec_ref[6 * layer + 3])
        h1 = mm(xn, w_ref[4 * layer + 2]) + bwide_ref[2 * layer + 1]    # (M, HID)
        h1 = h1 * jax.nn.sigmoid(1.702 * h1)
        x = x + _nt_dot(h1, w_ref[4 * layer + 3]) + bvec_ref[6 * layer + 5]

    # ---- exact EOT-token selection (VPU masked select + sum, no MXU push) ----
    x3 = x.reshape(n, l, d)
    eot = jnp.sum(x3 * eotmask_ref[...], axis=1)                        # (N, D), exact
    eot = _layer_norm(eot, lnf_ref[0], lnf_ref[1])
    txt = mm(eot, proj_ref[...])                                        # (N, E)

    # ---- scaled cosine-similarity logits (NT form, no explicit transpose) ----
    img = img_ref[...].astype(f32)
    txt_n = txt * lax.rsqrt(jnp.sum(txt * txt, axis=-1, keepdims=True))
    img_n = img * lax.rsqrt(jnp.sum(img * img, axis=-1, keepdims=True))
    logits = lax.dot_general(img_n, txt_n,
                             dimension_numbers=(((1,), (1,)), ((), ())),
                             preferred_element_type=f32)                # (B, N)
    logits_ref[...] = (scale_ref[0, 0] * logits).astype(logits_ref.dtype)
    txt_ref[...] = txt_n.astype(txt_ref.dtype)                          # cacheable


# ----------------------------- wrapper ----------------------------------------


def _prep_weights(params):
    """One-time host-side prep: pack all per-layer weights into 3 slabs
    (one bf16 matmul-weight slab, two f32 LN/bias slabs), pre-cast MXU weights
    to bf16, hoist exp(logit_scale) to an SMEM scalar."""
    d, hid = WIDTH, HID
    pad_cols = lambda a: jnp.pad(a, ((0, 0), (0, hid - a.shape[1])))
    w_blocks, bvec_rows, bwide_rows = [], [], []
    for lp in params["layers"]:
        w_blocks += [pad_cols(lp["wqkv"]),   # (D, 3D) -> (D, HID)
                     pad_cols(lp["wo"]),     # (D, D)  -> (D, HID)
                     lp["w1"],               # (D, HID)
                     lp["w2"].T]             # (HID, D) -> (D, HID), used in NT form
        bvec_rows += [lp["ln1_w"], lp["ln1_b"], lp["ln2_w"], lp["ln2_b"],
                      lp["bo"], lp["b2"]]
        bwide_rows += [jnp.pad(lp["bqkv"], (0, hid - lp["bqkv"].shape[0])),
                       lp["b1"]]
    return dict(
        scale=jnp.exp(params["logit_scale"]).astype(jnp.float32).reshape(1, 1),
        w=jnp.stack(w_blocks, axis=0).astype(MM_DTYPE),          # (LAYERS*4, D, HID)
        bvec=jnp.stack(bvec_rows, axis=0).astype(jnp.float32),   # (LAYERS*6, D)
        bwide=jnp.stack(bwide_rows, axis=0).astype(jnp.float32), # (LAYERS*2, HID)
        lnf=jnp.stack([params["ln_final_w"], params["ln_final_b"]],
                      axis=0).astype(jnp.float32),               # (2, D)
        proj=params["text_projection"].astype(MM_DTYPE),         # (D, E)
    )


@functools.partial(jax.jit, static_argnames=("enable_pos_emb",))
def clip_text_and_logits(params, token_ids, batch_img, enable_pos_emb=False):
    """Returns (logits [B, N], normalized text features [N, E]).  The text
    features are image-independent and can be cached across image batches."""
    n, l = token_ids.shape
    b = batch_img.shape[0]

    # host-side glue: embedding gather (+ optional learned positional embedding)
    x = jnp.take(params["token_embedding"], token_ids, axis=0).astype(jnp.float32)
    if enable_pos_emb:
        x = x + params["positional_embedding"][None]

    # EOT position (argmax of token ids, as in CLIP) -> exact 0/1 VPU select mask
    eot = jnp.argmax(token_ids, axis=-1)
    eot_mask = (jnp.arange(l)[None, :] == eot[:, None]).astype(jnp.float32)
    eot_mask = eot_mask[:, :, None]                                   # (N, L, 1)

    w = _prep_weights(params)
    inputs = (w["scale"], x, eot_mask, batch_img.astype(jnp.float32),
              w["w"], w["bvec"], w["bwide"], w["lnf"], w["proj"])

    vmem = pl.BlockSpec(memory_space=pltpu.MemorySpace.VMEM)
    smem = pl.BlockSpec(memory_space=pltpu.MemorySpace.SMEM)
    logits, txt = pl.pallas_call(
        clip_fused_kernel,
        out_shape=(jax.ShapeDtypeStruct((b, n), jnp.float32),
                   jax.ShapeDtypeStruct((n, EMBED), jnp.float32)),
        in_specs=[smem] + [vmem] * (len(inputs) - 1),
        out_specs=(vmem, vmem),
        compiler_params=pltpu.CompilerParams(vmem_limit_bytes=64 * 1024 * 1024),
    )(*inputs)
    return logits, txt


def clip_interface_forward(params, token_ids, batch_img, idx=None,
                           enable_pos_emb=False):
    """Equivalent of CLIPInterface.forward with soft_embeddings=None."""
    del idx  # construct_token_tensors(idx) -> None when soft_embeddings is None
    logits, _ = clip_text_and_logits(params, token_ids, batch_img,
                                     enable_pos_emb=enable_pos_emb)
    return logits


# ----------------------------- params / reference -----------------------------


def init_params(key):
    keys = jax.random.split(key, 3 + LAYERS)
    p = {
        "token_embedding": 0.02 * jax.random.normal(keys[0], (VOCAB, WIDTH), DTYPE),
        "positional_embedding": 0.01 * jax.random.normal(keys[1], (CTX_LEN, WIDTH), DTYPE),
        "ln_final_w": jnp.ones((WIDTH,), DTYPE),
        "ln_final_b": jnp.zeros((WIDTH,), DTYPE),
        "text_projection": 0.05 * jax.random.normal(keys[2], (WIDTH, EMBED), DTYPE),
        "logit_scale": jnp.log(jnp.array(1.0 / 0.07, DTYPE)),
        "layers": [],
    }
    for i in range(LAYERS):
        lk = jax.random.split(keys[3 + i], 8)
        p["layers"].append({
            "ln1_w": jnp.ones((WIDTH,), DTYPE),
            "ln1_b": jnp.zeros((WIDTH,), DTYPE),
            "wqkv": 0.05 * jax.random.normal(lk[0], (WIDTH, 3 * WIDTH), DTYPE),
            "bqkv": 0.01 * jax.random.normal(lk[1], (3 * WIDTH,), DTYPE),
            "wo": 0.05 * jax.random.normal(lk[2], (WIDTH, WIDTH), DTYPE),
            "bo": 0.01 * jax.random.normal(lk[3], (WIDTH,), DTYPE),
            "ln2_w": jnp.ones((WIDTH,), DTYPE),
            "ln2_b": jnp.zeros((WIDTH,), DTYPE),
            "w1": 0.05 * jax.random.normal(lk[4], (WIDTH, HID), DTYPE),
            "b1": 0.01 * jax.random.normal(lk[5], (HID,), DTYPE),
            "w2": 0.05 * jax.random.normal(lk[6], (HID, WIDTH), DTYPE),
            "b2": 0.01 * jax.random.normal(lk[7], (WIDTH,), DTYPE),
        })
    return p


def reference_forward(params, token_ids, batch_img, enable_pos_emb=False,
                      mm_dtype=jnp.float32):
    """Pure-JAX reference. mm_dtype=bf16 mirrors the kernel's MXU operand dtype."""
    def mm(a, w):
        return jnp.dot(a.astype(mm_dtype), w.astype(mm_dtype),
                       preferred_element_type=jnp.float32)

    def ln(v, w, b):
        mu = v.mean(-1, keepdims=True)
        var = ((v - mu) ** 2).mean(-1, keepdims=True)
        return (v - mu) * lax.rsqrt(var + 1e-5) * w + b

    x = jnp.take(params["token_embedding"], token_ids, axis=0).astype(jnp.float32)
    if enable_pos_emb:
        x = x + params["positional_embedding"][None]
    L = x.shape[1]
    causal = jnp.arange(L)[:, None] >= jnp.arange(L)[None, :]

    for lp in params["layers"]:
        xn = ln(x, lp["ln1_w"], lp["ln1_b"])
        qkv = mm(xn, lp["wqkv"]) + lp["bqkv"]
        q, k, v = jnp.split(qkv, 3, axis=-1)
        q = q * HEAD_DIM ** -0.5
        outs = []
        for h in range(HEADS):
            sl = slice(h * HEAD_DIM, (h + 1) * HEAD_DIM)
            s = jnp.einsum('nqd,nkd->nqk', q[..., sl], k[..., sl])
            s = jnp.where(causal, s, -1e9)
            s = s - s.max(-1, keepdims=True)
            p = jnp.exp(s)
            p = p / p.sum(-1, keepdims=True)
            outs.append(jnp.einsum('nqk,nkd->nqd', p, v[..., sl]))
        x = x + (mm(jnp.concatenate(outs, -1), lp["wo"]) + lp["bo"])
        xn = ln(x, lp["ln2_w"], lp["ln2_b"])
        h1 = mm(xn, lp["w1"]) + lp["b1"]
        h1 = h1 * jax.nn.sigmoid(1.702 * h1)
        x = x + (mm(h1, lp["w2"]) + lp["b2"])

    eot = jnp.argmax(token_ids, axis=-1)
    feats = ln(x[jnp.arange(x.shape[0]), eot],
               params["ln_final_w"], params["ln_final_b"])
    feats = mm(feats, params["text_projection"])
    tf = feats / jnp.linalg.norm(feats, axis=-1, keepdims=True)
    im = batch_img / jnp.linalg.norm(batch_img, axis=-1, keepdims=True)
    return jnp.exp(params["logit_scale"]) * im @ tf.T


# ----------------------------- main -------------------------------------------

if __name__ == "__main__":
    key = jax.random.PRNGKey(0)
    k_par, k_tok, k_img = jax.random.split(key, 3)
    params = init_params(k_par)

    # token_ids: SOT, body tokens, EOT (= VOCAB-1, the per-row argmax), padding 0
    body = jax.random.randint(k_tok, (N_PROMPTS, CTX_LEN), 1, VOCAB - 2)
    token_ids = body.at[:, 0].set(VOCAB - 2)                                 # SOT
    eot_pos = jnp.array([3, 5, 4, CTX_LEN - 1], dtype=jnp.int32)
    token_ids = token_ids.at[jnp.arange(N_PROMPTS), eot_pos].set(VOCAB - 1)  # EOT
    token_ids = jnp.where(jnp.arange(CTX_LEN)[None, :] > eot_pos[:, None], 0, token_ids)

    batch_img = jax.random.normal(k_img, (BATCH, EMBED), DTYPE)              # [B, E]

    # enable_pos_emb defaults to False, matching the CLIPInterface constructor default.
    logits, txt_feats = clip_text_and_logits(params, token_ids, batch_img)
    logits = jax.block_until_ready(logits)
    assert logits.shape == (BATCH, N_PROMPTS)
    assert txt_feats.shape == (N_PROMPTS, EMBED)

    # Tight check vs. a reference that mirrors the kernel's bf16 MXU operands.
    ref_bf16 = reference_forward(params, token_ids, batch_img, mm_dtype=MM_DTYPE)
    assert jnp.allclose(logits, ref_bf16, atol=5e-2, rtol=5e-2), (
        float(jnp.max(jnp.abs(logits - ref_bf16))))

    # Loose check vs. full-f32 semantics (kernel uses bf16 matmul operands and an
    # approx softmax reciprocal; the torch module's cuda path is fp16 anyway).
    ref_f32 = reference_forward(params, token_ids, batch_img, mm_dtype=jnp.float32)
    assert jnp.allclose(logits, ref_f32, atol=4e-1, rtol=1e-1), (
        float(jnp.max(jnp.abs(logits - ref_f32))))

    # API-parity path (returns logits only, like CLIPInterface.forward).
    logits2 = jax.block_until_ready(clip_interface_forward(params, token_ids,
                                                           batch_img, idx=None))
    assert jnp.allclose(logits, logits2)

    print("KERNEL_OK")
</pallas_src>

<mosaic_0001>
module attributes {stable_mosaic.version = 11 : i64} {
  func.func @clip_fused_kernel(%arg0: memref<1x1xf32, #tpu.memory_space<smem>>, %arg1: memref<4x8x32xf32, #tpu.memory_space<vmem>>, %arg2: memref<4x8x1xf32, #tpu.memory_space<vmem>>, %arg3: memref<2x32xf32, #tpu.memory_space<vmem>>, %arg4: memref<8x32x128xbf16, #tpu.memory_space<vmem>>, %arg5: memref<12x32xf32, #tpu.memory_space<vmem>>, %arg6: memref<4x128xf32, #tpu.memory_space<vmem>>, %arg7: memref<2x32xf32, #tpu.memory_space<vmem>>, %arg8: memref<32x32xbf16, #tpu.memory_space<vmem>>, %arg9: memref<2x4xf32, #tpu.memory_space<vmem>>, %arg10: memref<4x32xf32, #tpu.memory_space<vmem>>) attributes {dimension_semantics = [], scalar_prefetch = 0 : i64, scratch_operands = 0 : i64, tpu.core_type = #tpu.core_type<tc>} {
    %c0 = arith.constant 0 : index
    %c0_0 = arith.constant 0 : index
    %c0_1 = arith.constant 0 : index
    %0 = vector.load %arg1[%c0, %c0_0, %c0_1] : memref<4x8x32xf32, #tpu.memory_space<vmem>>, vector<4x8x32xf32>
    %1 = vector.shape_cast %0 : vector<4x8x32xf32> to vector<32x32xf32>
    %2 = tpu.iota {dimensions = array<i32: 0>} : vector<8x8xi32>
    %3 = tpu.iota {dimensions = array<i32: 1>} : vector<8x8xi32>
    %4 = arith.cmpi sge, %2, %3 : vector<8x8xi32>
    %cst = arith.constant 0.000000e+00 : f32
    %cst_2 = arith.constant -1.000000e+09 : f32
    %5 = vector.broadcast %cst : f32 to vector<8x8xf32>
    %6 = vector.broadcast %cst_2 : f32 to vector<8x8xf32>
    %7 = arith.select %4, %5, %6 : vector<8x8xi1>, vector<8x8xf32>
    %c0_3 = arith.constant 0 : index
    %c0_4 = arith.constant 0 : index
    %8 = vector.load %arg5[%c0_3, %c0_4] : memref<12x32xf32, #tpu.memory_space<vmem>>, vector<1x32xf32>
    %9 = vector.shape_cast %8 : vector<1x32xf32> to vector<32xf32>
    %c1 = arith.constant 1 : index
    %c0_5 = arith.constant 0 : index
    %10 = vector.load %arg5[%c1, %c0_5] : memref<12x32xf32, #tpu.memory_space<vmem>>, vector<1x32xf32>
    %11 = vector.shape_cast %10 : vector<1x32xf32> to vector<32xf32>
    %cst_6 = arith.constant dense<0.000000e+00> : vector<32xf32>
    %12 = vector.multi_reduction <add>, %1, %cst_6 [1] : vector<32x32xf32> to vector<32xf32>
    %13 = vector.shape_cast %12 : vector<32xf32> to vector<32x1xf32>
    %cst_7 = arith.constant 3.200000e+01 : f32
    %14 = vector.broadcast %cst_7 : f32 to vector<32x1xf32>
    %15 = arith.divf %13, %14 : vector<32x1xf32>
    %16 = vector.broadcast %15 : vector<32x1xf32> to vector<32x32xf32>
    %17 = arith.subf %1, %16 : vector<32x32xf32>
    %18 = arith.mulf %17, %17 : vector<32x32xf32>
    %cst_8 = arith.constant dense<0.000000e+00> : vector<32xf32>
    %19 = vector.multi_reduction <add>, %18, %cst_8 [1] : vector<32x32xf32> to vector<32xf32>
    %20 = vector.shape_cast %19 : vector<32xf32> to vector<32x1xf32>
    %cst_9 = arith.constant 3.200000e+01 : f32
    %21 = vector.broadcast %cst_9 : f32 to vector<32x1xf32>
    %22 = arith.divf %20, %21 : vector<32x1xf32>
    %23 = vector.broadcast %15 : vector<32x1xf32> to vector<32x32xf32>
    %24 = arith.subf %1, %23 : vector<32x32xf32>
    %cst_10 = arith.constant 9.99999974E-6 : f32
    %25 = vector.broadcast %cst_10 : f32 to vector<32x1xf32>
    %26 = arith.addf %22, %25 : vector<32x1xf32>
    %27 = math.rsqrt %26 : vector<32x1xf32>
    %28 = vector.broadcast %27 : vector<32x1xf32> to vector<32x32xf32>
    %29 = arith.mulf %24, %28 : vector<32x32xf32>
    %30 = vector.shape_cast %9 : vector<32xf32> to vector<1x32xf32>
    %31 = vector.broadcast %30 : vector<1x32xf32> to vector<32x32xf32>
    %32 = arith.mulf %29, %31 : vector<32x32xf32>
    %33 = vector.shape_cast %11 : vector<32xf32> to vector<1x32xf32>
    %34 = vector.broadcast %33 : vector<1x32xf32> to vector<32x32xf32>
    %35 = arith.addf %32, %34 : vector<32x32xf32>
    %c0_11 = arith.constant 0 : index
    %c0_12 = arith.constant 0 : index
    %c0_13 = arith.constant 0 : index
    %36 = vector.load %arg4[%c0_11, %c0_12, %c0_13] : memref<8x32x128xbf16, #tpu.memory_space<vmem>>, vector<1x32x128xbf16>
    %37 = vector.shape_cast %36 : vector<1x32x128xbf16> to vector<32x128xbf16>
    %38 = arith.truncf %35 : vector<32x32xf32> to vector<32x32xbf16>
    %cst_14 = arith.constant dense<0.000000e+00> : vector<32x128xf32>
    %39 = tpu.matmul %38, %37, %cst_14 {dimension_numbers = #tpu.dot_dimension_numbers<[1], [0], [0], [1], [0, 0, 1, 1], [], []>} : vector<32x32xbf16>, vector<32x128xbf16>, vector<32x128xf32> -> vector<32x128xf32>
    %c0_15 = arith.constant 0 : index
    %c0_16 = arith.constant 0 : index
    %40 = vector.load %arg6[%c0_15, %c0_16] : memref<4x128xf32, #tpu.memory_space<vmem>>, vector<1x128xf32>
    %41 = vector.shape_cast %40 : vector<1x128xf32> to vector<128xf32>
    %42 = vector.shape_cast %41 : vector<128xf32> to vector<1x128xf32>
    %43 = vector.broadcast %42 : vector<1x128xf32> to vector<32x128xf32>
    %44 = arith.addf %39, %43 : vector<32x128xf32>
    %45 = vector.extract_strided_slice %44 {offsets = [0, 0], sizes = [32, 32], strides = [1, 1]} : vector<32x128xf32> to vector<32x32xf32>
    %cst_17 = arith.constant 2.500000e-01 : f32
    %46 = vector.broadcast %cst_17 : f32 to vector<32x32xf32>
    %47 = arith.mulf %45, %46 : vector<32x32xf32>
    %48 = vector.extract_strided_slice %44 {offsets = [0, 32], sizes = [32, 32], strides = [1, 1]} : vector<32x128xf32> to vector<32x32xf32>
    %49 = vector.extract_strided_slice %44 {offsets = [0, 64], sizes = [32, 32], strides = [1, 1]} : vector<32x128xf32> to vector<32x32xf32>
    %50 = vector.shape_cast %47 : vector<32x32xf32> to vector<4x8x32xf32>
    %51 = vector.extract_strided_slice %50 {offsets = [0, 0, 0], sizes = [4, 8, 16], strides = [1, 1, 1]} : vector<4x8x32xf32> to vector<4x8x16xf32>
    %52 = vector.extract_strided_slice %50 {offsets = [0, 0, 16], sizes = [4, 8, 16], strides = [1, 1, 1]} : vector<4x8x32xf32> to vector<4x8x16xf32>
    %53 = tpu.concatenate %51, %52 in 0 : vector<4x8x16xf32>, vector<4x8x16xf32> -> vector<8x8x16xf32>
    %54 = vector.shape_cast %48 : vector<32x32xf32> to vector<4x8x32xf32>
    %55 = vector.extract_strided_slice %54 {offsets = [0, 0, 0], sizes = [4, 8, 16], strides = [1, 1, 1]} : vector<4x8x32xf32> to vector<4x8x16xf32>
    %56 = vector.extract_strided_slice %54 {offsets = [0, 0, 16], sizes = [4, 8, 16], strides = [1, 1, 1]} : vector<4x8x32xf32> to vector<4x8x16xf32>
    %57 = tpu.concatenate %55, %56 in 0 : vector<4x8x16xf32>, vector<4x8x16xf32> -> vector<8x8x16xf32>
    %58 = vector.shape_cast %49 : vector<32x32xf32> to vector<4x8x32xf32>
    %59 = vector.extract_strided_slice %58 {offsets = [0, 0, 0], sizes = [4, 8, 16], strides = [1, 1, 1]} : vector<4x8x32xf32> to vector<4x8x16xf32>
    %60 = vector.extract_strided_slice %58 {offsets = [0, 0, 16], sizes = [4, 8, 16], strides = [1, 1, 1]} : vector<4x8x32xf32> to vector<4x8x16xf32>
    %61 = tpu.concatenate %59, %60 in 0 : vector<4x8x16xf32>, vector<4x8x16xf32> -> vector<8x8x16xf32>
    %62 = arith.truncf %53 : vector<8x8x16xf32> to vector<8x8x16xbf16>
    %63 = arith.truncf %57 : vector<8x8x16xf32> to vector<8x8x16xbf16>
    "tpu.trace_start"() <{level = 10 : i32, message = "bqd,bkd->bqk"}> : () -> ()
    %cst_18 = arith.constant dense<0.000000e+00> : vector<8x8x8xf32>
    %64 = tpu.matmul %62, %63, %cst_18 {dimension_numbers = #tpu.dot_dimension_numbers<[2], [2], [1], [1], [0, 0, 0, 1, 1, 1], [0], [0]>} : vector<8x8x16xbf16>, vector<8x8x16xbf16>, vector<8x8x8xf32> -> vector<8x8x8xf32>
    "tpu.trace_stop"() : () -> ()
    %65 = vector.shape_cast %7 : vector<8x8xf32> to vector<1x8x8xf32>
    %66 = vector.broadcast %65 : vector<1x8x8xf32> to vector<8x8x8xf32>
    %67 = arith.addf %64, %66 : vector<8x8x8xf32>
    %cst_19 = arith.constant dense<0xFF800000> : vector<8x8xf32>
    %68 = vector.multi_reduction <maximumf>, %67, %cst_19 [2] : vector<8x8x8xf32> to vector<8x8xf32>
    %69 = vector.shape_cast %68 : vector<8x8xf32> to vector<8x8x1xf32>
    %70 = vector.broadcast %69 : vector<8x8x1xf32> to vector<8x8x8xf32>
    %71 = arith.subf %67, %70 : vector<8x8x8xf32>
    %72 = math.exp %71 : vector<8x8x8xf32>
    %cst_20 = arith.constant dense<0.000000e+00> : vector<8x8xf32>
    %73 = vector.multi_reduction <add>, %72, %cst_20 [2] : vector<8x8x8xf32> to vector<8x8xf32>
    %74 = vector.shape_cast %73 : vector<8x8xf32> to vector<8x8x1xf32>
    %75 = tpu.reciprocal %74 {approx = true} : vector<8x8x1xf32> -> vector<8x8x1xf32>
    %76 = vector.broadcast %75 : vector<8x8x1xf32> to vector<8x8x8xf32>
    %77 = arith.mulf %72, %76 : vector<8x8x8xf32>
    %78 = arith.truncf %77 : vector<8x8x8xf32> to vector<8x8x8xbf16>
    "tpu.trace_start"() <{level = 10 : i32, message = "bqk,bkd->bqd"}> : () -> ()
    %cst_21 = arith.constant dense<0.000000e+00> : vector<8x8x16xf32>
    %79 = tpu.matmul %78, %61, %cst_21 {dimension_numbers = #tpu.dot_dimension_numbers<[2], [1], [1], [2], [0, 0, 0, 1, 1, 2], [0], [0]>} : vector<8x8x8xbf16>, vector<8x8x16xf32>, vector<8x8x16xf32> -> vector<8x8x16xf32>
    "tpu.trace_stop"() : () -> ()
    %80 = vector.shape_cast %79 : vector<8x8x16xf32> to vector<2x32x16xf32>
    %c1_22 = arith.constant 1 : index
    %c0_23 = arith.constant 0 : index
    %c0_24 = arith.constant 0 : index
    %81 = vector.load %arg4[%c1_22, %c0_23, %c0_24] : memref<8x32x128xbf16, #tpu.memory_space<vmem>>, vector<1x32x128xbf16>
    %82 = vector.shape_cast %81 : vector<1x32x128xbf16> to vector<32x128xbf16>
    %83 = vector.extract_strided_slice %82 {offsets = [0, 0], sizes = [32, 32], strides = [1, 1]} : vector<32x128xbf16> to vector<32x32xbf16>
    %84 = vector.shape_cast %83 : vector<32x32xbf16> to vector<2x16x32xbf16>
    %85 = arith.truncf %80 : vector<2x32x16xf32> to vector<2x32x16xbf16>
    "tpu.trace_start"() <{level = 10 : i32, message = "hmk,hkd->hmd"}> : () -> ()
    %cst_25 = arith.constant dense<0.000000e+00> : vector<2x32x32xf32>
    %86 = tpu.matmul %85, %84, %cst_25 {dimension_numbers = #tpu.dot_dimension_numbers<[2], [1], [1], [2], [0, 0, 0, 1, 1, 2], [0], [0]>} : vector<2x32x16xbf16>, vector<2x16x32xbf16>, vector<2x32x32xf32> -> vector<2x32x32xf32>
    "tpu.trace_stop"() : () -> ()
    %cst_26 = arith.constant dense<0.000000e+00> : vector<32x32xf32>
    %87 = vector.multi_reduction <add>, %86, %cst_26 [0] : vector<2x32x32xf32> to vector<32x32xf32>
    %88 = arith.addf %1, %87 : vector<32x32xf32>
    %c4 = arith.constant 4 : index
    %c0_27 = arith.constant 0 : index
    %89 = vector.load %arg5[%c4, %c0_27] : memref<12x32xf32, #tpu.memory_space<vmem>>, vector<1x32xf32>
    %90 = vector.shape_cast %89 : vector<1x32xf32> to vector<32xf32>
    %91 = vector.shape_cast %90 : vector<32xf32> to vector<1x32xf32>
    %92 = vector.broadcast %91 : vector<1x32xf32> to vector<32x32xf32>
    %93 = arith.addf %88, %92 : vector<32x32xf32>
    %c2 = arith.constant 2 : index
    %c0_28 = arith.constant 0 : index
    %94 = vector.load %arg5[%c2, %c0_28] : memref<12x32xf32, #tpu.memory_space<vmem>>, vector<1x32xf32>
    %95 = vector.shape_cast %94 : vector<1x32xf32> to vector<32xf32>
    %c3 = arith.constant 3 : index
    %c0_29 = arith.constant 0 : index
    %96 = vector.load %arg5[%c3, %c0_29] : memref<12x32xf32, #tpu.memory_space<vmem>>, vector<1x32xf32>
    %97 = vector.shape_cast %96 : vector<1x32xf32> to vector<32xf32>
    %cst_30 = arith.constant dense<0.000000e+00> : vector<32xf32>
    %98 = vector.multi_reduction <add>, %93, %cst_30 [1] : vector<32x32xf32> to vector<32xf32>
    %99 = vector.shape_cast %98 : vector<32xf32> to vector<32x1xf32>
    %cst_31 = arith.constant 3.200000e+01 : f32
    %100 = vector.broadcast %cst_31 : f32 to vector<32x1xf32>
    %101 = arith.divf %99, %100 : vector<32x1xf32>
    %102 = vector.broadcast %101 : vector<32x1xf32> to vector<32x32xf32>
    %103 = arith.subf %93, %102 : vector<32x32xf32>
    %104 = arith.mulf %103, %103 : vector<32x32xf32>
    %cst_32 = arith.constant dense<0.000000e+00> : vector<32xf32>
    %105 = vector.multi_reduction <add>, %104, %cst_32 [1] : vector<32x32xf32> to vector<32xf32>
    %106 = vector.shape_cast %105 : vector<32xf32> to vector<32x1xf32>
    %cst_33 = arith.constant 3.200000e+01 : f32
    %107 = vector.broadcast %cst_33 : f32 to vector<32x1xf32>
    %108 = arith.divf %106, %107 : vector<32x1xf32>
    %109 = vector.broadcast %101 : vector<32x1xf32> to vector<32x32xf32>
    %110 = arith.subf %93, %109 : vector<32x32xf32>
    %cst_34 = arith.constant 9.99999974E-6 : f32
    %111 = vector.broadcast %cst_34 : f32 to vector<32x1xf32>
    %112 = arith.addf %108, %111 : vector<32x1xf32>
    %113 = math.rsqrt %112 : vector<32x1xf32>
    %114 = vector.broadcast %113 : vector<32x1xf32> to vector<32x32xf32>
    %115 = arith.mulf %110, %114 : vector<32x32xf32>
    %116 = vector.shape_cast %95 : vector<32xf32> to vector<1x32xf32>
    %117 = vector.broadcast %116 : vector<1x32xf32> to vector<32x32xf32>
    %118 = arith.mulf %115, %117 : vector<32x32xf32>
    %119 = vector.shape_cast %97 : vector<32xf32> to vector<1x32xf32>
    %120 = vector.broadcast %119 : vector<1x32xf32> to vector<32x32xf32>
    %121 = arith.addf %118, %120 : vector<32x32xf32>
    %c2_35 = arith.constant 2 : index
    %c0_36 = arith.constant 0 : index
    %c0_37 = arith.constant 0 : index
    %122 = vector.load %arg4[%c2_35, %c0_36, %c0_37] : memref<8x32x128xbf16, #tpu.memory_space<vmem>>, vector<1x32x128xbf16>
    %123 = vector.shape_cast %122 : vector<1x32x128xbf16> to vector<32x128xbf16>
    %124 = arith.truncf %121 : vector<32x32xf32> to vector<32x32xbf16>
    %cst_38 = arith.constant dense<0.000000e+00> : vector<32x128xf32>
    %125 = tpu.matmul %124, %123, %cst_38 {dimension_numbers = #tpu.dot_dimension_numbers<[1], [0], [0], [1], [0, 0, 1, 1], [], []>} : vector<32x32xbf16>, vector<32x128xbf16>, vector<32x128xf32> -> vector<32x128xf32>
    %c1_39 = arith.constant 1 : index
    %c0_40 = arith.constant 0 : index
    %126 = vector.load %arg6[%c1_39, %c0_40] : memref<4x128xf32, #tpu.memory_space<vmem>>, vector<1x128xf32>
    %127 = vector.shape_cast %126 : vector<1x128xf32> to vector<128xf32>
    %128 = vector.shape_cast %127 : vector<128xf32> to vector<1x128xf32>
    %129 = vector.broadcast %128 : vector<1x128xf32> to vector<32x128xf32>
    %130 = arith.addf %125, %129 : vector<32x128xf32>
    %cst_41 = arith.constant 1.702000e+00 : f32
    %131 = vector.broadcast %cst_41 : f32 to vector<32x128xf32>
    %132 = arith.mulf %131, %130 : vector<32x128xf32>
    %133 = arith.negf %132 : vector<32x128xf32>
    %134 = math.exp %133 : vector<32x128xf32>
    %cst_42 = arith.constant 1.000000e+00 : f32
    %135 = vector.broadcast %cst_42 : f32 to vector<32x128xf32>
    %136 = arith.addf %135, %134 : vector<32x128xf32>
    %137 = arith.divf %135, %136 : vector<32x128xf32>
    %138 = arith.mulf %130, %137 : vector<32x128xf32>
    %c3_43 = arith.constant 3 : index
    %c0_44 = arith.constant 0 : index
    %c0_45 = arith.constant 0 : index
    %139 = vector.load %arg4[%c3_43, %c0_44, %c0_45] : memref<8x32x128xbf16, #tpu.memory_space<vmem>>, vector<1x32x128xbf16>
    %140 = vector.shape_cast %139 : vector<1x32x128xbf16> to vector<32x128xbf16>
    %141 = arith.truncf %138 : vector<32x128xf32> to vector<32x128xbf16>
    %cst_46 = arith.constant dense<0.000000e+00> : vector<32x32xf32>
    %142 = tpu.matmul %141, %140, %cst_46 {dimension_numbers = #tpu.dot_dimension_numbers<[1], [1], [0], [0], [0, 0, 1, 0], [], []>} : vector<32x128xbf16>, vector<32x128xbf16>, vector<32x32xf32> -> vector<32x32xf32>
    %143 = arith.addf %93, %142 : vector<32x32xf32>
    %c5 = arith.constant 5 : index
    %c0_47 = arith.constant 0 : index
    %144 = vector.load %arg5[%c5, %c0_47] : memref<12x32xf32, #tpu.memory_space<vmem>>, vector<1x32xf32>
    %145 = vector.shape_cast %144 : vector<1x32xf32> to vector<32xf32>
    %146 = vector.shape_cast %145 : vector<32xf32> to vector<1x32xf32>
    %147 = vector.broadcast %146 : vector<1x32xf32> to vector<32x32xf32>
    %148 = arith.addf %143, %147 : vector<32x32xf32>
    %c6 = arith.constant 6 : index
    %c0_48 = arith.constant 0 : index
    %149 = vector.load %arg5[%c6, %c0_48] : memref<12x32xf32, #tpu.memory_space<vmem>>, vector<1x32xf32>
    %150 = vector.shape_cast %149 : vector<1x32xf32> to vector<32xf32>
    %c7 = arith.constant 7 : index
    %c0_49 = arith.constant 0 : index
    %151 = vector.load %arg5[%c7, %c0_49] : memref<12x32xf32, #tpu.memory_space<vmem>>, vector<1x32xf32>
    %152 = vector.shape_cast %151 : vector<1x32xf32> to vector<32xf32>
    %cst_50 = arith.constant dense<0.000000e+00> : vector<32xf32>
    %153 = vector.multi_reduction <add>, %148, %cst_50 [1] : vector<32x32xf32> to vector<32xf32>
    %154 = vector.shape_cast %153 : vector<32xf32> to vector<32x1xf32>
    %cst_51 = arith.constant 3.200000e+01 : f32
    %155 = vector.broadcast %cst_51 : f32 to vector<32x1xf32>
    %156 = arith.divf %154, %155 : vector<32x1xf32>
    %157 = vector.broadcast %156 : vector<32x1xf32> to vector<32x32xf32>
    %158 = arith.subf %148, %157 : vector<32x32xf32>
    %159 = arith.mulf %158, %158 : vector<32x32xf32>
    %cst_52 = arith.constant dense<0.000000e+00> : vector<32xf32>
    %160 = vector.multi_reduction <add>, %159, %cst_52 [1] : vector<32x32xf32> to vector<32xf32>
    %161 = vector.shape_cast %160 : vector<32xf32> to vector<32x1xf32>
    %cst_53 = arith.constant 3.200000e+01 : f32
    %162 = vector.broadcast %cst_53 : f32 to vector<32x1xf32>
    %163 = arith.divf %161, %162 : vector<32x1xf32>
    %164 = vector.broadcast %156 : vector<32x1xf32> to vector<32x32xf32>
    %165 = arith.subf %148, %164 : vector<32x32xf32>
    %cst_54 = arith.constant 9.99999974E-6 : f32
    %166 = vector.broadcast %cst_54 : f32 to vector<32x1xf32>
    %167 = arith.addf %163, %166 : vector<32x1xf32>
    %168 = math.rsqrt %167 : vector<32x1xf32>
    %169 = vector.broadcast %168 : vector<32x1xf32> to vector<32x32xf32>
    %170 = arith.mulf %165, %169 : vector<32x32xf32>
    %171 = vector.shape_cast %150 : vector<32xf32> to vector<1x32xf32>
    %172 = vector.broadcast %171 : vector<1x32xf32> to vector<32x32xf32>
    %173 = arith.mulf %170, %172 : vector<32x32xf32>
    %174 = vector.shape_cast %152 : vector<32xf32> to vector<1x32xf32>
    %175 = vector.broadcast %174 : vector<1x32xf32> to vector<32x32xf32>
    %176 = arith.addf %173, %175 : vector<32x32xf32>
    %c4_55 = arith.constant 4 : index
    %c0_56 = arith.constant 0 : index
    %c0_57 = arith.constant 0 : index
    %177 = vector.load %arg4[%c4_55, %c0_56, %c0_57] : memref<8x32x128xbf16, #tpu.memory_space<vmem>>, vector<1x32x128xbf16>
    %178 = vector.shape_cast %177 : vector<1x32x128xbf16> to vector<32x128xbf16>
    %179 = arith.truncf %176 : vector<32x32xf32> to vector<32x32xbf16>
    %cst_58 = arith.constant dense<0.000000e+00> : vector<32x128xf32>
    %180 = tpu.matmul %179, %178, %cst_58 {dimension_numbers = #tpu.dot_dimension_numbers<[1], [0], [0], [1], [0, 0, 1, 1], [], []>} : vector<32x32xbf16>, vector<32x128xbf16>, vector<32x128xf32> -> vector<32x128xf32>
    %c2_59 = arith.constant 2 : index
    %c0_60 = arith.constant 0 : index
    %181 = vector.load %arg6[%c2_59, %c0_60] : memref<4x128xf32, #tpu.memory_space<vmem>>, vector<1x128xf32>
    %182 = vector.shape_cast %181 : vector<1x128xf32> to vector<128xf32>
    %183 = vector.shape_cast %182 : vector<128xf32> to vector<1x128xf32>
    %184 = vector.broadcast %183 : vector<1x128xf32> to vector<32x128xf32>
    %185 = arith.addf %180, %184 : vector<32x128xf32>
    %186 = vector.extract_strided_slice %185 {offsets = [0, 0], sizes = [32, 32], strides = [1, 1]} : vector<32x128xf32> to vector<32x32xf32>
    %cst_61 = arith.constant 2.500000e-01 : f32
    %187 = vector.broadcast %cst_61 : f32 to vector<32x32xf32>
    %188 = arith.mulf %186, %187 : vector<32x32xf32>
    %189 = vector.extract_strided_slice %185 {offsets = [0, 32], sizes = [32, 32], strides = [1, 1]} : vector<32x128xf32> to vector<32x32xf32>
    %190 = vector.extract_strided_slice %185 {offsets = [0, 64], sizes = [32, 32], strides = [1, 1]} : vector<32x128xf32> to vector<32x32xf32>
    %191 = vector.shape_cast %188 : vector<32x32xf32> to vector<4x8x32xf32>
    %192 = vector.extract_strided_slice %191 {offsets = [0, 0, 0], sizes = [4, 8, 16], strides = [1, 1, 1]} : vector<4x8x32xf32> to vector<4x8x16xf32>
    %193 = vector.extract_strided_slice %191 {offsets = [0, 0, 16], sizes = [4, 8, 16], strides = [1, 1, 1]} : vector<4x8x32xf32> to vector<4x8x16xf32>
    %194 = tpu.concatenate %192, %193 in 0 : vector<4x8x16xf32>, vector<4x8x16xf32> -> vector<8x8x16xf32>
    %195 = vector.shape_cast %189 : vector<32x32xf32> to vector<4x8x32xf32>
    %196 = vector.extract_strided_slice %195 {offsets = [0, 0, 0], sizes = [4, 8, 16], strides = [1, 1, 1]} : vector<4x8x32xf32> to vector<4x8x16xf32>
    %197 = vector.extract_strided_slice %195 {offsets = [0, 0, 16], sizes = [4, 8, 16], strides = [1, 1, 1]} : vector<4x8x32xf32> to vector<4x8x16xf32>
    %198 = tpu.concatenate %196, %197 in 0 : vector<4x8x16xf32>, vector<4x8x16xf32> -> vector<8x8x16xf32>
    %199 = vector.shape_cast %190 : vector<32x32xf32> to vector<4x8x32xf32>
    %200 = vector.extract_strided_slice %199 {offsets = [0, 0, 0], sizes = [4, 8, 16], strides = [1, 1, 1]} : vector<4x8x32xf32> to vector<4x8x16xf32>
    %201 = vector.extract_strided_slice %199 {offsets = [0, 0, 16], sizes = [4, 8, 16], strides = [1, 1, 1]} : vector<4x8x32xf32> to vector<4x8x16xf32>
    %202 = tpu.concatenate %200, %201 in 0 : vector<4x8x16xf32>, vector<4x8x16xf32> -> vector<8x8x16xf32>
    %203 = arith.truncf %194 : vector<8x8x16xf32> to vector<8x8x16xbf16>
    %204 = arith.truncf %198 : vector<8x8x16xf32> to vector<8x8x16xbf16>
    "tpu.trace_start"() <{level = 10 : i32, message = "bqd,bkd->bqk"}> : () -> ()
    %cst_62 = arith.constant dense<0.000000e+00> : vector<8x8x8xf32>
    %205 = tpu.matmul %203, %204, %cst_62 {dimension_numbers = #tpu.dot_dimension_numbers<[2], [2], [1], [1], [0, 0, 0, 1, 1, 1], [0], [0]>} : vector<8x8x16xbf16>, vector<8x8x16xbf16>, vector<8x8x8xf32> -> vector<8x8x8xf32>
    "tpu.trace_stop"() : () -> ()
    %206 = vector.shape_cast %7 : vector<8x8xf32> to vector<1x8x8xf32>
    %207 = vector.broadcast %206 : vector<1x8x8xf32> to vector<8x8x8xf32>
    %208 = arith.addf %205, %207 : vector<8x8x8xf32>
    %cst_63 = arith.constant dense<0xFF800000> : vector<8x8xf32>
    %209 = vector.multi_reduction <maximumf>, %208, %cst_63 [2] : vector<8x8x8xf32> to vector<8x8xf32>
    %210 = vector.shape_cast %209 : vector<8x8xf32> to vector<8x8x1xf32>
    %211 = vector.broadcast %210 : vector<8x8x1xf32> to vector<8x8x8xf32>
    %212 = arith.subf %208, %211 : vector<8x8x8xf32>
    %213 = math.exp %212 : vector<8x8x8xf32>
    %cst_64 = arith.constant dense<0.000000e+00> : vector<8x8xf32>
    %214 = vector.multi_reduction <add>, %213, %cst_64 [2] : vector<8x8x8xf32> to vector<8x8xf32>
    %215 = vector.shape_cast %214 : vector<8x8xf32> to vector<8x8x1xf32>
    %216 = tpu.reciprocal %215 {approx = true} : vector<8x8x1xf32> -> vector<8x8x1xf32>
    %217 = vector.broadcast %216 : vector<8x8x1xf32> to vector<8x8x8xf32>
    %218 = arith.mulf %213, %217 : vector<8x8x8xf32>
    %219 = arith.truncf %218 : vector<8x8x8xf32> to vector<8x8x8xbf16>
    "tpu.trace_start"() <{level = 10 : i32, message = "bqk,bkd->bqd"}> : () -> ()
    %cst_65 = arith.constant dense<0.000000e+00> : vector<8x8x16xf32>
    %220 = tpu.matmul %219, %202, %cst_65 {dimension_numbers = #tpu.dot_dimension_numbers<[2], [1], [1], [2], [0, 0, 0, 1, 1, 2], [0], [0]>} : vector<8x8x8xbf16>, vector<8x8x16xf32>, vector<8x8x16xf32> -> vector<8x8x16xf32>
    "tpu.trace_stop"() : () -> ()
    %221 = vector.shape_cast %220 : vector<8x8x16xf32> to vector<2x32x16xf32>
    %c5_66 = arith.constant 5 : index
    %c0_67 = arith.constant 0 : index
    %c0_68 = arith.constant 0 : index
    %222 = vector.load %arg4[%c5_66, %c0_67, %c0_68] : memref<8x32x128xbf16, #tpu.memory_space<vmem>>, vector<1x32x128xbf16>
    %223 = vector.shape_cast %222 : vector<1x32x128xbf16> to vector<32x128xbf16>
    %224 = vector.extract_strided_slice %223 {offsets = [0, 0], sizes = [32, 32], strides = [1, 1]} : vector<32x128xbf16> to vector<32x32xbf16>
    %225 = vector.shape_cast %224 : vector<32x32xbf16> to vector<2x16x32xbf16>
    %226 = arith.truncf %221 : vector<2x32x16xf32> to vector<2x32x16xbf16>
    "tpu.trace_start"() <{level = 10 : i32, message = "hmk,hkd->hmd"}> : () -> ()
    %cst_69 = arith.constant dense<0.000000e+00> : vector<2x32x32xf32>
    %227 = tpu.matmul %226, %225, %cst_69 {dimension_numbers = #tpu.dot_dimension_numbers<[2], [1], [1], [2], [0, 0, 0, 1, 1, 2], [0], [0]>} : vector<2x32x16xbf16>, vector<2x16x32xbf16>, vector<2x32x32xf32> -> vector<2x32x32xf32>
    "tpu.trace_stop"() : () -> ()
    %cst_70 = arith.constant dense<0.000000e+00> : vector<32x32xf32>
    %228 = vector.multi_reduction <add>, %227, %cst_70 [0] : vector<2x32x32xf32> to vector<32x32xf32>
    %229 = arith.addf %148, %228 : vector<32x32xf32>
    %c10 = arith.constant 10 : index
    %c0_71 = arith.constant 0 : index
    %230 = vector.load %arg5[%c10, %c0_71] : memref<12x32xf32, #tpu.memory_space<vmem>>, vector<1x32xf32>
    %231 = vector.shape_cast %230 : vector<1x32xf32> to vector<32xf32>
    %232 = vector.shape_cast %231 : vector<32xf32> to vector<1x32xf32>
    %233 = vector.broadcast %232 : vector<1x32xf32> to vector<32x32xf32>
    %234 = arith.addf %229, %233 : vector<32x32xf32>
    %c8 = arith.constant 8 : index
    %c0_72 = arith.constant 0 : index
    %235 = vector.load %arg5[%c8, %c0_72] : memref<12x32xf32, #tpu.memory_space<vmem>>, vector<1x32xf32>
    %236 = vector.shape_cast %235 : vector<1x32xf32> to vector<32xf32>
    %c9 = arith.constant 9 : index
    %c0_73 = arith.constant 0 : index
    %237 = vector.load %arg5[%c9, %c0_73] : memref<12x32xf32, #tpu.memory_space<vmem>>, vector<1x32xf32>
    %238 = vector.shape_cast %237 : vector<1x32xf32> to vector<32xf32>
    %cst_74 = arith.constant dense<0.000000e+00> : vector<32xf32>
    %239 = vector.multi_reduction <add>, %234, %cst_74 [1] : vector<32x32xf32> to vector<32xf32>
    %240 = vector.shape_cast %239 : vector<32xf32> to vector<32x1xf32>
    %cst_75 = arith.constant 3.200000e+01 : f32
    %241 = vector.broadcast %cst_75 : f32 to vector<32x1xf32>
    %242 = arith.divf %240, %241 : vector<32x1xf32>
    %243 = vector.broadcast %242 : vector<32x1xf32> to vector<32x32xf32>
    %244 = arith.subf %234, %243 : vector<32x32xf32>
    %245 = arith.mulf %244, %244 : vector<32x32xf32>
    %cst_76 = arith.constant dense<0.000000e+00> : vector<32xf32>
    %246 = vector.multi_reduction <add>, %245, %cst_76 [1] : vector<32x32xf32> to vector<32xf32>
    %247 = vector.shape_cast %246 : vector<32xf32> to vector<32x1xf32>
    %cst_77 = arith.constant 3.200000e+01 : f32
    %248 = vector.broadcast %cst_77 : f32 to vector<32x1xf32>
    %249 = arith.divf %247, %248 : vector<32x1xf32>
    %250 = vector.broadcast %242 : vector<32x1xf32> to vector<32x32xf32>
    %251 = arith.subf %234, %250 : vector<32x32xf32>
    %cst_78 = arith.constant 9.99999974E-6 : f32
    %252 = vector.broadcast %cst_78 : f32 to vector<32x1xf32>
    %253 = arith.addf %249, %252 : vector<32x1xf32>
    %254 = math.rsqrt %253 : vector<32x1xf32>
    %255 = vector.broadcast %254 : vector<32x1xf32> to vector<32x32xf32>
    %256 = arith.mulf %251, %255 : vector<32x32xf32>
    %257 = vector.shape_cast %236 : vector<32xf32> to vector<1x32xf32>
    %258 = vector.broadcast %257 : vector<1x32xf32> to vector<32x32xf32>
    %259 = arith.mulf %256, %258 : vector<32x32xf32>
    %260 = vector.shape_cast %238 : vector<32xf32> to vector<1x32xf32>
    %261 = vector.broadcast %260 : vector<1x32xf32> to vector<32x32xf32>
    %262 = arith.addf %259, %261 : vector<32x32xf32>
    %c6_79 = arith.constant 6 : index
    %c0_80 = arith.constant 0 : index
    %c0_81 = arith.constant 0 : index
    %263 = vector.load %arg4[%c6_79, %c0_80, %c0_81] : memref<8x32x128xbf16, #tpu.memory_space<vmem>>, vector<1x32x128xbf16>
    %264 = vector.shape_cast %263 : vector<1x32x128xbf16> to vector<32x128xbf16>
    %265 = arith.truncf %262 : vector<32x32xf32> to vector<32x32xbf16>
    %cst_82 = arith.constant dense<0.000000e+00> : vector<32x128xf32>
    %266 = tpu.matmul %265, %264, %cst_82 {dimension_numbers = #tpu.dot_dimension_numbers<[1], [0], [0], [1], [0, 0, 1, 1], [], []>} : vector<32x32xbf16>, vector<32x128xbf16>, vector<32x128xf32> -> vector<32x128xf32>
    %c3_83 = arith.constant 3 : index
    %c0_84 = arith.constant 0 : index
    %267 = vector.load %arg6[%c3_83, %c0_84] : memref<4x128xf32, #tpu.memory_space<vmem>>, vector<1x128xf32>
    %268 = vector.shape_cast %267 : vector<1x128xf32> to vector<128xf32>
    %269 = vector.shape_cast %268 : vector<128xf32> to vector<1x128xf32>
    %270 = vector.broadcast %269 : vector<1x128xf32> to vector<32x128xf32>
    %271 = arith.addf %266, %270 : vector<32x128xf32>
    %cst_85 = arith.constant 1.702000e+00 : f32
    %272 = vector.broadcast %cst_85 : f32 to vector<32x128xf32>
    %273 = arith.mulf %272, %271 : vector<32x128xf32>
    %274 = arith.negf %273 : vector<32x128xf32>
    %275 = math.exp %274 : vector<32x128xf32>
    %cst_86 = arith.constant 1.000000e+00 : f32
    %276 = vector.broadcast %cst_86 : f32 to vector<32x128xf32>
    %277 = arith.addf %276, %275 : vector<32x128xf32>
    %278 = arith.divf %276, %277 : vector<32x128xf32>
    %279 = arith.mulf %271, %278 : vector<32x128xf32>
    %c7_87 = arith.constant 7 : index
    %c0_88 = arith.constant 0 : index
    %c0_89 = arith.constant 0 : index
    %280 = vector.load %arg4[%c7_87, %c0_88, %c0_89] : memref<8x32x128xbf16, #tpu.memory_space<vmem>>, vector<1x32x128xbf16>
    %281 = vector.shape_cast %280 : vector<1x32x128xbf16> to vector<32x128xbf16>
    %282 = arith.truncf %279 : vector<32x128xf32> to vector<32x128xbf16>
    %cst_90 = arith.constant dense<0.000000e+00> : vector<32x32xf32>
    %283 = tpu.matmul %282, %281, %cst_90 {dimension_numbers = #tpu.dot_dimension_numbers<[1], [1], [0], [0], [0, 0, 1, 0], [], []>} : vector<32x128xbf16>, vector<32x128xbf16>, vector<32x32xf32> -> vector<32x32xf32>
    %284 = arith.addf %234, %283 : vector<32x32xf32>
    %c11 = arith.constant 11 : index
    %c0_91 = arith.constant 0 : index
    %285 = vector.load %arg5[%c11, %c0_91] : memref<12x32xf32, #tpu.memory_space<vmem>>, vector<1x32xf32>
    %286 = vector.shape_cast %285 : vector<1x32xf32> to vector<32xf32>
    %287 = vector.shape_cast %286 : vector<32xf32> to vector<1x32xf32>
    %288 = vector.broadcast %287 : vector<1x32xf32> to vector<32x32xf32>
    %289 = arith.addf %284, %288 : vector<32x32xf32>
    %290 = vector.shape_cast %289 : vector<32x32xf32> to vector<4x8x32xf32>
    %c0_92 = arith.constant 0 : index
    %c0_93 = arith.constant 0 : index
    %c0_94 = arith.constant 0 : index
    %291 = vector.load %arg2[%c0_92, %c0_93, %c0_94] : memref<4x8x1xf32, #tpu.memory_space<vmem>>, vector<4x8x1xf32>
    %292 = vector.broadcast %291 : vector<4x8x1xf32> to vector<4x8x32xf32>
    %293 = arith.mulf %290, %292 : vector<4x8x32xf32>
    %cst_95 = arith.constant dense<0.000000e+00> : vector<4x32xf32>
    %294 = vector.multi_reduction <add>, %293, %cst_95 [1] : vector<4x8x32xf32> to vector<4x32xf32>
    %c0_96 = arith.constant 0 : index
    %c0_97 = arith.constant 0 : index
    %295 = vector.load %arg7[%c0_96, %c0_97] : memref<2x32xf32, #tpu.memory_space<vmem>>, vector<1x32xf32>
    %296 = vector.shape_cast %295 : vector<1x32xf32> to vector<32xf32>
    %c1_98 = arith.constant 1 : index
    %c0_99 = arith.constant 0 : index
    %297 = vector.load %arg7[%c1_98, %c0_99] : memref<2x32xf32, #tpu.memory_space<vmem>>, vector<1x32xf32>
    %298 = vector.shape_cast %297 : vector<1x32xf32> to vector<32xf32>
    %cst_100 = arith.constant dense<0.000000e+00> : vector<4xf32>
    %299 = vector.multi_reduction <add>, %294, %cst_100 [1] : vector<4x32xf32> to vector<4xf32>
    %300 = vector.shape_cast %299 : vector<4xf32> to vector<4x1xf32>
    %cst_101 = arith.constant 3.200000e+01 : f32
    %301 = vector.broadcast %cst_101 : f32 to vector<4x1xf32>
    %302 = arith.divf %300, %301 : vector<4x1xf32>
    %303 = vector.broadcast %302 : vector<4x1xf32> to vector<4x32xf32>
    %304 = arith.subf %294, %303 : vector<4x32xf32>
    %305 = arith.mulf %304, %304 : vector<4x32xf32>
    %cst_102 = arith.constant dense<0.000000e+00> : vector<4xf32>
    %306 = vector.multi_reduction <add>, %305, %cst_102 [1] : vector<4x32xf32> to vector<4xf32>
    %307 = vector.shape_cast %306 : vector<4xf32> to vector<4x1xf32>
    %cst_103 = arith.constant 3.200000e+01 : f32
    %308 = vector.broadcast %cst_103 : f32 to vector<4x1xf32>
    %309 = arith.divf %307, %308 : vector<4x1xf32>
    %310 = vector.broadcast %302 : vector<4x1xf32> to vector<4x32xf32>
    %311 = arith.subf %294, %310 : vector<4x32xf32>
    %cst_104 = arith.constant 9.99999974E-6 : f32
    %312 = vector.broadcast %cst_104 : f32 to vector<4x1xf32>
    %313 = arith.addf %309, %312 : vector<4x1xf32>
    %314 = math.rsqrt %313 : vector<4x1xf32>
    %315 = vector.broadcast %314 : vector<4x1xf32> to vector<4x32xf32>
    %316 = arith.mulf %311, %315 : vector<4x32xf32>
    %317 = vector.shape_cast %296 : vector<32xf32> to vector<1x32xf32>
    %318 = vector.broadcast %317 : vector<1x32xf32> to vector<4x32xf32>
    %319 = arith.mulf %316, %318 : vector<4x32xf32>
    %320 = vector.shape_cast %298 : vector<32xf32> to vector<1x32xf32>
    %321 = vector.broadcast %320 : vector<1x32xf32> to vector<4x32xf32>
    %322 = arith.addf %319, %321 : vector<4x32xf32>
    %c0_105 = arith.constant 0 : index
    %c0_106 = arith.constant 0 : index
    %323 = vector.load %arg8[%c0_105, %c0_106] : memref<32x32xbf16, #tpu.memory_space<vmem>>, vector<32x32xbf16>
    %324 = arith.truncf %322 : vector<4x32xf32> to vector<4x32xbf16>
    %cst_107 = arith.constant dense<0.000000e+00> : vector<4x32xf32>
    %325 = tpu.matmul %324, %323, %cst_107 {dimension_numbers = #tpu.dot_dimension_numbers<[1], [0], [0], [1], [0, 0, 1, 1], [], []>} : vector<4x32xbf16>, vector<32x32xbf16>, vector<4x32xf32> -> vector<4x32xf32>
    %c0_108 = arith.constant 0 : index
    %c0_109 = arith.constant 0 : index
    %326 = vector.load %arg3[%c0_108, %c0_109] : memref<2x32xf32, #tpu.memory_space<vmem>>, vector<2x32xf32>
    %327 = arith.mulf %325, %325 : vector<4x32xf32>
    %cst_110 = arith.constant dense<0.000000e+00> : vector<4xf32>
    %328 = vector.multi_reduction <add>, %327, %cst_110 [1] : vector<4x32xf32> to vector<4xf32>
    %329 = vector.shape_cast %328 : vector<4xf32> to vector<4x1xf32>
    %330 = math.rsqrt %329 : vector<4x1xf32>
    %331 = vector.broadcast %330 : vector<4x1xf32> to vector<4x32xf32>
    %332 = arith.mulf %325, %331 : vector<4x32xf32>
    %333 = arith.mulf %326, %326 : vector<2x32xf32>
    %cst_111 = arith.constant dense<0.000000e+00> : vector<2xf32>
    %334 = vector.multi_reduction <add>, %333, %cst_111 [1] : vector<2x32xf32> to vector<2xf32>
    %335 = vector.shape_cast %334 : vector<2xf32> to vector<2x1xf32>
    %336 = math.rsqrt %335 : vector<2x1xf32>
    %337 = vector.broadcast %336 : vector<2x1xf32> to vector<2x32xf32>
    %338 = arith.mulf %326, %337 : vector<2x32xf32>
    %cst_112 = arith.constant dense<0.000000e+00> : vector<2x4xf32>
    %339 = tpu.matmul %338, %332, %cst_112 {dimension_numbers = #tpu.dot_dimension_numbers<[1], [1], [0], [0], [0, 0, 1, 0], [], []>} : vector<2x32xf32>, vector<4x32xf32>, vector<2x4xf32> -> vector<2x4xf32>
    %c0_113 = arith.constant 0 : index
    %c0_114 = arith.constant 0 : index
    %340 = memref.load %arg0[%c0_113, %c0_114] : memref<1x1xf32, #tpu.memory_space<smem>>
    %341 = vector.broadcast %340 : f32 to vector<2x4xf32>
    %342 = arith.mulf %341, %339 : vector<2x4xf32>
    %c0_115 = arith.constant 0 : index
    %c0_116 = arith.constant 0 : index
    %343 = vector.load %arg9[%c0_115, %c0_116] : memref<2x4xf32, #tpu.memory_space<vmem>>, vector<2x4xf32>
    tpu.vector_store %arg9[%c0_115, %c0_116], %342 {strides = array<i32>} : memref<2x4xf32, #tpu.memory_space<vmem>>, vector<2x4xf32>,
    %c0_117 = arith.constant 0 : index
    %c0_118 = arith.constant 0 : index
    %344 = vector.load %arg10[%c0_117, %c0_118] : memref<4x32xf32, #tpu.memory_space<vmem>>, vector<4x32xf32>
    tpu.vector_store %arg10[%c0_117, %c0_118], %332 {strides = array<i32>} : memref<4x32xf32, #tpu.memory_space<vmem>>, vector<4x32xf32>,
    return
  }
}

</mosaic_0001>

<bundles_post_ra>
// kernel: clip_text_and_logits.1
= control target key start
LH: loop header
LB: loop body
LE: loop exit
PB: predicated region body
PF: predicated region fallthrough
CT: control target
= control target key end

     0   :  { %17 = vsyncpa [#allocation4], 0  ;;  %s5697_s0 = inlined_call_operand.<no memory space> [shape: f32[1,1], index: 0, kind: input, shape index: {}]   ;;  %s5698_s1 = inlined_call_operand.hbm [shape: f32[4,8,32], index: 1, kind: input, shape index: {}]   ;;  %s5699_s2 = inlined_call_operand.hbm [shape: f32[4,8,1], index: 2, kind: input, shape index: {}]   ;;  %s5700_s3 = inlined_call_operand.hbm [shape: f32[2,32], index: 3, kind: input, shape index: {}]   ;;  %s5701_s4 = inlined_call_operand.hbm [shape: bf16[8,32,128], index: 4, kind: input, shape index: {}]   ;;  %s5702_s5 = inlined_call_operand.hbm [shape: f32[12,32], index: 5, kind: input, shape index: {}]   ;;  %s5703_s6 = inlined_call_operand.hbm [shape: f32[4,128], index: 6, kind: input, shape index: {}]   ;;  %s5704_s7 = inlined_call_operand.hbm [shape: f32[2,32], index: 7, kind: input, shape index: {}]   ;;  %s5705_s8 = inlined_call_operand.hbm [shape: bf16[32,32], index: 8, kind: input, shape index: {}]   ;;  %s5706_s9 = inlined_call_operand.hbm [shape: f32[2,4], index: 9, kind: output, shape index: {0}]   ;;  %s5707_s10 = inlined_call_operand.hbm [shape: f32[4,32], index: 10, kind: output, shape index: {1}]  }
   0x1   :  { %18 = vsyncpa [#allocation7], 0 }
   0x2   :  { %19 = vsyncpa [#allocation10], 0 }
   0x3   :  { %20 = vsyncpa [#allocation13], 0 }
   0x4   :  { %21 = vsyncpa [#allocation16], 0 }
   0x5   :  { %22 = vsyncpa [#allocation5], 0 }
   0x6   :  { %23 = vsyncpa [#allocation19], 0  ;;  %s4863_s13 = smov [#allocation6]   ;;  %s4864_s15 = smov [#allocation9]  }
   0x7   :  { %s43_s14 = sshll.u32 %s4863_s13, 4  ;;  %s65_s16 = sshll.u32 %s4864_s15, 4  ;;  %s44_s14 = int_to_ptr.vmem [resolvable:$true] %s43_s14  ;;  %s4938_s16 = int_to_ptr.vmem [resolvable:$true] %s65_s16 }
   0x8   :  { %s4629_s19 = scalar_lea.hbm %s5699_s2, 512 }
   0x9   :  { %p4630_p0 = scmp.ne.s32.totalorder %s5699_s2, %s4629_s19  ;;  %p4633_p1 = scmp.lt.u32.totalorder %s4629_s19, %s5699_s2 }
   0xb   :  { %p4635_p2 = pnand %p4633_p1, %p4630_p0 }
   0xd   :  { %4638 = shalt.err (!%p4635_p2)
}
   0xe   :  { %s4639_s24 = scalar_lea.vmem %s44_s14, 512  ;;  %p4644_p4 = scmp.lt.s32.totalorder %s44_s14, %s44_s14 }
   0xf   :  { %p4640_p3 = scmp.ne.s32.totalorder %s44_s14, %s4639_s24  ;;  %p4645_p5 = scmp.lt.s32.totalorder %s4639_s24, %s4639_s24 }
  0x11   :  { %p4646_p6 = por %p4645_p5, %p4644_p4 }
  0x13   :  { %p4647_p7 = pnand %p4646_p6, %p4640_p3 }
  0x15   :  { %4650 = shalt.err (!%p4647_p7)
}
  0x16   :  { %s4865_s25 = smov 128   ;;  %s4866_s26 = smov 8  }
  0x17   :  { %49 = dma.hbm_to_vmem [thread:$0]  %s5699_s2, 512, %s44_s14, [#allocation7], %s4865_s25, %s4865_s25, %s4866_s26  }
  0x18   :  { %s4651_s11 = scalar_lea.hbm %s5701_s4, 2048 }
  0x19   :  { %p4652_p8 = scmp.ne.s32.totalorder %s5701_s4, %s4651_s11  ;;  %p4655_p9 = scmp.lt.u32.totalorder %s4651_s11, %s5701_s4 }
  0x1b   :  { %p4657_p10 = pnand %p4655_p9, %p4652_p8 }
  0x1d   :  { %4660 = shalt.err (!%p4657_p10)
}
  0x1e   :  { %s4661_s18 = scalar_lea.vmem %s4938_s16, 2048  ;;  %p4666_p12 = scmp.lt.s32.totalorder %s4938_s16, %s4938_s16 }
  0x1f   :  { %p4662_p11 = scmp.ne.s32.totalorder %s4938_s16, %s4661_s18  ;;  %p4667_p13 = scmp.lt.s32.totalorder %s4661_s18, %s4661_s18 }
  0x21   :  { %p4668_p0 = por %p4667_p13, %p4666_p12 }
  0x23   :  { %p4669_p1 = pnand %p4668_p0, %p4662_p11 }
  0x25   :  { %4672 = shalt.err (!%p4669_p1)
}
  0x26   :  { %s4867_s2 = smov 64   ;;  %s4868_s14 = smov 4  }
  0x27   :  { %71 = dma.hbm_to_vmem [thread:$0]  %s5701_s4, 2048, %s4938_s16, [#allocation10], %s4867_s2, %s4867_s2, %s4868_s14  }
  0x28   :  { %s4869_s21 = smov [#allocation12]   ;;  %s4870_s23 = smov [#allocation3]  }
  0x29   :  { %s90_s22 = sshll.u32 %s4869_s21, 4  ;;  %s31_s24 = sshll.u32 %s4870_s23, 4  ;;  %s91_s22 = int_to_ptr.vmem [resolvable:$true] %s90_s22  ;;  %s4975_s24 = int_to_ptr.vmem [resolvable:$true] %s31_s24 }
  0x2a   :  { %s4673_s29 = scalar_lea.hbm %s5703_s6, 64 }
  0x2b   :  { %p4674_p2 = scmp.ne.s32.totalorder %s5703_s6, %s4673_s29  ;;  %p4677_p3 = scmp.lt.u32.totalorder %s4673_s29, %s5703_s6 }
  0x2d   :  { %p4679_p4 = pnand %p4677_p3, %p4674_p2 }
  0x2f   :  { %4682 = shalt.err (!%p4679_p4)
}
  0x30   :  { %s4683_s4 = scalar_lea.vmem %s91_s22, 64  ;;  %p4688_p6 = scmp.lt.s32.totalorder %s91_s22, %s91_s22 }
  0x31   :  { %p4684_p5 = scmp.ne.s32.totalorder %s91_s22, %s4683_s4  ;;  %p4689_p7 = scmp.lt.s32.totalorder %s4683_s4, %s4683_s4 }
  0x33   :  { %p4690_p8 = por %p4689_p7, %p4688_p6 }
  0x35   :  { %p4691_p9 = pnand %p4690_p8, %p4684_p5 }
  0x37   :  { %4694 = shalt.err (!%p4691_p9)
}
  0x38   :  { %93 = dma.hbm_to_vmem [thread:$0]  %s5703_s6, 64, %s91_s22, [#allocation13]  }
  0x39   :  { %s4695_s19 = scalar_lea.hbm %s5698_s1, 512 }
  0x3a   :  { %p4696_p10 = scmp.ne.s32.totalorder %s5698_s1, %s4695_s19  ;;  %p4699_p11 = scmp.lt.u32.totalorder %s4695_s19, %s5698_s1 }
  0x3c   :  { %p4701_p12 = pnand %p4699_p11, %p4696_p10 }
  0x3e   :  { %4704 = shalt.err (!%p4701_p12)
}
  0x3f   :  { %s4705_s28 = scalar_lea.vmem %s4975_s24, 512  ;;  %p4710_p0 = scmp.lt.s32.totalorder %s4975_s24, %s4975_s24 }
  0x40   :  { %p4706_p13 = scmp.ne.s32.totalorder %s4975_s24, %s4705_s28  ;;  %p4711_p1 = scmp.lt.s32.totalorder %s4705_s28, %s4705_s28 }
  0x42   :  { %p4712_p2 = por %p4711_p1, %p4710_p0 }
  0x44   :  { %p4713_p3 = pnand %p4712_p2, %p4706_p13 }
  0x46   :  { %4716 = shalt.err (!%p4713_p3)
}
  0x47   :  { %37 = dma.hbm_to_vmem [thread:$0]  %s5698_s1, 512, %s4975_s24, [#allocation4], %s4865_s25, %s4865_s25, %s4866_s26  }
  0x48   :  { %s4871_s29 = smov [#allocation8]   ;;  %s4872_s11 = smov [#allocation11]  }
  0x49   :  { %s56_s30 = sshll.u32 %s4871_s29, 4  ;;  %s77_s12 = sshll.u32 %s4872_s11, 4  ;;  %s57_s30 = int_to_ptr.vmem [resolvable:$true] %s56_s30  ;;  %s5009_s12 = int_to_ptr.vmem [resolvable:$true] %s77_s12 }
  0x4a   :  { %s4717_s16 = scalar_lea.hbm %s5700_s3, 32 }
  0x4b   :  { %p4718_p4 = scmp.ne.s32.totalorder %s5700_s3, %s4717_s16  ;;  %p4721_p5 = scmp.lt.u32.totalorder %s4717_s16, %s5700_s3 }
  0x4d   :  { %p4723_p6 = pnand %p4721_p5, %p4718_p4 }
  0x4f   :  { %4726 = shalt.err (!%p4723_p6)
}
  0x50   :  { %s4727_s1 = scalar_lea.vmem %s57_s30, 32  ;;  %p4732_p8 = scmp.lt.s32.totalorder %s57_s30, %s57_s30 }
  0x51   :  { %p4728_p7 = scmp.ne.s32.totalorder %s57_s30, %s4727_s1  ;;  %p4733_p9 = scmp.lt.s32.totalorder %s4727_s1, %s4727_s1 }
  0x53   :  { %p4734_p10 = por %p4733_p9, %p4732_p8 }
  0x55   :  { %p4735_p11 = pnand %p4734_p10, %p4728_p7 }
  0x57   :  { %4738 = shalt.err (!%p4735_p11)
}
  0x58   :  { %59 = dma.hbm_to_vmem [thread:$0]  %s5700_s3, 32, %s57_s30, [#allocation7]  }
  0x59   :  { %s4739_s27 = scalar_lea.hbm %s5702_s5, 256 }
  0x5a   :  { %p4740_p12 = scmp.ne.s32.totalorder %s5702_s5, %s4739_s27  ;;  %p4743_p13 = scmp.lt.u32.totalorder %s4739_s27, %s5702_s5 }
  0x5c   :  { %p4745_p0 = pnand %p4743_p13, %p4740_p12 }
  0x5e   :  { %4748 = shalt.err (!%p4745_p0)
}
  0x5f   :  { %s4749_s11 = scalar_lea.vmem %s5009_s12, 256  ;;  %p4754_p2 = scmp.lt.s32.totalorder %s5009_s12, %s5009_s12 }
  0x60   :  { %p4750_p1 = scmp.ne.s32.totalorder %s5009_s12, %s4749_s11  ;;  %p4755_p3 = scmp.lt.s32.totalorder %s4749_s11, %s4749_s11 }
  0x62   :  { %p4756_p4 = por %p4755_p3, %p4754_p2 }
  0x64   :  { %p4757_p5 = pnand %p4756_p4, %p4750_p1 }
  0x66   :  { %4760 = shalt.err (!%p4757_p5)
}
  0x67   :  { %83 = dma.hbm_to_vmem [thread:$0]  %s5702_s5, 256, %s5009_s12, [#allocation10], %s4865_s25, %s4865_s25, %s4866_s26  }
  0x68   :  { %s4873_s13 = smov [#allocation14]   ;;  %s4874_s16 = smov [#allocation15]  }
  0x69   :  { %s100_s4 = sshll.u32 %s4873_s13, 4  ;;  %s109_s15 = sshll.u32 %s4874_s16, 4  ;;  %s101_s4 = int_to_ptr.vmem [resolvable:$true] %s100_s4  ;;  %s5043_s15 = int_to_ptr.vmem [resolvable:$true] %s109_s15 }
  0x6a   :  { %s4761_s19 = scalar_lea.hbm %s5704_s7, 32 }
  0x6b   :  { %p4762_p6 = scmp.ne.s32.totalorder %s5704_s7, %s4761_s19  ;;  %p4765_p7 = scmp.lt.u32.totalorder %s4761_s19, %s5704_s7 }
  0x6d   :  { %p4767_p8 = pnand %p4765_p7, %p4762_p6 }
  0x6f   :  { %4770 = shalt.err (!%p4767_p8)
}
  0x70   :  { %s4771_s5 = scalar_lea.vmem %s101_s4, 32  ;;  %p4776_p10 = scmp.lt.s32.totalorder %s101_s4, %s101_s4 }
  0x71   :  { %p4772_p9 = scmp.ne.s32.totalorder %s101_s4, %s4771_s5  ;;  %p4777_p11 = scmp.lt.s32.totalorder %s4771_s5, %s4771_s5 }
  0x73   :  { %p4778_p12 = por %p4777_p11, %p4776_p10 }
  0x75   :  { %p4779_p13 = pnand %p4778_p12, %p4772_p9 }
  0x77   :  { %4782 = shalt.err (!%p4779_p13)
}
  0x78   :  { %103 = dma.hbm_to_vmem [thread:$0]  %s5704_s7, 32, %s101_s4, [#allocation13]  }
  0x79   :  { %s4783_s27 = scalar_lea.hbm %s5705_s8, 256 }
  0x7a   :  { %p4784_p0 = scmp.ne.s32.totalorder %s5705_s8, %s4783_s27  ;;  %p4787_p1 = scmp.lt.u32.totalorder %s4783_s27, %s5705_s8 }
  0x7c   :  { %p4789_p2 = pnand %p4787_p1, %p4784_p0 }
  0x7e   :  { %4792 = shalt.err (!%p4789_p2)
}
  0x7f   :  { %s4793_s11 = scalar_lea.vmem %s5043_s15, 256  ;;  %p4798_p4 = scmp.lt.s32.totalorder %s5043_s15, %s5043_s15 }
  0x80   :  { %p4794_p3 = scmp.ne.s32.totalorder %s5043_s15, %s4793_s11  ;;  %p4799_p5 = scmp.lt.s32.totalorder %s4793_s11, %s4793_s11 }
  0x82   :  { %p4800_p6 = por %p4799_p5, %p4798_p4 }
  0x84   :  { %p4801_p7 = pnand %p4800_p6, %p4794_p3 }
  0x86   :  { %4804 = shalt.err (!%p4801_p7)
}
  0x87   :  { %115 = dma.hbm_to_vmem [thread:$0]  %s5705_s8, 256, %s5043_s15, [#allocation16], %s4867_s2, %s4867_s2, %s4868_s14  }
  0x88   :  { %4849 = dma.done.wait [#allocation4], 512  }
  0x89   :  { %4850 = vsyncadd [#allocation4], 4294966784 }
  0x8a   :  { %4851 = dma.done.wait [#allocation7], 544  }
  0x8b   :  { %4852 = vsyncadd [#allocation7], 4294966752 }
  0x8c   :  { %4853 = dma.done.wait [#allocation10], 2304  }
  0x8d   :  { %4854 = vsyncadd [#allocation10], 4294964992 }
  0x8e   :  { %4855 = dma.done.wait [#allocation13], 96  }
  0x8f   :  { %4856 = vsyncadd [#allocation13], 4294967200 }
  0x90   :  { %4857 = dma.done.wait [#allocation16], 256  }
  0x91   :  { %4858 = vsyncadd [#allocation16], 4294967040  ;;  %vm153_vm0 = vcmask 261120   ;;  %v5077_v0 = vld [vmem:[#allocation3] sm:$0xff]  ;;  %v5079_v1 = vld [vmem:[#allocation3 + $0x10] sm:$0xff]  ;;  %v4875_v62 = vmov 0.0  }
  0x92   :  { %v5081_v2 = vld [vmem:[#allocation3 + $0x8] sm:$0xff]  ;;  %v154_v3 = vsel %vm153_vm0, %v5077_v0, 0.0  ;;  %v160_v4 = vsel %vm153_vm0, %v5079_v1, 0.0  ;;  %v5087_v5 = vld [vmem:[#allocation3 + $0x18] sm:$0xff]  ;;  %v3958_v44 = vld [vmem:[#allocation11] ss:$0 sm:$0xff]  ;;  %4166 = vmatprep.subr.bf16.mxu1 %v4875_v62 }
  0x93   :  { %155 = vadd.xlane.f32.xlu0 %v154_v3  ;;  %161 = vadd.xlane.f32.xlu1 %v160_v4  ;;  %v157_v6 = vsel %vm153_vm0, %v5081_v2, 0.0  ;;  %v163_v7 = vsel %vm153_vm0, %v5087_v5, 0.0  ;;  %v4477_v28 = vld [vmem:[#allocation9] sm:$0xff]   ;;  %v4478_v29 = vld [vmem:[#allocation9 + $0x8] sm:$0xff]   ;;  %v3960_v63 = vld [vmem:[#allocation12] ss:$0 sm:$0xff] }
  0x94   :  { %4158 = vmatprep.subr.bf16.mxu0 %v4477_v28  ;;  %v3959_v49 = vld [vmem:[#allocation11 + $0x1] ss:$0 sm:$0xff]  ;;  %vm4876_vm1 = vmmov 0   ;;  %s4877_s8 = smov 112   ;;  %s4878_s14 = smov 96   ;;  %vm356_vm2 = vcmask 130048  }
  0x95   :  { %4159 = vmatpush3.bf16.msra.mxu0 %v4477_v28  ;;  %4168 = vmatprep.mubr.msk.bf16.mxu1 %vm4876_vm1, %v4875_v62  ;;  %vm746_vm4 = vcmask 64512   ;;  %vm3678_vm5 = vcmask 1041409   ;;  %vm3680_vm6 = vcmask 1042434   ;;  %vm3682_vm7 = vcmask 1043459  }
  0x96   :  { %4160 = vmatprep.subr.bf16.mxu0 %v4478_v29  ;;  %vm3685_vm8 = vcmask 257024   ;;  %vm3837_vm9 = vcmask 254976  }
  0x97   :  { %158 = vadd.xlane.f32.xlu0 %v157_v6  ;;  %164 = vadd.xlane.f32.xlu1 %v163_v7 }
  0x99   :  { %4161 = vmatpush3.bf16.msra.mxu0 %v4478_v29 }
  0x9a   :  { %4172 = vmatprep.subr.bf16.mxu0 %v4875_v62 }
 0x120   :  { %v156_v8 = vpop.xlane.xlu0 %155  ;;  %v162_v9 = vpop.xlane.xlu1 %161 }
 0x121   :  { %v167_v10 = vmul.f32 0.03125, %v156_v8  ;;  %v169_v11 = vmul.f32 0.03125, %v162_v9 }
 0x123   :  { %v171_v12 = vsub.f32 %v5077_v0, %v167_v10  ;;  %v173_v13 = vsub.f32 %v5079_v1, %v169_v11 }
 0x124   :  { %v159_v14 = vpop.xlane.xlu0 %158  ;;  %v165_v15 = vpop.xlane.xlu1 %164 }
 0x125   :  { %v168_v16 = vmul.f32 0.03125, %v159_v14  ;;  %v170_v17 = vmul.f32 0.03125, %v165_v15  ;;  %v175_v18 = vmul.f32 %v171_v12, %v171_v12  ;;  %v177_v19 = vmul.f32 %v173_v13, %v173_v13 }
 0x127   :  { %v172_v20 = vsub.f32 %v5081_v2, %v168_v16  ;;  %v174_v21 = vsub.f32 %v5087_v5, %v170_v17  ;;  %v179_v22 = vsel %vm153_vm0, %v175_v18, 0.0  ;;  %v185_v23 = vsel %vm153_vm0, %v177_v19, 0.0 }
 0x128   :  { %180 = vadd.xlane.f32.xlu0 %v179_v22 }
 0x129   :  { %v176_v24 = vmul.f32 %v172_v20, %v172_v20  ;;  %v178_v25 = vmul.f32 %v174_v21, %v174_v21 }
 0x12b   :  { %v182_v26 = vsel %vm153_vm0, %v176_v24, 0.0  ;;  %v188_v27 = vsel %vm153_vm0, %v178_v25, 0.0 }
 0x12c   :  { %186 = vadd.xlane.f32.xlu0 %v185_v23  ;;  %183 = vadd.xlane.f32.xlu1 %v182_v26 }
 0x130   :  { %189 = vadd.xlane.f32.xlu1 %v188_v27 }
 0x1b5   :  { %v181_v30 = vpop.xlane.xlu0 %180 }
 0x1b6   :  { %v191_v31 = vmul.f32 0.03125, %v181_v30 }
 0x1b8   :  { %v195_v32 = vadd.f32 1e-05, %v191_v31 }
 0x1b9   :  { %v184_v33 = vpop.xlane.xlu1 %183  ;;  %v187_v34 = vpop.xlane.xlu0 %186 }
 0x1ba   :  { %4495 = vrsqrt.f32 %v195_v32  ;;  %v192_v35 = vmul.f32 0.03125, %v184_v33  ;;  %v193_v36 = vmul.f32 0.03125, %v187_v34 }
 0x1bc   :  { %v196_v37 = vadd.f32 1e-05, %v192_v35  ;;  %v197_v38 = vadd.f32 1e-05, %v193_v36 }
 0x1bd   :  { %v190_v39 = vpop.xlane.xlu1 %189 }
 0x1be   :  { %4497 = vrsqrt.f32 %v196_v37  ;;  %v194_v40 = vmul.f32 0.03125, %v190_v39 }
 0x1bf   :  { %4499 = vrsqrt.f32 %v197_v38 }
 0x1c0   :  { %v198_v41 = vadd.f32 1e-05, %v194_v40 }
 0x1c2   :  { %4501 = vrsqrt.f32 %v198_v41 }
 0x1c4   :  { %v4496_v42 = vpop.eup %4495 }
 0x1c5   :  { %v203_v43 = vmul.f32 %v4496_v42, %v171_v12 }
 0x1c7   :  { %v211_v48 = vmul.f32 %v3958_v44, %v203_v43 }
 0x1c8   :  { %v4498_v45 = vpop.eup %4497 }
 0x1c9   :  { %v4500_v46 = vpop.eup %4499  ;;  %v204_v47 = vmul.f32 %v4498_v45, %v172_v20  ;;  %v219_v53 = vadd.f32 %v3959_v49, %v211_v48 }
 0x1ca   :  { %v205_v50 = vmul.f32 %v4500_v46, %v173_v13 }
 0x1cb   :  { %v212_v51 = vmul.f32 %v3958_v44, %v204_v47 }
 0x1cc   :  { %v4502_v52 = vpop.eup %4501  ;;  %v213_v56 = vmul.f32 %v3958_v44, %v205_v50 }
 0x1cd   :  { %v220_v54 = vadd.f32 %v3959_v49, %v212_v51  ;;  %v206_v55 = vmul.f32 %v4502_v52, %v174_v21 }
 0x1ce   :  { %v221_v59 = vadd.f32 %v3959_v49, %v213_v56 }
 0x1cf   :  { %v227_v57 = vpack.c.bf16 %v220_v54, %v219_v53  ;;  %v214_v58 = vmul.f32 %v3958_v44, %v206_v55 }
 0x1d1   :  { %4162 = vmatprep.mubr.msk.bf16.mxu0 %vm153_vm0, %v227_v57  ;;  %v222_v60 = vadd.f32 %v3959_v49, %v214_v58 }
 0x1d3   :  { %v228_v61 = vpack.c.bf16 %v222_v60, %v221_v59  ;;  %v145_v60 = vlaneseq }
 0x1d5   :  { %4163 = vmatmul.mubr.msk.bf16.vlgmr.msra.gmra.mrb[0].mxu0 %vm153_vm0, %v228_v61  ;;  %v146_v61 = vshrl.u32 %v145_v60, 7 }
 0x1d6   :  { %4174 = vmatprep.mubr.msk.bf16.mxu0 %vm4876_vm1, %v4875_v62 }
 0x2a8   :  { %v4164_v3 = vpop.f32.mrb[0].mxu0 }
 0x2a9   :  { %v286_v4 = vpop.f32.mrb[1].mxu0  ;;  %v5115_v10 = vadd.f32 %v4164_v3, %v3960_v63  ;;  %v4879_v3 = vmov -1e+09  }
 0x2aa   :  { %v5105_v6 = vadd.f32 %v3960_v63, %v286_v4  ;;  %v4165_v7 = vpop.f32.mrb[2].mxu0 }
 0x2ab   :  { %v289_v8 = vpop.f32.mrb[3].mxu0  ;;  %v347_v12 = vpack.c.bf16 %v5115_v10, %v5115_v10  ;;  %v5126_v13 = vadd.f32 %v4165_v7, %v3960_v63  ;;  %v303_v28 = vmul.f32 0.25, %v5115_v10 }
 0x2ac   :  { %v5111_v9 = vadd.f32 %v3960_v63, %v289_v8  ;;  %325 = vrot.lane.b32.xlu0 %v5105_v6, %s4877_s8  ;;  %v345_v11 = vpack.c.bf16 %v5105_v6, %v5105_v6  ;;  %v301_v21 = vmul.f32 0.25, %v5105_v6  ;;  %v148_v63 = vand.u32 127, %v145_v60 }
 0x2ad   :  { %v348_v15 = vpack.c.bf16 %v5126_v13, %v5126_v13  ;;  %v304_v27 = vmul.f32 0.25, %v5126_v13  ;;  %v339_v37 = vpack.c.bf16 %v303_v28, %v303_v28 }
 0x2ae   :  { %327 = vrot.lane.b32.xlu1 %v5111_v9, %s4877_s8  ;;  %v346_v14 = vpack.c.bf16 %v5111_v9, %v5111_v9  ;;  %v302_v18 = vmul.f32 0.25, %v5111_v9  ;;  %v337_v33 = vpack.c.bf16 %v301_v21, %v301_v21  ;;  %vm149_vm3 = vcmp.ge.s32.totalorder %v146_v61, %v148_v63 }
 0x2af   :  { %v4460_v32 = vpack.i.bf16 %v304_v27, %v303_v28  ;;  %v340_v41 = vpack.c.bf16 %v304_v27, %v304_v27  ;;  %v5203_v4 = vsel %vm149_vm3, 0.0, %v4879_v3 }
 0x2b0   :  { %354 = vrot.lane.b32.xlu0 %v345_v11, %s4878_s14  ;;  %v4455_v24 = vpack.i.bf16 %v302_v18, %v301_v21  ;;  %v338_v39 = vpack.c.bf16 %v302_v18, %v302_v18 }
 0x2b2   :  { %329 = vrot.lane.b32.xlu1 %v5115_v10, %s4877_s8 }
 0x2b4   :  { %453 = vrot.lane.b32.xlu0 %v347_v12, %s4878_s14 }
 0x2b6   :  { %331 = vrot.lane.b32.xlu1 %v5126_v13, %s4877_s8 }
 0x2ba   :  { %404 = vrot.lane.b32.xlu1 %v346_v14, %s4878_s14 }
 0x2be   :  { %502 = vrot.lane.b32.xlu1 %v348_v15, %s4878_s14 }
 0x31e   :  { %v5137_v16 = vpop.permute.xlu0 %325 }
 0x31f   :  { %v349_v17 = vpack.c.bf16 %v5137_v16, %v5137_v16 }
 0x320   :  { %v5142_v19 = vpop.permute.xlu1 %327 }
 0x321   :  { %v350_v20 = vpack.c.bf16 %v5142_v19, %v5142_v19  ;;  %551 = vrot.lane.b32.xlu0 %v349_v17, %s4878_s14 }
 0x322   :  { %v355_v22 = vpop.permute.xlu0 %354 }
 0x323   :  { %600 = vrot.lane.b32.xlu1 %v350_v20, %s4878_s14  ;;  %v361_v23 = vsel %vm356_vm2, %v355_v22, 0 }
 0x324   :  { %v5150_v25 = vpop.permute.xlu1 %329  ;;  %4167 = vmatpush3.bf16.xpose.msra.mxu1 %v361_v23 }
 0x325   :  { %v351_v26 = vpack.c.bf16 %v5150_v25, %v5150_v25  ;;  %4456 = vrot.lane.b32.xlu0 %v4455_v24, %s4877_s8  ;;  %4178 = vmatprep.subr.bf16.mxu1 %v4875_v62 }
 0x326   :  { %v454_v30 = vpop.permute.xlu0 %453 }
 0x327   :  { %649 = vrot.lane.b32.xlu1 %v351_v26, %s4878_s14  ;;  %v459_v34 = vsel %vm356_vm2, %v454_v30, 0 }
 0x328   :  { %v5159_v29 = vpop.permute.xlu1 %331 }
 0x329   :  { %v352_v31 = vpack.c.bf16 %v5159_v29, %v5159_v29 }
 0x32b   :  { %4461 = vrot.lane.b32.xlu1 %v4460_v32, %s4877_s8  ;;  %698 = vrot.lane.b32.xlu0 %v352_v31, %s4878_s14 }
 0x32c   :  { %4169 = vmatmul.mubr.msk.bf16.vlgmr.msra.gmra.mrb[0].mxu1 %vm356_vm2, %v337_v33  ;;  %v405_v35 = vpop.permute.xlu1 %404 }
 0x32d   :  { %v410_v36 = vsel %vm356_vm2, %v405_v35, 0  ;;  %4179 = vmatpush3.bf16.xpose.msra.mxu1 %v459_v34  ;;  %4180 = vmatprep.mubr.msk.bf16.mxu1 %vm4876_vm1, %v4875_v62 }
 0x32e   :  { %4173 = vmatpush3.bf16.xpose.msra.mxu0 %v410_v36  ;;  %4190 = vmatprep.subr.bf16.mxu1 %v4875_v62 }
 0x32f   :  { %4184 = vmatprep.subr.bf16.mxu0 %v4875_v62 }
 0x330   :  { %v503_v38 = vpop.permute.xlu1 %502 }
 0x331   :  { %v508_v40 = vsel %vm356_vm2, %v503_v38, 0 }
 0x334   :  { %4181 = vmatmul.mubr.msk.bf16.vlgmr.msra.gmra.mrb[4].mxu1 %vm356_vm2, %v339_v37 }
 0x335   :  { %4175 = vmatmul.mubr.msk.bf16.vlgmr.msra.gmra.mrb[4].mxu0 %vm356_vm2, %v338_v39  ;;  %4192 = vmatprep.mubr.msk.bf16.mxu1 %vm4876_vm1, %v4875_v62 }
 0x336   :  { %4185 = vmatpush3.bf16.xpose.msra.mxu0 %v508_v40  ;;  %4186 = vmatprep.mubr.msk.bf16.mxu0 %vm4876_vm1, %v4875_v62 }
 0x337   :  { %4196 = vmatprep.subr.bf16.mxu0 %v4875_v62 }
 0x33d   :  { %4187 = vmatmul.mubr.msk.bf16.vlgmr.msra.gmra.mrb[8].mxu0 %vm356_vm2, %v340_v41 }
 0x33e   :  { %4198 = vmatprep.mubr.msk.bf16.mxu0 %vm4876_vm1, %v4875_v62 }
 0x393   :  { %v552_v42 = vpop.permute.xlu0 %551 }
 0x394   :  { %v557_v43 = vsel %vm356_vm2, %v552_v42, 0 }
 0x395   :  { %v601_v44 = vpop.permute.xlu1 %600  ;;  %4191 = vmatpush3.bf16.xpose.msra.mxu1 %v557_v43 }
 0x396   :  { %v606_v45 = vsel %vm356_vm2, %v601_v44, 0  ;;  %4202 = vmatprep.subr.bf16.mxu1 %v4875_v62 }
 0x397   :  { %4197 = vmatpush3.bf16.xpose.msra.mxu0 %v606_v45  ;;  %v4457_v46 = vpop.permute.xlu0 %4456 }
 0x398   :  { %v4459_v47 = vunpack.i.h.bf16 %v4457_v46  ;;  %v4458_v48 = vunpack.i.l.bf16 %v4457_v46  ;;  %4208 = vmatprep.subr.bf16.mxu0 %v4875_v62 }
 0x399   :  { %v650_v49 = vpop.permute.xlu1 %649 }
 0x39a   :  { %v341_v50 = vpack.c.bf16 %v4458_v48, %v4458_v48  ;;  %v342_v51 = vpack.c.bf16 %v4459_v47, %v4459_v47  ;;  %v655_v52 = vsel %vm356_vm2, %v650_v49, 0 }
 0x39c   :  { %4193 = vmatmul.mubr.msk.bf16.vlgmr.msra.gmra.mrb[8].mxu1 %vm356_vm2, %v341_v50 }
 0x39d   :  { %v4462_v53 = vpop.permute.xlu1 %4461  ;;  %v699_v54 = vpop.permute.xlu0 %698  ;;  %4203 = vmatpush3.bf16.xpose.msra.mxu1 %v655_v52  ;;  %4204 = vmatprep.mubr.msk.bf16.mxu1 %vm4876_vm1, %v4875_v62 }
 0x39e   :  { %v4463_v55 = vunpack.i.l.bf16 %v4462_v53  ;;  %v704_v56 = vsel %vm356_vm2, %v699_v54, 0  ;;  %4199 = vmatmul.mubr.msk.bf16.vlgmr.msra.gmra.mrb[12].mxu0 %vm356_vm2, %v342_v51  ;;  %4214 = vmatprep.subr.mxu1 %v4875_v62  ;;  %v4464_v57 = vunpack.i.h.bf16 %v4462_v53 }
 0x39f   :  { %4209 = vmatpush3.bf16.xpose.msra.mxu0 %v704_v56  ;;  %4210 = vmatprep.mubr.msk.bf16.mxu0 %vm4876_vm1, %v4875_v62 }
 0x3a0   :  { %4220 = vmatprep.subr.mxu0 %v4875_v62  ;;  %v343_v58 = vpack.c.bf16 %v4463_v55, %v4463_v55  ;;  %v344_v59 = vpack.c.bf16 %v4464_v57, %v4464_v57 }
 0x3a4   :  { %4205 = vmatmul.mubr.msk.bf16.vlgmr.msra.gmra.mrb[12].mxu1 %vm356_vm2, %v343_v58 }
 0x3a5   :  { %4216 = vmatprep.mubr.msk.bf16.mxu1 %vm4876_vm1, %v4875_v62 }
 0x3a6   :  { %4211 = vmatmul.mubr.msk.bf16.vlgmr.msra.gmra.mrb[16].mxu0 %vm356_vm2, %v344_v59 }
 0x3a7   :  { %4222 = vmatprep.mubr.msk.bf16.mxu0 %vm4876_vm1, %v4875_v62 }
 0x3ff   :  { %v397_v7 = vpop.f32.mrb[0].mxu1 }
 0x400   :  { %v398_v8 = vadd.f32 %v397_v7, %v5203_v4  ;;  %v4170_v11 = vpop.f32.mrb[1].mxu1 }
 0x401   :  { %v400_v12 = vpop.f32.mrb[2].mxu1 }
 0x402   :  { %v4171_v14 = vpop.f32.mrb[3].mxu1  ;;  %v747_v15 = vsel %vm746_vm4, %v398_v8, -inf }
 0x403   :  { %748 = vmax.xlane.f32.xlu0 %v747_v15 }
 0x407   :  { %v495_v17 = vpop.f32.mrb[4].mxu1 }
 0x408   :  { %v496_v18 = vadd.f32 %v495_v17, %v5203_v4  ;;  %v4182_v20 = vpop.f32.mrb[5].mxu1  ;;  %v446_v21 = vpop.f32.mrb[4].mxu0 }
 0x409   :  { %v5209_v22 = vadd.f32 %v446_v21, %v5203_v4  ;;  %v498_v23 = vpop.f32.mrb[6].mxu1  ;;  %v4176_v24 = vpop.f32.mrb[5].mxu0 }
 0x40a   :  { %v4183_v26 = vpop.f32.mrb[7].mxu1  ;;  %v449_v27 = vpop.f32.mrb[6].mxu0  ;;  %v753_v28 = vsel %vm746_vm4, %v496_v18, -inf }
 0x40b   :  { %754 = vmax.xlane.f32.xlu0 %v753_v28  ;;  %v4177_v30 = vpop.f32.mrb[7].mxu0  ;;  %v750_v31 = vsel %vm746_vm4, %v5209_v22, -inf }
 0x40c   :  { %751 = vmax.xlane.f32.xlu1 %v750_v31 }
 0x410   :  { %v544_v32 = vpop.f32.mrb[8].mxu0 }
 0x411   :  { %v545_v33 = vadd.f32 %v544_v32, %v5203_v4  ;;  %v4188_v34 = vpop.f32.mrb[9].mxu0 }
 0x412   :  { %v547_v35 = vpop.f32.mrb[10].mxu0 }
 0x413   :  { %v4189_v36 = vpop.f32.mrb[11].mxu0  ;;  %v756_v37 = vsel %vm746_vm4, %v545_v33, -inf }
 0x414   :  { %757 = vmax.xlane.f32.xlu0 %v756_v37 }
 0x46f   :  { %v593_v38 = vpop.f32.mrb[8].mxu1 }
 0x470   :  { %v5217_v39 = vadd.f32 %v593_v38, %v5203_v4  ;;  %v4194_v40 = vpop.f32.mrb[9].mxu1 }
 0x471   :  { %v596_v41 = vpop.f32.mrb[10].mxu1  ;;  %v642_v42 = vpop.f32.mrb[12].mxu0 }
 0x472   :  { %v5220_v43 = vadd.f32 %v642_v42, %v5203_v4  ;;  %v4195_v44 = vpop.f32.mrb[11].mxu1  ;;  %v4200_v45 = vpop.f32.mrb[13].mxu0  ;;  %v759_v46 = vsel %vm746_vm4, %v5217_v39, -inf }
 0x473   :  { %v645_v47 = vpop.f32.mrb[14].mxu0  ;;  %760 = vmax.xlane.f32.xlu0 %v759_v46 }
 0x474   :  { %v4201_v48 = vpop.f32.mrb[15].mxu0  ;;  %v762_v49 = vsel %vm746_vm4, %v5220_v43, -inf }
 0x475   :  { %763 = vmax.xlane.f32.xlu1 %v762_v49 }
 0x477   :  { %v691_v50 = vpop.f32.mrb[12].mxu1 }
 0x478   :  { %v5227_v51 = vadd.f32 %v691_v50, %v5203_v4  ;;  %v4206_v52 = vpop.f32.mrb[13].mxu1 }
 0x479   :  { %v694_v53 = vpop.f32.mrb[14].mxu1  ;;  %v740_v54 = vpop.f32.mrb[16].mxu0 }
 0x47a   :  { %v4207_v55 = vpop.f32.mrb[15].mxu1  ;;  %v4212_v56 = vpop.f32.mrb[17].mxu0  ;;  %v765_v57 = vsel %vm746_vm4, %v5227_v51, -inf  ;;  %v741_v12 = vadd.f32 %v740_v54, %v5203_v4 }
 0x47b   :  { %v743_v58 = vpop.f32.mrb[18].mxu0  ;;  %766 = vmax.xlane.f32.xlu0 %v765_v57 }
 0x47c   :  { %v4213_v59 = vpop.f32.mrb[19].mxu0  ;;  %v768_v15 = vsel %vm746_vm4, %v741_v12, -inf }
 0x486   :  { %921 = vrot.lane.b32.xlu1 %v5111_v9, %s4867_s2 }
 0x48a   :  { %999 = vrot.lane.b32.xlu1 %v5115_v10, %s4867_s2 }
 0x490   :  { %v749_v60 = vpop.xlane.xlu0 %748 }
 0x491   :  { %843 = vrot.lane.b32.xlu0 %v5105_v6, %s4867_s2  ;;  %v771_v61 = vsub.f32 %v398_v8, %v749_v60 }
 0x493   :  { %v779_v3 = vmul.f32 1.442695, %v771_v61 }
 0x495   :  { %4503 = vpow2.f32 %v779_v3 }
 0x498   :  { %v755_v63 = vpop.xlane.xlu0 %754 }
 0x499   :  { %v773_v7 = vsub.f32 %v496_v18, %v755_v63  ;;  %v752_v8 = vpop.xlane.xlu1 %751 }
 0x49a   :  { %v772_v17 = vsub.f32 %v5209_v22, %v752_v8 }
 0x49b   :  { %v783_v11 = vmul.f32 1.442695, %v773_v7 }
 0x49c   :  { %v781_v20 = vmul.f32 1.442695, %v772_v17 }
 0x49d   :  { %4505 = vpow2.f32 %v783_v11 }
 0x49e   :  { %4507 = vpow2.f32 %v781_v20  ;;  %v4479_v20 = vld [vmem:[#allocation9 + $0x10] sm:$0xff]  }
 0x49f   :  { %v4504_v14 = vpop.eup %4503 }
 0x4a0   :  { %v795_v9 = vsel %vm746_vm4, %v4504_v14, 0.0 }
 0x4a1   :  { %v758_v18 = vpop.xlane.xlu0 %757 }
 0x4a2   :  { %v774_v21 = vsub.f32 %v545_v33, %v758_v18 }
 0x4a4   :  { %v785_v23 = vmul.f32 1.442695, %v774_v21 }
 0x4a6   :  { %4509 = vpow2.f32 %v785_v23 }
 0x4a7   :  { %v5240_v10 = vpop.eup %4505 }
 0x4a8   :  { %v801_v6 = vsel %vm746_vm4, %v5240_v10, 0.0  ;;  %v5247_v24 = vpop.eup %4507 }
 0x4a9   :  { %v798_v26 = vsel %vm746_vm4, %v5247_v24, 0.0 }
 0x4ae   :  { %769 = vmax.xlane.f32.xlu1 %v768_v15 }
 0x4b0   :  { %796 = vadd.xlane.f32.xlu0 %v795_v9  ;;  %v5251_v27 = vpop.eup %4509 }
 0x4b4   :  { %802 = vadd.xlane.f32.xlu0 %v801_v6 }
 0x4bf   :  { %1077 = vrot.lane.b32.xlu1 %v5126_v13, %s4867_s2  ;;  %v804_v13 = vsel %vm746_vm4, %v5251_v27, 0.0 }
 0x4e3   :  { %799 = vadd.xlane.f32.xlu1 %v798_v26 }
 0x4e7   :  { %805 = vadd.xlane.f32.xlu1 %v804_v13 }
 0x4f8   :  { %1233 = vrot.lane.b32.xlu1 %v5142_v19, %s4867_s2 }
 0x500   :  { %v761_v22 = vpop.xlane.xlu0 %760 }
 0x501   :  { %v775_v28 = vsub.f32 %v5217_v39, %v761_v22 }
 0x502   :  { %v764_v30 = vpop.xlane.xlu1 %763 }
 0x503   :  { %v787_v31 = vmul.f32 1.442695, %v775_v28  ;;  %v776_v32 = vsub.f32 %v5220_v43, %v764_v30 }
 0x505   :  { %4511 = vpow2.f32 %v787_v31  ;;  %v789_v35 = vmul.f32 1.442695, %v776_v32 }
 0x506   :  { %v922_v33 = vpop.permute.xlu1 %921 }
 0x507   :  { %4221 = vmatpush3.msra.mxu0 %v922_v33  ;;  %4513 = vpow2.f32 %v789_v35 }
 0x508   :  { %v767_v34 = vpop.xlane.xlu0 %766  ;;  %4232 = vmatprep.subr.mxu0 %v4875_v62 }
 0x509   :  { %v777_v40 = vsub.f32 %v5227_v51, %v767_v34 }
 0x50a   :  { %v1000_v42 = vpop.permute.xlu1 %999 }
 0x50b   :  { %v791_v41 = vmul.f32 1.442695, %v777_v40 }
 0x50c   :  { %v844_v36 = vpop.permute.xlu0 %843 }
 0x50d   :  { %4215 = vmatpush3.msra.mxu1 %v844_v36  ;;  %4515 = vpow2.f32 %v791_v41 }
 0x50e   :  { %4226 = vmatprep.subr.mxu1 %v4875_v62 }
 0x50f   :  { %v5261_v19 = vpop.eup %4511 }
 0x510   :  { %v807_v37 = vsel %vm746_vm4, %v5261_v19, 0.0 }
 0x511   :  { %808 = vadd.xlane.f32.xlu0 %v807_v37  ;;  %v5265_v38 = vpop.eup %4513 }
 0x512   :  { %v810_v39 = vsel %vm746_vm4, %v5265_v38, 0.0 }
 0x517   :  { %v5272_v48 = vpop.eup %4515 }
 0x518   :  { %v813_v49 = vsel %vm746_vm4, %v5272_v48, 0.0 }
 0x51c   :  { %811 = vadd.xlane.f32.xlu1 %v810_v39 }
 0x527   :  { %1155 = vrot.lane.b32.xlu0 %v5137_v16, %s4867_s2 }
 0x53b   :  { %v770_v43 = vpop.xlane.xlu1 %769 }
 0x53c   :  { %v778_v44 = vsub.f32 %v741_v12, %v770_v43 }
 0x53d   :  { %v797_v45 = vpop.xlane.xlu0 %796 }
 0x53e   :  { %v793_v46 = vmul.f32 1.442695, %v778_v44  ;;  %4517 = vrcp.f32 %v797_v45 }
 0x53f   :  { %v1078_v57 = vpop.permute.xlu1 %1077 }
 0x540   :  { %4519 = vpow2.f32 %v793_v46 }
 0x541   :  { %v803_v47 = vpop.xlane.xlu0 %802 }
 0x542   :  { %4521 = vrcp.f32 %v803_v47 }
 0x546   :  { %814 = vadd.xlane.f32.xlu0 %v813_v49 }
 0x548   :  { %v4518_v16 = vpop.eup %4517 }
 0x549   :  { %v827_v50 = vmul.f32 %v4518_v16, %v4504_v14 }
 0x54a   :  { %v5276_v51 = vpop.eup %4519 }
 0x54b   :  { %v816_v52 = vsel %vm746_vm4, %v5276_v51, 0.0  ;;  %v835_v53 = vpack.c.bf16 %v827_v50, %v827_v50 }
 0x54c   :  { %v4522_v54 = vpop.eup %4521  ;;  %817 = vadd.xlane.f32.xlu1 %v816_v52 }
 0x54d   :  { %4217 = vmatmul.mubr.msk.bf16.vlgmr.msra.gmra.mrb[16].mxu1 %vm746_vm4, %v835_v53  ;;  %v829_v55 = vmul.f32 %v4522_v54, %v5240_v10 }
 0x54e   :  { %4227 = vmatpush3.msra.mxu1 %v1000_v42  ;;  %4228 = vmatprep.mubr.msk.bf16.mxu1 %vm4876_vm1, %v4875_v62 }
 0x54f   :  { %4238 = vmatprep.subr.mxu1 %v4875_v62  ;;  %v837_v56 = vpack.c.bf16 %v829_v55, %v829_v55 }
 0x555   :  { %4229 = vmatmul.mubr.msk.bf16.vlgmr.msra.gmra.mrb[20].mxu1 %vm746_vm4, %v837_v56 }
 0x556   :  { %4240 = vmatprep.mubr.msk.bf16.mxu1 %vm4876_vm1, %v4875_v62 }
 0x55c   :  { %1311 = vrot.lane.b32.xlu0 %v5150_v25, %s4867_s2 }
 0x55d   :  { %1389 = vrot.lane.b32.xlu1 %v5159_v29, %s4867_s2 }
 0x570   :  { %v800_v58 = vpop.xlane.xlu1 %799 }
 0x571   :  { %4523 = vrcp.f32 %v800_v58 }
 0x574   :  { %v806_v59 = vpop.xlane.xlu1 %805 }
 0x575   :  { %4525 = vrcp.f32 %v806_v59 }
 0x578   :  { %v1234_v7 = vpop.permute.xlu1 %1233 }
 0x57b   :  { %v4524_v60 = vpop.eup %4523 }
 0x57c   :  { %v828_v61 = vmul.f32 %v4524_v60, %v5247_v24 }
 0x57e   :  { %v836_v63 = vpack.c.bf16 %v828_v61, %v828_v61 }
 0x57f   :  { %v4526_v3 = vpop.eup %4525 }
 0x580   :  { %4223 = vmatmul.mubr.msk.bf16.vlgmr.msra.gmra.mrb[20].mxu0 %vm746_vm4, %v836_v63  ;;  %v830_v25 = vmul.f32 %v4526_v3, %v5251_v27 }
 0x581   :  { %4233 = vmatpush3.msra.mxu0 %v1078_v57  ;;  %4234 = vmatprep.mubr.msk.bf16.mxu0 %vm4876_vm1, %v4875_v62 }
 0x582   :  { %4244 = vmatprep.subr.mxu0 %v4875_v62  ;;  %v838_v29 = vpack.c.bf16 %v830_v25, %v830_v25 }
 0x588   :  { %4235 = vmatmul.mubr.msk.bf16.vlgmr.msra.gmra.mrb[24].mxu0 %vm746_vm4, %v838_v29 }
 0x589   :  { %4245 = vmatpush3.msra.mxu0 %v1234_v7  ;;  %4246 = vmatprep.mubr.msk.bf16.mxu0 %vm4876_vm1, %v4875_v62 }
 0x58a   :  { %4256 = vmatprep.subr.mxu0 %v4875_v62 }
 0x59e   :  { %v809_v11 = vpop.xlane.xlu0 %808 }
 0x59f   :  { %4527 = vrcp.f32 %v809_v11 }
 0x5a2   :  { %v1156_v12 = vpop.permute.xlu0 %1155 }
 0x5a3   :  { %4239 = vmatpush3.msra.mxu1 %v1156_v12 }
 0x5a4   :  { %4250 = vmatprep.subr.mxu1 %v4875_v62 }
 0x5a9   :  { %v4528_v14 = vpop.eup %4527  ;;  %v812_v15 = vpop.xlane.xlu1 %811 }
 0x5aa   :  { %v831_v9 = vmul.f32 %v4528_v14, %v5261_v19  ;;  %4529 = vrcp.f32 %v812_v15 }
 0x5ac   :  { %v839_v10 = vpack.c.bf16 %v831_v9, %v831_v9 }
 0x5ae   :  { %4241 = vmatmul.mubr.msk.bf16.vlgmr.msra.gmra.mrb[24].mxu1 %vm746_vm4, %v839_v10 }
 0x5af   :  { %4252 = vmatprep.mubr.msk.bf16.mxu1 %vm4876_vm1, %v4875_v62 }
 0x5b4   :  { %v4530_v6 = vpop.eup %4529 }
 0x5b5   :  { %v832_v8 = vmul.f32 %v4530_v6, %v5265_v38  ;;  %v4480_v38 = vld [vmem:[#allocation9 + $0x18] sm:$0xff]  }
 0x5b7   :  { %v840_v17 = vpack.c.bf16 %v832_v8, %v832_v8 }
 0x5b9   :  { %4247 = vmatmul.mubr.msk.bf16.vlgmr.msra.gmra.mrb[28].mxu0 %vm746_vm4, %v840_v17 }
 0x5ba   :  { %4258 = vmatprep.mubr.msk.bf16.mxu0 %vm4876_vm1, %v4875_v62 }
 0x5d3   :  { %v815_v18 = vpop.xlane.xlu0 %814 }
 0x5d4   :  { %4531 = vrcp.f32 %v815_v18 }
 0x5d7   :  { %v1312_v21 = vpop.permute.xlu0 %1311 }
 0x5d8   :  { %4251 = vmatpush3.msra.mxu1 %v1312_v21 }
 0x5d9   :  { %v818_v23 = vpop.xlane.xlu1 %817  ;;  %4262 = vmatprep.subr.bf16.mxu1 %v4479_v20 }
 0x5da   :  { %4533 = vrcp.f32 %v818_v23 }
 0x5dd   :  { %v1390_v24 = vpop.permute.xlu1 %1389 }
 0x5de   :  { %v4532_v26 = vpop.eup %4531  ;;  %4257 = vmatpush3.msra.mxu0 %v1390_v24 }
 0x5df   :  { %v833_v27 = vmul.f32 %v4532_v26, %v5272_v48  ;;  %4268 = vmatprep.subr.bf16.mxu0 %v4480_v38 }
 0x5e1   :  { %v841_v13 = vpack.c.bf16 %v833_v27, %v833_v27 }
 0x5e3   :  { %4253 = vmatmul.mubr.msk.bf16.vlgmr.msra.gmra.mrb[28].mxu1 %vm746_vm4, %v841_v13 }
 0x5e4   :  { %v4534_v22 = vpop.eup %4533  ;;  %4263 = vmatpush3.bf16.msra.mxu1 %v4479_v20 }
 0x5e5   :  { %v834_v28 = vmul.f32 %v4534_v22, %v5276_v51 }
 0x5e7   :  { %v842_v30 = vpack.c.bf16 %v834_v28, %v834_v28  ;;  %v3987_v28 = vld [vmem:[#allocation11 + $0x4] ss:$0 sm:$0xff] }
 0x5e9   :  { %4259 = vmatmul.mubr.msk.bf16.vlgmr.msra.gmra.mrb[32].mxu0 %vm746_vm4, %v842_v30 }
 0x5ea   :  { %4269 = vmatpush3.bf16.msra.mxu0 %v4480_v38 }
 0x620   :  { %v915_v31 = vpop.f32.mrb[16].mxu1 }
 0x621   :  { %v4218_v32 = vpop.f32.mrb[17].mxu1 }
 0x622   :  { %v918_v33 = vpop.f32.mrb[18].mxu1 }
 0x623   :  { %v4219_v34 = vpop.f32.mrb[19].mxu1 }
 0x628   :  { %v1071_v35 = vpop.f32.mrb[20].mxu1 }
 0x629   :  { %v4230_v36 = vpop.f32.mrb[21].mxu1 }
 0x62a   :  { %v1074_v19 = vpop.f32.mrb[22].mxu1 }
 0x62b   :  { %v4231_v37 = vpop.f32.mrb[23].mxu1 }
 0x653   :  { %v993_v39 = vpop.f32.mrb[20].mxu0 }
 0x654   :  { %v1472_v40 = vpack.c.bf16 %v993_v39, %v915_v31  ;;  %v4224_v41 = vpop.f32.mrb[21].mxu0 }
 0x655   :  { %v996_v42 = vpop.f32.mrb[22].mxu0 }
 0x656   :  { %v4225_v43 = vpop.f32.mrb[23].mxu0  ;;  %4264 = vmatprep.mubr.msk.bf16.mxu1 %vm356_vm2, %v1472_v40 }
 0x65b   :  { %v1149_v44 = vpop.f32.mrb[24].mxu0 }
 0x65c   :  { %v1473_v45 = vpack.c.bf16 %v1149_v44, %v1071_v35  ;;  %v4236_v46 = vpop.f32.mrb[25].mxu0 }
 0x65d   :  { %v1152_v47 = vpop.f32.mrb[26].mxu0 }
 0x65e   :  { %v4237_v48 = vpop.f32.mrb[27].mxu0  ;;  %4265 = vmatmul.mubr.msk.bf16.vlgmr.msra.gmra.mrb[32].mxu1 %vm356_vm2, %v1473_v45 }
 0x681   :  { %v1227_v49 = vpop.f32.mrb[24].mxu1 }
 0x682   :  { %v4242_v16 = vpop.f32.mrb[25].mxu1 }
 0x683   :  { %v1230_v50 = vpop.f32.mrb[26].mxu1 }
 0x684   :  { %v4243_v51 = vpop.f32.mrb[27].mxu1 }
 0x68c   :  { %v1305_v52 = vpop.f32.mrb[28].mxu0 }
 0x68d   :  { %v1474_v53 = vpack.c.bf16 %v1305_v52, %v1227_v49  ;;  %v4248_v54 = vpop.f32.mrb[29].mxu0 }
 0x68e   :  { %v1308_v55 = vpop.f32.mrb[30].mxu0 }
 0x68f   :  { %v4249_v56 = vpop.f32.mrb[31].mxu0  ;;  %4270 = vmatprep.mubr.msk.bf16.mxu0 %vm356_vm2, %v1474_v53 }
 0x6b6   :  { %v1383_v57 = vpop.f32.mrb[28].mxu1 }
 0x6b7   :  { %v4254_v58 = vpop.f32.mrb[29].mxu1 }
 0x6b8   :  { %v1386_v59 = vpop.f32.mrb[30].mxu1  ;;  %v4482_v58 = vld [vmem:[#allocation9 + $0x28] sm:$0xff]  }
 0x6b9   :  { %v4255_v60 = vpop.f32.mrb[31].mxu1 }
 0x6bc   :  { %v1461_v61 = vpop.f32.mrb[32].mxu0 }
 0x6bd   :  { %v1475_v63 = vpack.c.bf16 %v1461_v61, %v1383_v57  ;;  %v4260_v3 = vpop.f32.mrb[33].mxu0  ;;  %v4481_v57 = vld [vmem:[#allocation9 + $0x20] sm:$0xff]  }
 0x6be   :  { %v1464_v25 = vpop.f32.mrb[34].mxu0  ;;  %4274 = vmatprep.subr.bf16.mxu1 %v4481_v57 }
 0x6bf   :  { %v4261_v29 = vpop.f32.mrb[35].mxu0  ;;  %4271 = vmatmul.mubr.msk.bf16.vlgmr.msra.gmra.mrb[36].mxu0 %vm356_vm2, %v1475_v63  ;;  %4275 = vmatpush3.bf16.msra.mxu1 %v4481_v57 }
 0x6c0   :  { %4276 = vmatprep.subr.bf16.mxu1 %v4482_v58 }
 0x6c3   :  { %4277 = vmatpush3.bf16.msra.mxu1 %v4482_v58 }
 0x731   :  { %v4266_v7 = vpop.f32.mrb[32].mxu1 }
 0x732   :  { %v1522_v11 = vpop.f32.mrb[33].mxu1  ;;  %v1604_v9 = vsel %vm153_vm0, %v4266_v7, 0.0 }
 0x733   :  { %v4267_v12 = vpop.f32.mrb[34].mxu1  ;;  %v1598_v8 = vsel %vm153_vm0, %v1522_v11, 0.0 }
 0x734   :  { %v1525_v14 = vpop.f32.mrb[35].mxu1  ;;  %v1607_v21 = vsel %vm153_vm0, %v4267_v12, 0.0 }
 0x735   :  { %v1601_v27 = vsel %vm153_vm0, %v1525_v14, 0.0 }
 0x792   :  { %v4272_v15 = vpop.f32.mrb[36].mxu0 }
 0x793   :  { %v1605_v10 = vsel %vm153_vm0, %v4272_v15, 0.0  ;;  %v1583_v6 = vpop.f32.mrb[37].mxu0 }
 0x794   :  { %v1606_v17 = vadd.f32 %v1605_v10, %v1604_v9  ;;  %v1599_v18 = vsel %vm153_vm0, %v1583_v6, 0.0  ;;  %v4273_v20 = vpop.f32.mrb[38].mxu0  ;;  %v3988_v10 = vld [vmem:[#allocation11 + $0x2] ss:$0 sm:$0xff] }
 0x795   :  { %v1600_v23 = vadd.f32 %v1599_v18, %v1598_v8  ;;  %v1608_v24 = vsel %vm153_vm0, %v4273_v20, 0.0  ;;  %v1586_v26 = vpop.f32.mrb[39].mxu0 }
 0x796   :  { %v1609_v13 = vadd.f32 %v1608_v24, %v1607_v21  ;;  %v1602_v22 = vsel %vm153_vm0, %v1586_v26, 0.0  ;;  %v1612_v30 = vadd.f32 %v1606_v17, %v5079_v1  ;;  %v3989_v21 = vld [vmem:[#allocation11 + $0x3] ss:$0 sm:$0xff] }
 0x797   :  { %v1610_v31 = vadd.f32 %v1600_v23, %v5077_v0  ;;  %v1603_v32 = vadd.f32 %v1602_v22, %v1601_v27 }
 0x798   :  { %v1613_v35 = vadd.f32 %v1609_v13, %v5087_v5  ;;  %v5337_v37 = vadd.f32 %v3987_v28, %v1612_v30 }
 0x799   :  { %v1611_v33 = vadd.f32 %v1603_v32, %v5081_v2  ;;  %v5330_v34 = vadd.f32 %v3987_v28, %v1610_v31 }
 0x79a   :  { %v1631_v0 = vsel %vm153_vm0, %v5337_v37, 0.0  ;;  %v5343_v2 = vadd.f32 %v3987_v28, %v1613_v35 }
 0x79b   :  { %v1625_v36 = vsel %vm153_vm0, %v5330_v34, 0.0  ;;  %v5335_v19 = vadd.f32 %v3987_v28, %v1611_v33 }
 0x79c   :  { %1626 = vadd.xlane.f32.xlu0 %v1625_v36  ;;  %v1634_v5 = vsel %vm153_vm0, %v5343_v2, 0.0  ;;  %v4483_v36 = vld [vmem:[#allocation9 + $0x30] sm:$0xff]  }
 0x79d   :  { %v1628_v1 = vsel %vm153_vm0, %v5335_v19, 0.0  ;;  %4282 = vmatprep.subr.bf16.mxu0 %v4483_v36 }
 0x79e   :  { %1629 = vadd.xlane.f32.xlu1 %v1628_v1  ;;  %4283 = vmatpush3.bf16.xpose.msra.mxu0 %v4483_v36  ;;  %v4484_v1 = vld [vmem:[#allocation9 + $0x38] sm:$0xff]  }
 0x79f   :  { %4284 = vmatprep.subr.bf16.mxu0 %v4484_v1 }
 0x7a0   :  { %1632 = vadd.xlane.f32.xlu0 %v1631_v0  ;;  %v3990_v0 = vld [vmem:[#allocation12 + $0x1] ss:$0 sm:$0xff] }
 0x7a4   :  { %1635 = vadd.xlane.f32.xlu0 %v1634_v5 }
 0x7a6   :  { %4285 = vmatpush3.bf16.xpose.msra.mxu0 %v4484_v1 }
 0x7a7   :  { %4304 = vmatprep.subr.bf16.mxu0 %v4875_v62 }
 0x829   :  { %v1627_v38 = vpop.xlane.xlu0 %1626 }
 0x82a   :  { %v1637_v39 = vmul.f32 0.03125, %v1627_v38 }
 0x82b   :  { %v1630_v40 = vpop.xlane.xlu1 %1629 }
 0x82c   :  { %v1641_v41 = vsub.f32 %v5330_v34, %v1637_v39  ;;  %v1638_v42 = vmul.f32 0.03125, %v1630_v40 }
 0x82d   :  { %v1633_v43 = vpop.xlane.xlu0 %1632 }
 0x82e   :  { %v1642_v44 = vsub.f32 %v5335_v19, %v1638_v42  ;;  %v1639_v45 = vmul.f32 0.03125, %v1633_v43  ;;  %v1645_v46 = vmul.f32 %v1641_v41, %v1641_v41 }
 0x830   :  { %v1643_v47 = vsub.f32 %v5337_v37, %v1639_v45  ;;  %v1649_v48 = vsel %vm153_vm0, %v1645_v46, 0.0  ;;  %v1646_v49 = vmul.f32 %v1642_v44, %v1642_v44 }
 0x831   :  { %1650 = vadd.xlane.f32.xlu0 %v1649_v48  ;;  %v1636_v16 = vpop.xlane.xlu0 %1635 }
 0x832   :  { %v1640_v50 = vmul.f32 0.03125, %v1636_v16  ;;  %v1652_v51 = vsel %vm153_vm0, %v1646_v49, 0.0  ;;  %v1647_v52 = vmul.f32 %v1643_v47, %v1643_v47 }
 0x833   :  { %1653 = vadd.xlane.f32.xlu1 %v1652_v51 }
 0x834   :  { %v1644_v53 = vsub.f32 %v5343_v2, %v1640_v50  ;;  %v1655_v54 = vsel %vm153_vm0, %v1647_v52, 0.0 }
 0x835   :  { %1656 = vadd.xlane.f32.xlu0 %v1655_v54 }
 0x836   :  { %v1648_v55 = vmul.f32 %v1644_v53, %v1644_v53 }
 0x838   :  { %v1658_v56 = vsel %vm153_vm0, %v1648_v55, 0.0 }
 0x839   :  { %1659 = vadd.xlane.f32.xlu1 %v1658_v56 }
 0x8be   :  { %v1651_v59 = vpop.xlane.xlu0 %1650 }
 0x8bf   :  { %v1661_v60 = vmul.f32 0.03125, %v1651_v59 }
 0x8c0   :  { %v1654_v61 = vpop.xlane.xlu1 %1653 }
 0x8c1   :  { %v1665_v63 = vadd.f32 1e-05, %v1661_v60  ;;  %v1662_v3 = vmul.f32 0.03125, %v1654_v61 }
 0x8c2   :  { %v1657_v25 = vpop.xlane.xlu0 %1656 }
 0x8c3   :  { %4535 = vrsqrt.f32 %v1665_v63  ;;  %v1666_v29 = vadd.f32 1e-05, %v1662_v3  ;;  %v1663_v7 = vmul.f32 0.03125, %v1657_v25 }
 0x8c5   :  { %4537 = vrsqrt.f32 %v1666_v29  ;;  %v1667_v11 = vadd.f32 1e-05, %v1663_v7 }
 0x8c6   :  { %v1660_v12 = vpop.xlane.xlu1 %1659 }
 0x8c7   :  { %4539 = vrsqrt.f32 %v1667_v11  ;;  %v1664_v14 = vmul.f32 0.03125, %v1660_v12 }
 0x8c9   :  { %v1668_v15 = vadd.f32 1e-05, %v1664_v14 }
 0x8cb   :  { %4541 = vrsqrt.f32 %v1668_v15 }
 0x8cd   :  { %v4536_v9 = vpop.eup %4535 }
 0x8ce   :  { %v1673_v6 = vmul.f32 %v4536_v9, %v1641_v41  ;;  %v4001_v9 = vld [vmem:[#allocation11 + $0x5] ss:$0 sm:$0xff] }
 0x8cf   :  { %v4538_v8 = vpop.eup %4537 }
 0x8d0   :  { %v1674_v17 = vmul.f32 %v4538_v8, %v1642_v44  ;;  %v1681_v18 = vmul.f32 %v3988_v10, %v1673_v6 }
 0x8d1   :  { %v4540_v20 = vpop.eup %4539 }
 0x8d2   :  { %v1675_v23 = vmul.f32 %v4540_v20, %v1643_v47  ;;  %v1682_v24 = vmul.f32 %v3988_v10, %v1674_v17  ;;  %v1689_v26 = vadd.f32 %v3989_v21, %v1681_v18 }
 0x8d4   :  { %v1690_v27 = vadd.f32 %v3989_v21, %v1682_v24  ;;  %v1683_v22 = vmul.f32 %v3988_v10, %v1675_v23 }
 0x8d5   :  { %v4542_v13 = vpop.eup %4541 }
 0x8d6   :  { %v1676_v28 = vmul.f32 %v4542_v13, %v1644_v53  ;;  %v1698_v30 = vpack.c.bf16 %v1690_v27, %v1689_v26  ;;  %v1691_v32 = vadd.f32 %v3989_v21, %v1683_v22 }
 0x8d8   :  { %v1684_v31 = vmul.f32 %v3988_v10, %v1676_v28  ;;  %4278 = vmatprep.mubr.msk.bf16.mxu1 %vm153_vm0, %v1698_v30 }
 0x8da   :  { %v1692_v33 = vadd.f32 %v3989_v21, %v1684_v31 }
 0x8dc   :  { %v1699_v35 = vpack.c.bf16 %v1692_v33, %v1691_v32 }
 0x8de   :  { %4279 = vmatmul.mubr.msk.bf16.vlgmr.msra.gmra.mrb[36].mxu1 %vm153_vm0, %v1699_v35 }
 0x9b1   :  { %v4280_v5 = vpop.f32.mrb[36].mxu1 }
 0x9b2   :  { %v1766_v38 = vadd.f32 %v4280_v5, %v3990_v0  ;;  %v1757_v39 = vpop.f32.mrb[37].mxu1 }
 0x9b3   :  { %v1758_v40 = vadd.f32 %v3990_v0, %v1757_v39  ;;  %v4281_v41 = vpop.f32.mrb[38].mxu1 }
 0x9b4   :  { %v3997_v42 = vmul.f32 -1.702, %v1766_v38  ;;  %v1769_v43 = vadd.f32 %v4281_v41, %v3990_v0  ;;  %v1760_v44 = vpop.f32.mrb[39].mxu1 }
 0x9b5   :  { %v3995_v45 = vmul.f32 -1.702, %v1758_v40  ;;  %v1761_v46 = vadd.f32 %v3990_v0, %v1760_v44 }
 0x9b6   :  { %v1784_v47 = vmul.f32 1.442695, %v3997_v42  ;;  %v3998_v48 = vmul.f32 -1.702, %v1769_v43 }
 0x9b7   :  { %v1780_v49 = vmul.f32 1.442695, %v3995_v45  ;;  %v3996_v16 = vmul.f32 -1.702, %v1761_v46 }
 0x9b8   :  { %4543 = vpow2.f32 %v1784_v47  ;;  %v1786_v50 = vmul.f32 1.442695, %v3998_v48  ;;  %v4486_v47 = vld [vmem:[#allocation9 + $0x48] sm:$0xff]  }
 0x9b9   :  { %4545 = vpow2.f32 %v1780_v49  ;;  %v1782_v51 = vmul.f32 1.442695, %v3996_v16 }
 0x9ba   :  { %4547 = vpow2.f32 %v1786_v50 }
 0x9bb   :  { %4549 = vpow2.f32 %v1782_v51 }
 0x9c2   :  { %v4544_v52 = vpop.eup %4543 }
 0x9c3   :  { %v4546_v53 = vpop.eup %4545  ;;  %v1790_v54 = vadd.f32 1.0, %v4544_v52 }
 0x9c4   :  { %v4548_v55 = vpop.eup %4547  ;;  %v1788_v56 = vadd.f32 1.0, %v4546_v53 }
 0x9c5   :  { %v4550_v57 = vpop.eup %4549  ;;  %4551 = vrcp.f32 %v1790_v54  ;;  %v1791_v58 = vadd.f32 1.0, %v4548_v55 }
 0x9c6   :  { %4553 = vrcp.f32 %v1788_v56  ;;  %v1789_v59 = vadd.f32 1.0, %v4550_v57 }
 0x9c7   :  { %4555 = vrcp.f32 %v1791_v58 }
 0x9c8   :  { %4557 = vrcp.f32 %v1789_v59 }
 0x9cf   :  { %v4552_v60 = vpop.eup %4551 }
 0x9d0   :  { %v4554_v61 = vpop.eup %4553  ;;  %v1802_v25 = vmul.f32 %v4552_v60, %v1766_v38  ;;  %v4002_v60 = vld [vmem:[#allocation11 + $0x6] ss:$0 sm:$0xff] }
 0x9d1   :  { %v4556_v63 = vpop.eup %4555  ;;  %v1800_v7 = vmul.f32 %v4554_v61, %v1758_v40 }
 0x9d2   :  { %v4558_v3 = vpop.eup %4557  ;;  %v1803_v29 = vmul.f32 %v4556_v63, %v1769_v43 }
 0x9d3   :  { %v1801_v11 = vmul.f32 %v4558_v3, %v1761_v46  ;;  %v4485_v46 = vld [vmem:[#allocation9 + $0x40] sm:$0xff]  }
 0x9d4   :  { %v1810_v12 = vpack.c.bf16 %v1803_v29, %v1802_v25  ;;  %4290 = vmatprep.subr.bf16.mxu1 %v4485_v46 }
 0x9d5   :  { %v1809_v14 = vpack.c.bf16 %v1801_v11, %v1800_v7  ;;  %4291 = vmatpush3.bf16.msra.mxu1 %v4485_v46  ;;  %v4003_v7 = vld [vmem:[#allocation11 + $0x7] ss:$0 sm:$0xff] }
 0x9d6   :  { %4292 = vmatprep.subr.bf16.mxu1 %v4486_v47 }
 0x9d7   :  { %4286 = vmatprep.mubr.bf16.mxu0 %v1809_v14 }
 0x9d8   :  { %4287 = vmatmul.mubr.bf16.vlgmr.msra.gmra.mrb[40].mxu0 %v1810_v12 }
 0x9d9   :  { %4306 = vmatprep.mubr.msk.bf16.mxu0 %vm4876_vm1, %v4875_v62  ;;  %4293 = vmatpush3.bf16.msra.mxu1 %v4486_v47 }
 0x9da   :  { %4298 = vmatprep.subr.bf16.mxu1 %v4875_v62 }
 0xaab   :  { %v4288_v15 = vpop.f32.mrb[40].mxu0 }
 0xaac   :  { %v1857_v10 = vpop.f32.mrb[41].mxu0  ;;  %v1874_v6 = vadd.f32 %v4288_v15, %v5337_v37 }
 0xaad   :  { %v1872_v8 = vadd.f32 %v1857_v10, %v5330_v34  ;;  %v4289_v17 = vpop.f32.mrb[42].mxu0 }
 0xaae   :  { %v1860_v18 = vpop.f32.mrb[43].mxu0  ;;  %v1875_v21 = vadd.f32 %v4289_v17, %v5343_v2  ;;  %v5366_v24 = vadd.f32 %v4001_v9, %v1874_v6 }
 0xaaf   :  { %v5362_v20 = vadd.f32 %v4001_v9, %v1872_v8  ;;  %v1873_v23 = vadd.f32 %v1860_v18, %v5335_v19 }
 0xab0   :  { %v5372_v13 = vadd.f32 %v4001_v9, %v1875_v21  ;;  %v1893_v37 = vsel %vm153_vm0, %v5366_v24, 0.0 }
 0xab1   :  { %v5368_v26 = vadd.f32 %v4001_v9, %v1873_v23  ;;  %v1887_v27 = vsel %vm153_vm0, %v5362_v20, 0.0 }
 0xab2   :  { %1888 = vadd.xlane.f32.xlu0 %v1887_v27  ;;  %v1896_v19 = vsel %vm153_vm0, %v5372_v13, 0.0  ;;  %v4004_v27 = vld [vmem:[#allocation12 + $0x2] ss:$0 sm:$0xff] }
 0xab3   :  { %v1890_v34 = vsel %vm153_vm0, %v5368_v26, 0.0 }
 0xab4   :  { %1891 = vadd.xlane.f32.xlu1 %v1890_v34 }
 0xab6   :  { %1894 = vadd.xlane.f32.xlu0 %v1893_v37 }
 0xab8   :  { %1897 = vadd.xlane.f32.xlu1 %v1896_v19 }
 0xb3f   :  { %v1889_v2 = vpop.xlane.xlu0 %1888 }
 0xb40   :  { %v1899_v22 = vmul.f32 0.03125, %v1889_v2 }
 0xb41   :  { %v1892_v28 = vpop.xlane.xlu1 %1891 }
 0xb42   :  { %v1903_v30 = vsub.f32 %v5362_v20, %v1899_v22  ;;  %v1900_v31 = vmul.f32 0.03125, %v1892_v28 }
 0xb43   :  { %v1895_v32 = vpop.xlane.xlu0 %1894 }
 0xb44   :  { %v1904_v33 = vsub.f32 %v5368_v26, %v1900_v31  ;;  %v1901_v35 = vmul.f32 0.03125, %v1895_v32  ;;  %v1907_v36 = vmul.f32 %v1903_v30, %v1903_v30 }
 0xb45   :  { %v1898_v1 = vpop.xlane.xlu1 %1897 }
 0xb46   :  { %v1905_v0 = vsub.f32 %v5366_v24, %v1901_v35  ;;  %v1902_v5 = vmul.f32 0.03125, %v1898_v1  ;;  %v1911_v38 = vsel %vm153_vm0, %v1907_v36, 0.0  ;;  %v1908_v39 = vmul.f32 %v1904_v33, %v1904_v33 }
 0xb47   :  { %1912 = vadd.xlane.f32.xlu0 %v1911_v38 }
 0xb48   :  { %v1906_v40 = vsub.f32 %v5372_v13, %v1902_v5  ;;  %v1914_v41 = vsel %vm153_vm0, %v1908_v39, 0.0  ;;  %v1909_v42 = vmul.f32 %v1905_v0, %v1905_v0 }
 0xb49   :  { %1915 = vadd.xlane.f32.xlu1 %v1914_v41 }
 0xb4a   :  { %v1917_v43 = vsel %vm153_vm0, %v1909_v42, 0.0  ;;  %v1910_v44 = vmul.f32 %v1906_v40, %v1906_v40 }
 0xb4b   :  { %1918 = vadd.xlane.f32.xlu0 %v1917_v43 }
 0xb4c   :  { %v1920_v45 = vsel %vm153_vm0, %v1910_v44, 0.0 }
 0xb4d   :  { %1921 = vadd.xlane.f32.xlu1 %v1920_v45 }
 0xbd4   :  { %v1913_v48 = vpop.xlane.xlu0 %1912 }
 0xbd5   :  { %v1923_v49 = vmul.f32 0.03125, %v1913_v48 }
 0xbd6   :  { %v1916_v16 = vpop.xlane.xlu1 %1915 }
 0xbd7   :  { %v1927_v50 = vadd.f32 1e-05, %v1923_v49  ;;  %v1924_v51 = vmul.f32 0.03125, %v1916_v16 }
 0xbd8   :  { %v1919_v52 = vpop.xlane.xlu0 %1918 }
 0xbd9   :  { %4559 = vrsqrt.f32 %v1927_v50  ;;  %v1928_v53 = vadd.f32 1e-05, %v1924_v51  ;;  %v1925_v54 = vmul.f32 0.03125, %v1919_v52 }
 0xbda   :  { %v1922_v55 = vpop.xlane.xlu1 %1921 }
 0xbdb   :  { %4561 = vrsqrt.f32 %v1928_v53  ;;  %v1929_v56 = vadd.f32 1e-05, %v1925_v54  ;;  %v1926_v57 = vmul.f32 0.03125, %v1922_v55 }
 0xbdd   :  { %4563 = vrsqrt.f32 %v1929_v56  ;;  %v1930_v58 = vadd.f32 1e-05, %v1926_v57 }
 0xbdf   :  { %4565 = vrsqrt.f32 %v1930_v58 }
 0xbe3   :  { %v4560_v59 = vpop.eup %4559 }
 0xbe4   :  { %v1935_v61 = vmul.f32 %v4560_v59, %v1903_v30 }
 0xbe5   :  { %v4562_v63 = vpop.eup %4561 }
 0xbe6   :  { %v1936_v3 = vmul.f32 %v4562_v63, %v1904_v33  ;;  %v1943_v25 = vmul.f32 %v4002_v60, %v1935_v61 }
 0xbe7   :  { %v4564_v29 = vpop.eup %4563 }
 0xbe8   :  { %v1937_v11 = vmul.f32 %v4564_v29, %v1905_v0  ;;  %v1944_v12 = vmul.f32 %v4002_v60, %v1936_v3  ;;  %v1951_v10 = vadd.f32 %v4003_v7, %v1943_v25 }
 0xbe9   :  { %v4566_v14 = vpop.eup %4565 }
 0xbea   :  { %v1945_v15 = vmul.f32 %v4002_v60, %v1937_v11  ;;  %v1938_v9 = vmul.f32 %v4566_v14, %v1906_v40  ;;  %v1952_v6 = vadd.f32 %v4003_v7, %v1944_v12 }
 0xbec   :  { %v1946_v8 = vmul.f32 %v4002_v60, %v1938_v9  ;;  %v1960_v17 = vpack.c.bf16 %v1952_v6, %v1951_v10  ;;  %v1953_v18 = vadd.f32 %v4003_v7, %v1945_v15 }
 0xbee   :  { %4294 = vmatprep.mubr.msk.bf16.mxu1 %vm153_vm0, %v1960_v17  ;;  %v1954_v21 = vadd.f32 %v4003_v7, %v1946_v8 }
 0xbf0   :  { %v1961_v23 = vpack.c.bf16 %v1954_v21, %v1953_v18 }
 0xbf2   :  { %4295 = vmatmul.mubr.msk.bf16.vlgmr.msra.gmra.mrb[40].mxu1 %vm153_vm0, %v1961_v23 }
 0xbf3   :  { %4300 = vmatprep.mubr.msk.bf16.mxu1 %vm4876_vm1, %v4875_v62 }
 0xcc5   :  { %v4296_v34 = vpop.f32.mrb[40].mxu1 }
 0xcc6   :  { %v2019_v37 = vpop.f32.mrb[41].mxu1  ;;  %v5399_v30 = vadd.f32 %v4296_v34, %v4004_v27 }
 0xcc7   :  { %v5393_v19 = vadd.f32 %v4004_v27, %v2019_v37  ;;  %v4297_v2 = vpop.f32.mrb[42].mxu1 }
 0xcc8   :  { %v2022_v22 = vpop.f32.mrb[43].mxu1  ;;  %v2080_v32 = vpack.c.bf16 %v5399_v30, %v5399_v30  ;;  %v5410_v33 = vadd.f32 %v4297_v2, %v4004_v27  ;;  %v2036_v47 = vmul.f32 0.25, %v5399_v30 }
 0xcc9   :  { %v5395_v28 = vadd.f32 %v4004_v27, %v2022_v22  ;;  %2058 = vrot.lane.b32.xlu0 %v5393_v19, %s4877_s8  ;;  %v2078_v31 = vpack.c.bf16 %v5393_v19, %v5393_v19  ;;  %v2034_v40 = vmul.f32 0.25, %v5393_v19 }
 0xcca   :  { %v2081_v36 = vpack.c.bf16 %v5410_v33, %v5410_v33  ;;  %v2037_v46 = vmul.f32 0.25, %v5410_v33  ;;  %v2072_v55 = vpack.c.bf16 %v2036_v47, %v2036_v47 }
 0xccb   :  { %2060 = vrot.lane.b32.xlu1 %v5395_v28, %s4877_s8  ;;  %v2079_v35 = vpack.c.bf16 %v5395_v28, %v5395_v28  ;;  %v2035_v5 = vmul.f32 0.25, %v5395_v28  ;;  %v2070_v51 = vpack.c.bf16 %v2034_v40, %v2034_v40 }
 0xccc   :  { %v4470_v50 = vpack.i.bf16 %v2037_v46, %v2036_v47  ;;  %v2073_v59 = vpack.c.bf16 %v2037_v46, %v2037_v46 }
 0xccd   :  { %2087 = vrot.lane.b32.xlu0 %v2078_v31, %s4878_s14  ;;  %v4465_v43 = vpack.i.bf16 %v2035_v5, %v2034_v40  ;;  %v2071_v57 = vpack.c.bf16 %v2035_v5, %v2035_v5 }
 0xccf   :  { %2062 = vrot.lane.b32.xlu1 %v5399_v30, %s4877_s8 }
 0xcd1   :  { %2185 = vrot.lane.b32.xlu0 %v2080_v32, %s4878_s14 }
 0xcd3   :  { %2064 = vrot.lane.b32.xlu1 %v5410_v33, %s4877_s8 }
 0xcd7   :  { %2136 = vrot.lane.b32.xlu1 %v2079_v35, %s4878_s14 }
 0xcdb   :  { %2234 = vrot.lane.b32.xlu1 %v2081_v36, %s4878_s14 }
 0xd3b   :  { %v5421_v1 = vpop.permute.xlu0 %2058 }
 0xd3c   :  { %v2082_v0 = vpack.c.bf16 %v5421_v1, %v5421_v1 }
 0xd3d   :  { %v5426_v38 = vpop.permute.xlu1 %2060 }
 0xd3e   :  { %v2083_v39 = vpack.c.bf16 %v5426_v38, %v5426_v38  ;;  %2283 = vrot.lane.b32.xlu0 %v2082_v0, %s4878_s14 }
 0xd3f   :  { %v2088_v41 = vpop.permute.xlu0 %2087 }
 0xd40   :  { %v2093_v42 = vsel %vm356_vm2, %v2088_v41, 0  ;;  %2332 = vrot.lane.b32.xlu1 %v2083_v39, %s4878_s14 }
 0xd41   :  { %v5434_v44 = vpop.permute.xlu1 %2062  ;;  %4299 = vmatpush3.bf16.xpose.msra.mxu1 %v2093_v42 }
 0xd42   :  { %v2084_v45 = vpack.c.bf16 %v5434_v44, %v5434_v44  ;;  %4466 = vrot.lane.b32.xlu0 %v4465_v43, %s4877_s8  ;;  %4310 = vmatprep.subr.bf16.mxu1 %v4875_v62 }
 0xd43   :  { %v2186_v49 = vpop.permute.xlu0 %2185 }
 0xd44   :  { %2381 = vrot.lane.b32.xlu1 %v2084_v45, %s4878_s14  ;;  %v2191_v52 = vsel %vm356_vm2, %v2186_v49, 0 }
 0xd45   :  { %v5443_v48 = vpop.permute.xlu1 %2064 }
 0xd46   :  { %v2085_v16 = vpack.c.bf16 %v5443_v48, %v5443_v48 }
 0xd48   :  { %4471 = vrot.lane.b32.xlu1 %v4470_v50, %s4877_s8  ;;  %2430 = vrot.lane.b32.xlu0 %v2085_v16, %s4878_s14 }
 0xd49   :  { %4301 = vmatmul.mubr.msk.bf16.vlgmr.msra.gmra.mrb[44].mxu1 %vm356_vm2, %v2070_v51  ;;  %v2137_v53 = vpop.permute.xlu1 %2136 }
 0xd4a   :  { %v2142_v54 = vsel %vm356_vm2, %v2137_v53, 0  ;;  %4311 = vmatpush3.bf16.xpose.msra.mxu1 %v2191_v52  ;;  %4312 = vmatprep.mubr.msk.bf16.mxu1 %vm4876_vm1, %v4875_v62 }
 0xd4b   :  { %4305 = vmatpush3.bf16.xpose.msra.mxu0 %v2142_v54  ;;  %4322 = vmatprep.subr.bf16.mxu1 %v4875_v62 }
 0xd4c   :  { %4316 = vmatprep.subr.bf16.mxu0 %v4875_v62 }
 0xd4d   :  { %v2235_v56 = vpop.permute.xlu1 %2234 }
 0xd4e   :  { %v2240_v58 = vsel %vm356_vm2, %v2235_v56, 0 }
 0xd51   :  { %4313 = vmatmul.mubr.msk.bf16.vlgmr.msra.gmra.mrb[48].mxu1 %vm356_vm2, %v2072_v55 }
 0xd52   :  { %4307 = vmatmul.mubr.msk.bf16.vlgmr.msra.gmra.mrb[44].mxu0 %vm356_vm2, %v2071_v57  ;;  %4324 = vmatprep.mubr.msk.bf16.mxu1 %vm4876_vm1, %v4875_v62 }
 0xd53   :  { %4317 = vmatpush3.bf16.xpose.msra.mxu0 %v2240_v58  ;;  %4318 = vmatprep.mubr.msk.bf16.mxu0 %vm4876_vm1, %v4875_v62 }
 0xd54   :  { %4328 = vmatprep.subr.bf16.mxu0 %v4875_v62 }
 0xd5a   :  { %4319 = vmatmul.mubr.msk.bf16.vlgmr.msra.gmra.mrb[48].mxu0 %vm356_vm2, %v2073_v59 }
 0xd5b   :  { %4330 = vmatprep.mubr.msk.bf16.mxu0 %vm4876_vm1, %v4875_v62 }
 0xdb0   :  { %v2284_v60 = vpop.permute.xlu0 %2283 }
 0xdb1   :  { %v2289_v61 = vsel %vm356_vm2, %v2284_v60, 0 }
 0xdb2   :  { %v2333_v63 = vpop.permute.xlu1 %2332  ;;  %4323 = vmatpush3.bf16.xpose.msra.mxu1 %v2289_v61 }
 0xdb3   :  { %v2338_v3 = vsel %vm356_vm2, %v2333_v63, 0  ;;  %4334 = vmatprep.subr.bf16.mxu1 %v4875_v62 }
 0xdb4   :  { %4329 = vmatpush3.bf16.xpose.msra.mxu0 %v2338_v3  ;;  %v4467_v25 = vpop.permute.xlu0 %4466 }
 0xdb5   :  { %v4469_v29 = vunpack.i.h.bf16 %v4467_v25  ;;  %v4468_v7 = vunpack.i.l.bf16 %v4467_v25  ;;  %4340 = vmatprep.subr.bf16.mxu0 %v4875_v62 }
 0xdb6   :  { %v2382_v11 = vpop.permute.xlu1 %2381 }
 0xdb7   :  { %v2074_v12 = vpack.c.bf16 %v4468_v7, %v4468_v7  ;;  %v2075_v14 = vpack.c.bf16 %v4469_v29, %v4469_v29  ;;  %v2387_v15 = vsel %vm356_vm2, %v2382_v11, 0 }
 0xdb9   :  { %4325 = vmatmul.mubr.msk.bf16.vlgmr.msra.gmra.mrb[52].mxu1 %vm356_vm2, %v2074_v12 }
 0xdba   :  { %v4472_v9 = vpop.permute.xlu1 %4471  ;;  %v2431_v10 = vpop.permute.xlu0 %2430  ;;  %4335 = vmatpush3.bf16.xpose.msra.mxu1 %v2387_v15  ;;  %4336 = vmatprep.mubr.msk.bf16.mxu1 %vm4876_vm1, %v4875_v62 }
 0xdbb   :  { %v4473_v6 = vunpack.i.l.bf16 %v4472_v9  ;;  %v2436_v8 = vsel %vm356_vm2, %v2431_v10, 0  ;;  %4331 = vmatmul.mubr.msk.bf16.vlgmr.msra.gmra.mrb[52].mxu0 %vm356_vm2, %v2075_v14  ;;  %4346 = vmatprep.subr.mxu1 %v4875_v62  ;;  %v4474_v17 = vunpack.i.h.bf16 %v4472_v9 }
 0xdbc   :  { %4341 = vmatpush3.bf16.xpose.msra.mxu0 %v2436_v8  ;;  %4342 = vmatprep.mubr.msk.bf16.mxu0 %vm4876_vm1, %v4875_v62 }
 0xdbd   :  { %4352 = vmatprep.subr.mxu0 %v4875_v62  ;;  %v2076_v18 = vpack.c.bf16 %v4473_v6, %v4473_v6  ;;  %v2077_v21 = vpack.c.bf16 %v4474_v17, %v4474_v17 }
 0xdc1   :  { %4337 = vmatmul.mubr.msk.bf16.vlgmr.msra.gmra.mrb[56].mxu1 %vm356_vm2, %v2076_v18 }
 0xdc2   :  { %4348 = vmatprep.mubr.msk.bf16.mxu1 %vm4876_vm1, %v4875_v62 }
 0xdc3   :  { %4343 = vmatmul.mubr.msk.bf16.vlgmr.msra.gmra.mrb[56].mxu0 %vm356_vm2, %v2077_v21 }
 0xdc4   :  { %4354 = vmatprep.mubr.msk.bf16.mxu0 %vm4876_vm1, %v4875_v62 }
 0xe1c   :  { %v2129_v23 = vpop.f32.mrb[44].mxu1 }
 0xe1d   :  { %v2130_v27 = vadd.f32 %v2129_v23, %v5203_v4  ;;  %v4302_v34 = vpop.f32.mrb[45].mxu1 }
 0xe1e   :  { %v2132_v37 = vpop.f32.mrb[46].mxu1 }
 0xe1f   :  { %v4303_v2 = vpop.f32.mrb[47].mxu1  ;;  %v2478_v22 = vsel %vm746_vm4, %v2130_v27, -inf }
 0xe20   :  { %2479 = vmax.xlane.f32.xlu0 %v2478_v22 }
 0xe24   :  { %v2227_v31 = vpop.f32.mrb[48].mxu1 }
 0xe25   :  { %v2228_v32 = vadd.f32 %v2227_v31, %v5203_v4  ;;  %v4314_v35 = vpop.f32.mrb[49].mxu1  ;;  %v2178_v36 = vpop.f32.mrb[44].mxu0 }
 0xe26   :  { %v5491_v0 = vadd.f32 %v2178_v36, %v5203_v4  ;;  %v2230_v5 = vpop.f32.mrb[50].mxu1  ;;  %v4308_v39 = vpop.f32.mrb[45].mxu0 }
 0xe27   :  { %v4315_v40 = vpop.f32.mrb[51].mxu1  ;;  %v2181_v41 = vpop.f32.mrb[46].mxu0  ;;  %v2484_v42 = vsel %vm746_vm4, %v2228_v32, -inf }
 0xe28   :  { %2485 = vmax.xlane.f32.xlu0 %v2484_v42  ;;  %v4309_v43 = vpop.f32.mrb[47].mxu0  ;;  %v2481_v45 = vsel %vm746_vm4, %v5491_v0, -inf }
 0xe29   :  { %2482 = vmax.xlane.f32.xlu1 %v2481_v45 }
 0xe2d   :  { %v2276_v46 = vpop.f32.mrb[48].mxu0 }
 0xe2e   :  { %v2277_v47 = vadd.f32 %v2276_v46, %v5203_v4  ;;  %v4320_v49 = vpop.f32.mrb[49].mxu0 }
 0xe2f   :  { %v2279_v16 = vpop.f32.mrb[50].mxu0 }
 0xe30   :  { %v4321_v50 = vpop.f32.mrb[51].mxu0  ;;  %v2487_v51 = vsel %vm746_vm4, %v2277_v47, -inf }
 0xe31   :  { %2488 = vmax.xlane.f32.xlu0 %v2487_v51 }
 0xe8c   :  { %v2325_v52 = vpop.f32.mrb[52].mxu1 }
 0xe8d   :  { %v5499_v53 = vadd.f32 %v2325_v52, %v5203_v4  ;;  %v4326_v54 = vpop.f32.mrb[53].mxu1 }
 0xe8e   :  { %v2328_v55 = vpop.f32.mrb[54].mxu1  ;;  %v2374_v56 = vpop.f32.mrb[52].mxu0 }
 0xe8f   :  { %v5502_v57 = vadd.f32 %v2374_v56, %v5203_v4  ;;  %v4327_v58 = vpop.f32.mrb[55].mxu1  ;;  %v4332_v59 = vpop.f32.mrb[53].mxu0  ;;  %v2490_v60 = vsel %vm746_vm4, %v5499_v53, -inf }
 0xe90   :  { %v2377_v61 = vpop.f32.mrb[54].mxu0  ;;  %2491 = vmax.xlane.f32.xlu0 %v2490_v60 }
 0xe91   :  { %v4333_v63 = vpop.f32.mrb[55].mxu0  ;;  %v2493_v3 = vsel %vm746_vm4, %v5502_v57, -inf }
 0xe92   :  { %2494 = vmax.xlane.f32.xlu1 %v2493_v3 }
 0xe94   :  { %v2423_v25 = vpop.f32.mrb[56].mxu1 }
 0xe95   :  { %v5509_v29 = vadd.f32 %v2423_v25, %v5203_v4  ;;  %v4338_v7 = vpop.f32.mrb[57].mxu1 }
 0xe96   :  { %v2426_v11 = vpop.f32.mrb[58].mxu1  ;;  %v2472_v12 = vpop.f32.mrb[56].mxu0 }
 0xe97   :  { %v4339_v14 = vpop.f32.mrb[59].mxu1  ;;  %v4344_v15 = vpop.f32.mrb[57].mxu0  ;;  %v2496_v9 = vsel %vm746_vm4, %v5509_v29, -inf  ;;  %v2473_v37 = vadd.f32 %v2472_v12, %v5203_v4 }
 0xe98   :  { %v2475_v10 = vpop.f32.mrb[58].mxu0  ;;  %2497 = vmax.xlane.f32.xlu0 %v2496_v9 }
 0xe99   :  { %v4345_v6 = vpop.f32.mrb[59].mxu0  ;;  %v2499_v22 = vsel %vm746_vm4, %v2473_v37, -inf }
 0xea3   :  { %2652 = vrot.lane.b32.xlu1 %v5395_v28, %s4867_s2 }
 0xea7   :  { %2730 = vrot.lane.b32.xlu1 %v5399_v30, %s4867_s2 }
 0xead   :  { %v2480_v8 = vpop.xlane.xlu0 %2479 }
 0xeae   :  { %2574 = vrot.lane.b32.xlu0 %v5393_v19, %s4867_s2  ;;  %v2502_v17 = vsub.f32 %v2130_v27, %v2480_v8 }
 0xeb0   :  { %v2510_v21 = vmul.f32 1.442695, %v2502_v17 }
 0xeb2   :  { %4567 = vpow2.f32 %v2510_v21 }
 0xeb5   :  { %v2486_v18 = vpop.xlane.xlu0 %2485 }
 0xeb6   :  { %v2504_v23 = vsub.f32 %v2228_v32, %v2486_v18  ;;  %v2483_v27 = vpop.xlane.xlu1 %2482 }
 0xeb7   :  { %v2503_v31 = vsub.f32 %v5491_v0, %v2483_v27 }
 0xeb8   :  { %v2514_v34 = vmul.f32 1.442695, %v2504_v23 }
 0xeb9   :  { %v2512_v32 = vmul.f32 1.442695, %v2503_v31 }
 0xeba   :  { %4569 = vpow2.f32 %v2514_v34 }
 0xebb   :  { %4571 = vpow2.f32 %v2512_v32 }
 0xebc   :  { %v4568_v2 = vpop.eup %4567 }
 0xebd   :  { %v2526_v28 = vsel %vm746_vm4, %v4568_v2, 0.0 }
 0xebe   :  { %v2489_v4 = vpop.xlane.xlu0 %2488 }
 0xebf   :  { %v2505_v35 = vsub.f32 %v2277_v47, %v2489_v4  ;;  %v4487_v4 = vld [vmem:[#allocation9 + $0x50] sm:$0xff]  }
 0xec1   :  { %v2516_v36 = vmul.f32 1.442695, %v2505_v35 }
 0xec3   :  { %4573 = vpow2.f32 %v2516_v36 }
 0xec4   :  { %v5522_v30 = vpop.eup %4569 }
 0xec5   :  { %v2532_v19 = vsel %vm746_vm4, %v5522_v30, 0.0  ;;  %v5529_v5 = vpop.eup %4571 }
 0xec6   :  { %v2529_v39 = vsel %vm746_vm4, %v5529_v5, 0.0 }
 0xecb   :  { %2500 = vmax.xlane.f32.xlu1 %v2499_v22 }
 0xecd   :  { %2527 = vadd.xlane.f32.xlu0 %v2526_v28  ;;  %v5533_v40 = vpop.eup %4573 }
 0xed1   :  { %2533 = vadd.xlane.f32.xlu0 %v2532_v19 }
 0xedc   :  { %2808 = vrot.lane.b32.xlu1 %v5410_v33, %s4867_s2  ;;  %v2535_v33 = vsel %vm746_vm4, %v5533_v40, 0.0 }
 0xf00   :  { %2530 = vadd.xlane.f32.xlu1 %v2529_v39 }
 0xf04   :  { %2536 = vadd.xlane.f32.xlu1 %v2535_v33 }
 0xf15   :  { %2964 = vrot.lane.b32.xlu1 %v5426_v38, %s4867_s2 }
 0xf1d   :  { %v2492_v0 = vpop.xlane.xlu0 %2491 }
 0xf1e   :  { %v2506_v41 = vsub.f32 %v5499_v53, %v2492_v0 }
 0xf1f   :  { %v2495_v42 = vpop.xlane.xlu1 %2494 }
 0xf20   :  { %v2518_v43 = vmul.f32 1.442695, %v2506_v41  ;;  %v2507_v45 = vsub.f32 %v5502_v57, %v2495_v42 }
 0xf22   :  { %4575 = vpow2.f32 %v2518_v43  ;;  %v2520_v49 = vmul.f32 1.442695, %v2507_v45 }
 0xf23   :  { %v2653_v46 = vpop.permute.xlu1 %2652 }
 0xf24   :  { %4353 = vmatpush3.msra.mxu0 %v2653_v46  ;;  %4577 = vpow2.f32 %v2520_v49 }
 0xf25   :  { %v2498_v47 = vpop.xlane.xlu0 %2497  ;;  %4364 = vmatprep.subr.mxu0 %v4875_v62 }
 0xf26   :  { %v2508_v53 = vsub.f32 %v5509_v29, %v2498_v47 }
 0xf27   :  { %v2731_v55 = vpop.permute.xlu1 %2730 }
 0xf28   :  { %v2522_v54 = vmul.f32 1.442695, %v2508_v53 }
 0xf29   :  { %v2575_v16 = vpop.permute.xlu0 %2574 }
 0xf2a   :  { %4347 = vmatpush3.msra.mxu1 %v2575_v16  ;;  %4579 = vpow2.f32 %v2522_v54 }
 0xf2b   :  { %4358 = vmatprep.subr.mxu1 %v4875_v62 }
 0xf2c   :  { %v5543_v38 = vpop.eup %4575 }
 0xf2d   :  { %v2538_v50 = vsel %vm746_vm4, %v5543_v38, 0.0 }
 0xf2e   :  { %2539 = vadd.xlane.f32.xlu0 %v2538_v50  ;;  %v5547_v51 = vpop.eup %4577  ;;  %v4488_v50 = vld [vmem:[#allocation9 + $0x58] sm:$0xff]  }
 0xf2f   :  { %v2541_v52 = vsel %vm746_vm4, %v5547_v51, 0.0 }
 0xf34   :  { %v5554_v61 = vpop.eup %4579 }
 0xf35   :  { %v2544_v63 = vsel %vm746_vm4, %v5554_v61, 0.0 }
 0xf39   :  { %2542 = vadd.xlane.f32.xlu1 %v2541_v52 }
 0xf44   :  { %2886 = vrot.lane.b32.xlu0 %v5421_v1, %s4867_s2 }
 0xf58   :  { %v2501_v56 = vpop.xlane.xlu1 %2500 }
 0xf59   :  { %v2509_v57 = vsub.f32 %v2473_v37, %v2501_v56 }
 0xf5a   :  { %v2528_v58 = vpop.xlane.xlu0 %2527 }
 0xf5b   :  { %v2524_v59 = vmul.f32 1.442695, %v2509_v57  ;;  %4581 = vrcp.f32 %v2528_v58 }
 0xf5c   :  { %v2809_v15 = vpop.permute.xlu1 %2808 }
 0xf5d   :  { %4583 = vpow2.f32 %v2524_v59 }
 0xf5e   :  { %v2534_v60 = vpop.xlane.xlu0 %2533 }
 0xf5f   :  { %4585 = vrcp.f32 %v2534_v60 }
 0xf63   :  { %2545 = vadd.xlane.f32.xlu0 %v2544_v63 }
 0xf65   :  { %v4582_v1 = vpop.eup %4581 }
 0xf66   :  { %v2558_v3 = vmul.f32 %v4582_v1, %v4568_v2 }
 0xf67   :  { %v5558_v25 = vpop.eup %4583 }
 0xf68   :  { %v2547_v29 = vsel %vm746_vm4, %v5558_v25, 0.0  ;;  %v2566_v7 = vpack.c.bf16 %v2558_v3, %v2558_v3 }
 0xf69   :  { %v4586_v11 = vpop.eup %4585  ;;  %2548 = vadd.xlane.f32.xlu1 %v2547_v29 }
 0xf6a   :  { %4349 = vmatmul.mubr.msk.bf16.vlgmr.msra.gmra.mrb[60].mxu1 %vm746_vm4, %v2566_v7  ;;  %v2560_v12 = vmul.f32 %v4586_v11, %v5522_v30 }
 0xf6b   :  { %4359 = vmatpush3.msra.mxu1 %v2731_v55  ;;  %4360 = vmatprep.mubr.msk.bf16.mxu1 %vm4876_vm1, %v4875_v62 }
 0xf6c   :  { %4370 = vmatprep.subr.mxu1 %v4875_v62  ;;  %v2568_v14 = vpack.c.bf16 %v2560_v12, %v2560_v12 }
 0xf72   :  { %4361 = vmatmul.mubr.msk.bf16.vlgmr.msra.gmra.mrb[64].mxu1 %vm746_vm4, %v2568_v14 }
 0xf73   :  { %4372 = vmatprep.mubr.msk.bf16.mxu1 %vm4876_vm1, %v4875_v62 }
 0xf79   :  { %3042 = vrot.lane.b32.xlu0 %v5434_v44, %s4867_s2 }
 0xf7a   :  { %3120 = vrot.lane.b32.xlu1 %v5443_v48, %s4867_s2  ;;  %s4881_s2 = smov [#allocation18]  }
 0xf7b   :  { %s3941_s30 = sshll.u32 %s4881_s2, 4  ;;  %s3942_s30 = int_to_ptr.vmem [resolvable:$true] %s3941_s30 }
 0xf7c   :  { %s4805_s13 = scalar_lea.vmem %s3942_s30, 64  ;;  %p4810_p9 = scmp.lt.s32.totalorder %s3942_s30, %s3942_s30 }
 0xf7d   :  { %p4806_p8 = scmp.ne.s32.totalorder %s3942_s30, %s4805_s13  ;;  %p4811_p10 = scmp.lt.s32.totalorder %s4805_s13, %s4805_s13 }
 0xf7f   :  { %p4812_p11 = por %p4811_p10, %p4810_p9 }
 0xf81   :  { %p4813_p12 = pnand %p4812_p11, %p4806_p8 }
 0xf8d   :  { %v2531_v9 = vpop.xlane.xlu1 %2530 }
 0xf8e   :  { %4587 = vrcp.f32 %v2531_v9 }
 0xf91   :  { %v2537_v10 = vpop.xlane.xlu1 %2536 }
 0xf92   :  { %4589 = vrcp.f32 %v2537_v10 }
 0xf95   :  { %v2965_v21 = vpop.permute.xlu1 %2964 }
 0xf98   :  { %v4588_v6 = vpop.eup %4587 }
 0xf99   :  { %v2559_v8 = vmul.f32 %v4588_v6, %v5529_v5 }
 0xf9b   :  { %v2567_v17 = vpack.c.bf16 %v2559_v8, %v2559_v8 }
 0xf9c   :  { %v4590_v18 = vpop.eup %4589 }
 0xf9d   :  { %4355 = vmatmul.mubr.msk.bf16.vlgmr.msra.gmra.mrb[60].mxu0 %vm746_vm4, %v2567_v17  ;;  %v2561_v44 = vmul.f32 %v4590_v18, %v5533_v40 }
 0xf9e   :  { %4365 = vmatpush3.msra.mxu0 %v2809_v15  ;;  %4366 = vmatprep.mubr.msk.bf16.mxu0 %vm4876_vm1, %v4875_v62 }
 0xf9f   :  { %4376 = vmatprep.subr.mxu0 %v4875_v62  ;;  %v2569_v48 = vpack.c.bf16 %v2561_v44, %v2561_v44 }
 0xfa5   :  { %4367 = vmatmul.mubr.msk.bf16.vlgmr.msra.gmra.mrb[64].mxu0 %vm746_vm4, %v2569_v48 }
 0xfa6   :  { %4377 = vmatpush3.msra.mxu0 %v2965_v21  ;;  %4378 = vmatprep.mubr.msk.bf16.mxu0 %vm4876_vm1, %v4875_v62 }
 0xfa7   :  { %4388 = vmatprep.subr.mxu0 %v4875_v62 }
 0xfbb   :  { %v2540_v23 = vpop.xlane.xlu0 %2539 }
 0xfbc   :  { %4591 = vrcp.f32 %v2540_v23 }
 0xfbf   :  { %v2887_v34 = vpop.permute.xlu0 %2886 }
 0xfc0   :  { %4371 = vmatpush3.msra.mxu1 %v2887_v34 }
 0xfc1   :  { %4382 = vmatprep.subr.mxu1 %v4875_v62 }
 0xfc6   :  { %v4592_v37 = vpop.eup %4591  ;;  %v2543_v2 = vpop.xlane.xlu1 %2542 }
 0xfc7   :  { %v2562_v22 = vmul.f32 %v4592_v37, %v5543_v38  ;;  %4593 = vrcp.f32 %v2543_v2 }
 0xfc9   :  { %v2570_v28 = vpack.c.bf16 %v2562_v22, %v2562_v22 }
 0xfcb   :  { %4373 = vmatmul.mubr.msk.bf16.vlgmr.msra.gmra.mrb[68].mxu1 %vm746_vm4, %v2570_v28 }
 0xfcc   :  { %4384 = vmatprep.mubr.msk.bf16.mxu1 %vm4876_vm1, %v4875_v62 }
 0xfd1   :  { %v4594_v30 = vpop.eup %4593 }
 0xfd2   :  { %v2563_v19 = vmul.f32 %v4594_v30, %v5547_v51 }
 0xfd4   :  { %v2571_v27 = vpack.c.bf16 %v2563_v19, %v2563_v19 }
 0xfd6   :  { %4379 = vmatmul.mubr.msk.bf16.vlgmr.msra.gmra.mrb[68].mxu0 %vm746_vm4, %v2571_v27 }
 0xfd7   :  { %4390 = vmatprep.mubr.msk.bf16.mxu0 %vm4876_vm1, %v4875_v62 }
 0xff0   :  { %v2546_v31 = vpop.xlane.xlu0 %2545 }
 0xff1   :  { %4595 = vrcp.f32 %v2546_v31 }
 0xff4   :  { %v3043_v32 = vpop.permute.xlu0 %3042 }
 0xff5   :  { %4383 = vmatpush3.msra.mxu1 %v3043_v32 }
 0xff6   :  { %v2549_v35 = vpop.xlane.xlu1 %2548  ;;  %4394 = vmatprep.subr.bf16.mxu1 %v4487_v4 }
 0xff7   :  { %4597 = vrcp.f32 %v2549_v35 }
 0xffa   :  { %v3121_v36 = vpop.permute.xlu1 %3120 }
 0xffb   :  { %v4596_v5 = vpop.eup %4595  ;;  %4389 = vmatpush3.msra.mxu0 %v3121_v36 }
 0xffc   :  { %v2564_v39 = vmul.f32 %v4596_v5, %v5554_v61  ;;  %4400 = vmatprep.subr.bf16.mxu0 %v4488_v50 }
 0xffe   :  { %v2572_v40 = vpack.c.bf16 %v2564_v39, %v2564_v39  ;;  %v4031_v39 = vld [vmem:[#allocation11 + $0xa] ss:$0 sm:$0xff] }
0x1000   :  { %4385 = vmatmul.mubr.msk.bf16.vlgmr.msra.gmra.mrb[72].mxu1 %vm746_vm4, %v2572_v40 }
0x1001   :  { %v4598_v33 = vpop.eup %4597  ;;  %4395 = vmatpush3.bf16.msra.mxu1 %v4487_v4 }
0x1002   :  { %v2565_v0 = vmul.f32 %v4598_v33, %v5558_v25 }
0x1004   :  { %v2573_v41 = vpack.c.bf16 %v2565_v0, %v2565_v0 }
0x1006   :  { %4391 = vmatmul.mubr.msk.bf16.vlgmr.msra.gmra.mrb[72].mxu0 %vm746_vm4, %v2573_v41 }
0x1007   :  { %4401 = vmatpush3.bf16.msra.mxu0 %v4488_v50 }
0x103d   :  { %v2646_v42 = vpop.f32.mrb[60].mxu1 }
0x103e   :  { %v4350_v43 = vpop.f32.mrb[61].mxu1 }
0x103f   :  { %v2649_v45 = vpop.f32.mrb[62].mxu1 }
0x1040   :  { %v4351_v46 = vpop.f32.mrb[63].mxu1 }
0x1045   :  { %v2802_v47 = vpop.f32.mrb[64].mxu1 }
0x1046   :  { %v4362_v49 = vpop.f32.mrb[65].mxu1 }
0x1047   :  { %v2805_v16 = vpop.f32.mrb[66].mxu1 }
0x1048   :  { %v4363_v38 = vpop.f32.mrb[67].mxu1 }
0x1070   :  { %v2724_v51 = vpop.f32.mrb[60].mxu0 }
0x1071   :  { %v3203_v52 = vpack.c.bf16 %v2724_v51, %v2646_v42  ;;  %v4356_v53 = vpop.f32.mrb[61].mxu0 }
0x1072   :  { %v2727_v54 = vpop.f32.mrb[62].mxu0 }
0x1073   :  { %v4357_v55 = vpop.f32.mrb[63].mxu0  ;;  %4396 = vmatprep.mubr.msk.bf16.mxu1 %vm356_vm2, %v3203_v52 }
0x1078   :  { %v2880_v56 = vpop.f32.mrb[64].mxu0 }
0x1079   :  { %v3204_v57 = vpack.c.bf16 %v2880_v56, %v2802_v47  ;;  %v4368_v58 = vpop.f32.mrb[65].mxu0 }
0x107a   :  { %v2883_v59 = vpop.f32.mrb[66].mxu0 }
0x107b   :  { %v4369_v60 = vpop.f32.mrb[67].mxu0  ;;  %4397 = vmatmul.mubr.msk.bf16.vlgmr.msra.gmra.mrb[76].mxu1 %vm356_vm2, %v3204_v57 }
0x109e   :  { %v2958_v61 = vpop.f32.mrb[68].mxu1 }
0x109f   :  { %v4374_v63 = vpop.f32.mrb[69].mxu1 }
0x10a0   :  { %v2961_v1 = vpop.f32.mrb[70].mxu1 }
0x10a1   :  { %v4375_v3 = vpop.f32.mrb[71].mxu1 }
0x10a9   :  { %v3036_v25 = vpop.f32.mrb[68].mxu0 }
0x10aa   :  { %v3205_v29 = vpack.c.bf16 %v3036_v25, %v2958_v61  ;;  %v4380_v7 = vpop.f32.mrb[69].mxu0 }
0x10ab   :  { %v3039_v11 = vpop.f32.mrb[70].mxu0 }
0x10ac   :  { %v4381_v12 = vpop.f32.mrb[71].mxu0  ;;  %4402 = vmatprep.mubr.msk.bf16.mxu0 %vm356_vm2, %v3205_v29 }
0x10ad   :  { %v4489_v12 = vld [vmem:[#allocation9 + $0x60] sm:$0xff]  }
0x10ae   :  { %4406 = vmatprep.subr.bf16.mxu1 %v4489_v12 }
0x10af   :  { %4407 = vmatpush3.bf16.msra.mxu1 %v4489_v12 }
0x10d3   :  { %v3114_v14 = vpop.f32.mrb[72].mxu1 }
0x10d4   :  { %v4386_v15 = vpop.f32.mrb[73].mxu1 }
0x10d5   :  { %v3117_v9 = vpop.f32.mrb[74].mxu1 }
0x10d6   :  { %v4387_v10 = vpop.f32.mrb[75].mxu1 }
0x10d9   :  { %v3192_v6 = vpop.f32.mrb[72].mxu0 }
0x10da   :  { %v3206_v8 = vpack.c.bf16 %v3192_v6, %v3114_v14  ;;  %v4392_v17 = vpop.f32.mrb[73].mxu0  ;;  %v4490_v14 = vld [vmem:[#allocation9 + $0x68] sm:$0xff]  }
0x10db   :  { %v3195_v18 = vpop.f32.mrb[74].mxu0  ;;  %4408 = vmatprep.subr.bf16.mxu1 %v4490_v14 }
0x10dc   :  { %v4393_v44 = vpop.f32.mrb[75].mxu0  ;;  %4403 = vmatmul.mubr.msk.bf16.vlgmr.msra.gmra.mrb[76].mxu0 %vm356_vm2, %v3206_v8  ;;  %4409 = vmatpush3.bf16.msra.mxu1 %v4490_v14 }
0x10dd   :  { %4422 = vmatprep.subr.bf16.mxu1 %v4875_v62 }
0x114e   :  { %v4398_v48 = vpop.f32.mrb[76].mxu1 }
0x114f   :  { %v3253_v21 = vpop.f32.mrb[77].mxu1  ;;  %v3335_v2 = vsel %vm153_vm0, %v4398_v48, 0.0 }
0x1150   :  { %v4399_v23 = vpop.f32.mrb[78].mxu1  ;;  %v3329_v30 = vsel %vm153_vm0, %v3253_v21, 0.0 }
0x1151   :  { %v3256_v34 = vpop.f32.mrb[79].mxu1  ;;  %v3338_v4 = vsel %vm153_vm0, %v4399_v23, 0.0 }
0x1152   :  { %v3332_v5 = vsel %vm153_vm0, %v3256_v34, 0.0 }
0x11af   :  { %v4404_v37 = vpop.f32.mrb[76].mxu0 }
0x11b0   :  { %v3336_v22 = vsel %vm153_vm0, %v4404_v37, 0.0  ;;  %v3314_v28 = vpop.f32.mrb[77].mxu0 }
0x11b1   :  { %v3337_v19 = vadd.f32 %v3336_v22, %v3335_v2  ;;  %v3330_v27 = vsel %vm153_vm0, %v3314_v28, 0.0  ;;  %v4405_v31 = vpop.f32.mrb[78].mxu0  ;;  %v4032_v2 = vld [vmem:[#allocation11 + $0x8] ss:$0 sm:$0xff] }
0x11b2   :  { %v3331_v32 = vadd.f32 %v3330_v27, %v3329_v30  ;;  %v3339_v35 = vsel %vm153_vm0, %v4405_v31, 0.0  ;;  %v3317_v36 = vpop.f32.mrb[79].mxu0  ;;  %v4033_v31 = vld [vmem:[#allocation11 + $0x9] ss:$0 sm:$0xff] }
0x11b3   :  { %v3340_v40 = vadd.f32 %v3339_v35, %v3338_v4  ;;  %v3333_v33 = vsel %vm153_vm0, %v3317_v36, 0.0  ;;  %v3343_v0 = vadd.f32 %v3337_v19, %v5366_v24 }
0x11b4   :  { %v3341_v41 = vadd.f32 %v3331_v32, %v5362_v20  ;;  %v3334_v42 = vadd.f32 %v3333_v33, %v3332_v5 }
0x11b5   :  { %v5614_v46 = vadd.f32 %v4031_v39, %v3343_v0  ;;  %v3344_v47 = vadd.f32 %v3340_v40, %v5372_v13 }
0x11b6   :  { %v5611_v43 = vadd.f32 %v4031_v39, %v3341_v41  ;;  %v3342_v45 = vadd.f32 %v3334_v42, %v5368_v26 }
0x11b7   :  { %v5623_v20 = vadd.f32 %v4031_v39, %v3344_v47  ;;  %v3362_v38 = vsel %vm153_vm0, %v5614_v46, 0.0  ;;  %v4491_v47 = vld [vmem:[#allocation9 + $0x70] sm:$0xff]  }
0x11b8   :  { %v5617_v49 = vadd.f32 %v4031_v39, %v3342_v45  ;;  %v3356_v16 = vsel %vm153_vm0, %v5611_v43, 0.0  ;;  %4414 = vmatprep.subr.bf16.mxu0 %v4491_v47 }
0x11b9   :  { %3357 = vadd.xlane.f32.xlu0 %v3356_v16  ;;  %v3365_v26 = vsel %vm153_vm0, %v5623_v20, 0.0  ;;  %4415 = vmatpush3.bf16.xpose.msra.mxu0 %v4491_v47  ;;  %v4492_v16 = vld [vmem:[#allocation9 + $0x78] sm:$0xff]  }
0x11ba   :  { %v3359_v24 = vsel %vm153_vm0, %v5617_v49, 0.0  ;;  %4416 = vmatprep.subr.bf16.mxu0 %v4492_v16 }
0x11bb   :  { %3360 = vadd.xlane.f32.xlu1 %v3359_v24  ;;  %v3617_v24 = vld [vmem:[#allocation6 + $0x8] sm:$0xff] }
0x11bd   :  { %3363 = vadd.xlane.f32.xlu0 %v3362_v38  ;;  %v4880_v38 = vmov 0  }
0x11be   :  { %4476 = vset.pattern.permute.xlu1 %v4880_v38  ;;  %4475 = vset.pattern.permute.xlu0 %v4880_v38 }
0x11c1   :  { %3366 = vadd.xlane.f32.xlu0 %v3365_v26  ;;  %4417 = vmatpush3.bf16.xpose.msra.mxu0 %v4492_v16  ;;  %v3616_v26 = vld [vmem:[#allocation6] sm:$0xff] }
0x1246   :  { %v3358_v13 = vpop.xlane.xlu0 %3357 }
0x1247   :  { %v3368_v50 = vmul.f32 0.03125, %v3358_v13  ;;  %v3618_v13 = vld [vmem:[#allocation6 + $0x10] sm:$0xff] }
0x1248   :  { %v3361_v51 = vpop.xlane.xlu1 %3360 }
0x1249   :  { %v3372_v52 = vsub.f32 %v5611_v43, %v3368_v50  ;;  %v3369_v53 = vmul.f32 0.03125, %v3361_v51  ;;  %v3619_v50 = vld [vmem:[#allocation6 + $0x18] sm:$0xff]  ;;  %v4034_v51 = vld [vmem:[#allocation12 + $0x3] ss:$0 sm:$0xff] }
0x124a   :  { %v3364_v54 = vpop.xlane.xlu0 %3363 }
0x124b   :  { %v3373_v55 = vsub.f32 %v5617_v49, %v3369_v53  ;;  %v3370_v56 = vmul.f32 0.03125, %v3364_v54  ;;  %v3376_v57 = vmul.f32 %v3372_v52, %v3372_v52 }
0x124d   :  { %v3374_v58 = vsub.f32 %v5614_v46, %v3370_v56  ;;  %v3380_v59 = vsel %vm153_vm0, %v3376_v57, 0.0  ;;  %v3377_v60 = vmul.f32 %v3373_v55, %v3373_v55 }
0x124e   :  { %3381 = vadd.xlane.f32.xlu0 %v3380_v59  ;;  %v3367_v61 = vpop.xlane.xlu0 %3366 }
0x124f   :  { %v3371_v63 = vmul.f32 0.03125, %v3367_v61  ;;  %v3383_v1 = vsel %vm153_vm0, %v3377_v60, 0.0  ;;  %v3378_v3 = vmul.f32 %v3374_v58, %v3374_v58 }
0x1250   :  { %3384 = vadd.xlane.f32.xlu1 %v3383_v1 }
0x1251   :  { %v3375_v25 = vsub.f32 %v5623_v20, %v3371_v63  ;;  %v3386_v29 = vsel %vm153_vm0, %v3378_v3, 0.0 }
0x1252   :  { %3387 = vadd.xlane.f32.xlu0 %v3386_v29 }
0x1253   :  { %v3379_v7 = vmul.f32 %v3375_v25, %v3375_v25 }
0x1255   :  { %v3389_v11 = vsel %vm153_vm0, %v3379_v7, 0.0 }
0x1256   :  { %3390 = vadd.xlane.f32.xlu1 %v3389_v11 }
0x1267   :  { %3627 = vperm.xlu1 %4476, %v3617_v24  }
0x1268   :  { %3622 = vperm.xlu0 %4475, %v3616_v26  }
0x126b   :  { %3632 = vperm.xlu1 %4476, %v3618_v13  }
0x126f   :  { %3637 = vperm.xlu1 %4476, %v3619_v50  }
0x12db   :  { %v3382_v15 = vpop.xlane.xlu0 %3381 }
0x12dc   :  { %v3392_v9 = vmul.f32 0.03125, %v3382_v15 }
0x12dd   :  { %v3385_v10 = vpop.xlane.xlu1 %3384 }
0x12de   :  { %v3396_v6 = vadd.f32 1e-05, %v3392_v9  ;;  %v3393_v8 = vmul.f32 0.03125, %v3385_v10 }
0x12df   :  { %v3388_v17 = vpop.xlane.xlu0 %3387 }
0x12e0   :  { %4599 = vrsqrt.f32 %v3396_v6  ;;  %v3397_v18 = vadd.f32 1e-05, %v3393_v8  ;;  %v3394_v44 = vmul.f32 0.03125, %v3388_v17 }
0x12e2   :  { %4601 = vrsqrt.f32 %v3397_v18  ;;  %v3398_v48 = vadd.f32 1e-05, %v3394_v44 }
0x12e3   :  { %v3391_v21 = vpop.xlane.xlu1 %3390 }
0x12e4   :  { %4603 = vrsqrt.f32 %v3398_v48  ;;  %v3395_v23 = vmul.f32 0.03125, %v3391_v21 }
0x12e6   :  { %v3399_v34 = vadd.f32 1e-05, %v3395_v23 }
0x12e8   :  { %4605 = vrsqrt.f32 %v3399_v34 }
0x12ea   :  { %v4600_v37 = vpop.eup %4599 }
0x12eb   :  { %v3404_v22 = vmul.f32 %v4600_v37, %v3372_v52 }
0x12ec   :  { %v4602_v28 = vpop.eup %4601 }
0x12ed   :  { %v3405_v30 = vmul.f32 %v4602_v28, %v3373_v55  ;;  %v3412_v19 = vmul.f32 %v4032_v2, %v3404_v22  ;;  %v3628_v28 = vpop.permute.xlu1 %3627 }
0x12ee   :  { %v4604_v27 = vpop.eup %4603 }
0x12ef   :  { %v3406_v4 = vmul.f32 %v4604_v27, %v3374_v58  ;;  %v3413_v32 = vmul.f32 %v4032_v2, %v3405_v30  ;;  %v3420_v35 = vadd.f32 %v4033_v31, %v3412_v19  ;;  %v4045_v27 = vld [vmem:[#allocation11 + $0xb] ss:$0 sm:$0xff] }
0x12f1   :  { %v3421_v36 = vadd.f32 %v4033_v31, %v3413_v32  ;;  %v3414_v39 = vmul.f32 %v4032_v2, %v3406_v4  ;;  %v3633_v30 = vpop.permute.xlu1 %3632 }
0x12f2   :  { %v4606_v5 = vpop.eup %4605 }
0x12f3   :  { %v3407_v40 = vmul.f32 %v4606_v5, %v3375_v25  ;;  %v3429_v33 = vpack.c.bf16 %v3421_v36, %v3420_v35  ;;  %v3422_v41 = vadd.f32 %v4033_v31, %v3414_v39 }
0x12f5   :  { %v3415_v0 = vmul.f32 %v4032_v2, %v3407_v40  ;;  %4410 = vmatprep.mubr.msk.bf16.mxu1 %vm153_vm0, %v3429_v33  ;;  %v3623_v40 = vpop.permute.xlu0 %3622 }
0x12f7   :  { %v3423_v42 = vadd.f32 %v4033_v31, %v3415_v0 }
0x12f9   :  { %v3430_v45 = vpack.c.bf16 %v3423_v42, %v3422_v41 }
0x12fb   :  { %4411 = vmatmul.mubr.msk.bf16.vlgmr.msra.gmra.mrb[80].mxu1 %vm153_vm0, %v3430_v45  ;;  %v3638_v45 = vpop.permute.xlu1 %3637 }
0x12fc   :  { %4426 = vmatprep.mubr.msk.bf16.mxu1 %vm4876_vm1, %v4875_v62 }
0x13ce   :  { %v4412_v52 = vpop.f32.mrb[80].mxu1 }
0x13cf   :  { %v3497_v53 = vadd.f32 %v4412_v52, %v4034_v51  ;;  %v3488_v54 = vpop.f32.mrb[81].mxu1 }
0x13d0   :  { %v3489_v55 = vadd.f32 %v4034_v51, %v3488_v54  ;;  %v4413_v56 = vpop.f32.mrb[82].mxu1 }
0x13d1   :  { %v4041_v57 = vmul.f32 -1.702, %v3497_v53  ;;  %v3500_v58 = vadd.f32 %v4413_v56, %v4034_v51  ;;  %v3491_v59 = vpop.f32.mrb[83].mxu1 }
0x13d2   :  { %v4039_v60 = vmul.f32 -1.702, %v3489_v55  ;;  %v3492_v61 = vadd.f32 %v4034_v51, %v3491_v59 }
0x13d3   :  { %v3515_v63 = vmul.f32 1.442695, %v4041_v57  ;;  %v4042_v1 = vmul.f32 -1.702, %v3500_v58 }
0x13d4   :  { %v3511_v3 = vmul.f32 1.442695, %v4039_v60  ;;  %v4040_v25 = vmul.f32 -1.702, %v3492_v61 }
0x13d5   :  { %4607 = vpow2.f32 %v3515_v63  ;;  %v3517_v29 = vmul.f32 1.442695, %v4042_v1 }
0x13d6   :  { %4609 = vpow2.f32 %v3511_v3  ;;  %v3513_v7 = vmul.f32 1.442695, %v4040_v25 }
0x13d7   :  { %4611 = vpow2.f32 %v3517_v29 }
0x13d8   :  { %4613 = vpow2.f32 %v3513_v7 }
0x13df   :  { %v4608_v11 = vpop.eup %4607 }
0x13e0   :  { %v4610_v12 = vpop.eup %4609  ;;  %v3521_v14 = vadd.f32 1.0, %v4608_v11 }
0x13e1   :  { %v4612_v15 = vpop.eup %4611  ;;  %v3519_v9 = vadd.f32 1.0, %v4610_v12 }
0x13e2   :  { %v4614_v10 = vpop.eup %4613  ;;  %4615 = vrcp.f32 %v3521_v14  ;;  %v3522_v6 = vadd.f32 1.0, %v4612_v15 }
0x13e3   :  { %4617 = vrcp.f32 %v3519_v9  ;;  %v3520_v8 = vadd.f32 1.0, %v4614_v10 }
0x13e4   :  { %4619 = vrcp.f32 %v3522_v6 }
0x13e5   :  { %4621 = vrcp.f32 %v3520_v8 }
0x13ec   :  { %v4616_v17 = vpop.eup %4615 }
0x13ed   :  { %v4618_v18 = vpop.eup %4617  ;;  %v3533_v21 = vmul.f32 %v4616_v17, %v3497_v53 }
0x13ee   :  { %v4620_v44 = vpop.eup %4619  ;;  %v3531_v34 = vmul.f32 %v4618_v18, %v3489_v55 }
0x13ef   :  { %v4622_v48 = vpop.eup %4621  ;;  %v3534_v23 = vmul.f32 %v4620_v44, %v3500_v58 }
0x13f0   :  { %v3532_v37 = vmul.f32 %v4622_v48, %v3492_v61 }
0x13f1   :  { %v3541_v2 = vpack.c.bf16 %v3534_v23, %v3533_v21 }
0x13f2   :  { %v3540_v22 = vpack.c.bf16 %v3532_v37, %v3531_v34 }
0x13f4   :  { %4418 = vmatprep.mubr.bf16.mxu0 %v3540_v22 }
0x13f5   :  { %4419 = vmatmul.mubr.bf16.vlgmr.msra.gmra.mrb[80].mxu0 %v3541_v2 }
0x14c8   :  { %v4420_v19 = vpop.f32.mrb[80].mxu0 }
0x14c9   :  { %v3605_v31 = vadd.f32 %v4420_v19, %v5614_v46  ;;  %v3588_v4 = vpop.f32.mrb[81].mxu0 }
0x14ca   :  { %v3603_v32 = vadd.f32 %v3588_v4, %v5611_v43  ;;  %v4421_v35 = vpop.f32.mrb[82].mxu0 }
0x14cb   :  { %v3614_v36 = vadd.f32 %v4045_v27, %v3605_v31  ;;  %v3606_v5 = vadd.f32 %v4421_v35, %v5623_v20  ;;  %v3591_v39 = vpop.f32.mrb[83].mxu0 }
0x14cc   :  { %v3604_v33 = vadd.f32 %v3591_v39, %v5617_v49  ;;  %v3612_v0 = vadd.f32 %v4045_v27, %v3603_v32  ;;  %v4493_v39 = vld [vmem:[#allocation15] sm:$0xff]  }
0x14cd   :  { %v3642_v41 = vmul.f32 %v3633_v30, %v3614_v36  ;;  %v3615_v42 = vadd.f32 %v4045_v27, %v3606_v5  ;;  %4423 = vmatpush3.bf16.msra.mxu1 %v4493_v39 }
0x14ce   :  { %v3613_v47 = vadd.f32 %v4045_v27, %v3604_v33  ;;  %v3640_v16 = vmul.f32 %v3623_v40, %v3612_v0  ;;  %v4494_v40 = vld [vmem:[#allocation15 + $0x8] sm:$0xff]   ;;  %4424 = vmatprep.subr.bf16.mxu1 %v4875_v62 }
0x14cf   :  { %v3658_v24 = vsel %vm153_vm0, %v3642_v41, 0.0  ;;  %v3643_v46 = vmul.f32 %v3638_v45, %v3615_v42  ;;  %v4046_v45 = vld [vmem:[#allocation14] ss:$0 sm:$0xff] }
0x14d0   :  { %v3659_v38 = vrot.slane %v3658_v24, 4  ;;  %v3641_v26 = vmul.f32 %v3628_v28, %v3613_v47  ;;  %v3644_v43 = vsel %vm153_vm0, %v3640_v16, 0.0 }
0x14d1   :  { %v3665_v13 = vsel %vm153_vm0, %v3643_v46, 0.0  ;;  %v3645_v20 = vrot.slane %v3644_v43, 4  ;;  %4425 = vmatpush3.bf16.msra.mxu1 %v4494_v40 }
0x14d2   :  { %v3660_v50 = vadd.f32 %v3659_v38, %v3658_v24  ;;  %v3666_v51 = vrot.slane %v3665_v13, 4  ;;  %v3651_v49 = vsel %vm153_vm0, %v3641_v26, 0.0  ;;  %4430 = vmatprep.subr.mxu1 %v4875_v62  ;;  %v4047_v38 = vld [vmem:[#allocation14 + $0x1] ss:$0 sm:$0xff] }
0x14d3   :  { %v3652_v52 = vrot.slane %v3651_v49, 4  ;;  %v3646_v53 = vadd.f32 %v3645_v20, %v3644_v43 }
0x14d4   :  { %v3661_v54 = vrot.slane %v3660_v50, 2  ;;  %v3667_v55 = vadd.f32 %v3666_v51, %v3665_v13 }
0x14d5   :  { %v3653_v56 = vadd.f32 %v3652_v52, %v3651_v49  ;;  %v3647_v57 = vrot.slane %v3646_v53, 2 }
0x14d6   :  { %v3662_v58 = vadd.f32 %v3661_v54, %v3660_v50  ;;  %v3668_v59 = vrot.slane %v3667_v55, 2 }
0x14d7   :  { %v3654_v60 = vrot.slane %v3653_v56, 2  ;;  %v3648_v61 = vadd.f32 %v3647_v57, %v3646_v53 }
0x14d8   :  { %v3669_v63 = vadd.f32 %v3668_v59, %v3667_v55  ;;  %v3663_v25 = vrot.slane %v3662_v58, 1 }
0x14d9   :  { %v3655_v1 = vadd.f32 %v3654_v60, %v3653_v56  ;;  %v3649_v3 = vrot.slane %v3648_v61, 1 }
0x14da   :  { %v3670_v7 = vrot.slane %v3669_v63, 1  ;;  %v3664_v14 = vadd.f32 %v3663_v25, %v3662_v58 }
0x14db   :  { %v3656_v29 = vrot.slane %v3655_v1, 1  ;;  %v3650_v12 = vadd.f32 %v3649_v3, %v3648_v61 }
0x14dc   :  { %v3671_v15 = vadd.f32 %v3670_v7, %v3669_v63 }
0x14dd   :  { %v3657_v11 = vadd.f32 %v3656_v29, %v3655_v1 }
0x14df   :  { %v3679_v9 = vsel %vm3678_vm5, %v3657_v11, %v3650_v12 }
0x14e0   :  { %v3681_v10 = vsel %vm3680_vm6, %v3664_v14, %v3679_v9 }
0x14e1   :  { %v3683_v6 = vsel %vm3682_vm7, %v3671_v15, %v3681_v10 }
0x14e2   :  { %v3686_v8 = vsel %vm3685_vm8, %v3683_v6, 0.0 }
0x14e3   :  { %3687 = vadd.xlane.f32.xlu1 %v3686_v8 }
0x1570   :  { %v3688_v17 = vpop.xlane.xlu1 %3687 }
0x1571   :  { %v3689_v18 = vmul.f32 0.03125, %v3688_v17 }
0x1573   :  { %v3691_v44 = vrot.slane %v3689_v18, 1  ;;  %v3692_v48 = vrot.slane %v3689_v18, 2  ;;  %v3693_v21 = vrot.slane %v3689_v18, 3  ;;  %v3698_v23 = vsub.f32 %v3650_v12, %v3689_v18 }
0x1575   :  { %v3699_v34 = vsub.f32 %v3657_v11, %v3691_v44  ;;  %v3700_v37 = vsub.f32 %v3664_v14, %v3692_v48  ;;  %v3701_v2 = vsub.f32 %v3671_v15, %v3693_v21  ;;  %v3702_v19 = vmul.f32 %v3698_v23, %v3698_v23  ;;  %v3829_v15 = vld [vmem:[#allocation8] sm:$0x3] }
0x1576   :  { %v3836_v8 = vmul.f32 %v3829_v15, %v3829_v15 }
0x1577   :  { %v3703_v22 = vmul.f32 %v3699_v34, %v3699_v34  ;;  %v3704_v28 = vmul.f32 %v3700_v37, %v3700_v37  ;;  %v3705_v30 = vmul.f32 %v3701_v2, %v3701_v2 }
0x1578   :  { %v3838_v48 = vsel %vm3837_vm9, %v3836_v8, 0.0 }
0x1579   :  { %v3710_v27 = vrot.slane %v3703_v22, 7  ;;  %v3712_v31 = vrot.slane %v3704_v28, 6  ;;  %v3714_v32 = vrot.slane %v3705_v30, 5 }
0x157b   :  { %v3711_v4 = vsel %vm3678_vm5, %v3710_v27, %v3702_v19 }
0x157c   :  { %v3713_v35 = vsel %vm3680_vm6, %v3712_v31, %v3711_v4 }
0x157d   :  { %v3715_v36 = vsel %vm3682_vm7, %v3714_v32, %v3713_v35 }
0x157e   :  { %v3717_v5 = vsel %vm3685_vm8, %v3715_v36, 0.0 }
0x157f   :  { %3718 = vadd.xlane.f32.xlu0 %v3717_v5 }
0x160c   :  { %v3719_v33 = vpop.xlane.xlu0 %3718 }
0x160d   :  { %v3720_v0 = vmul.f32 0.03125, %v3719_v33 }
0x160f   :  { %v3721_v41 = vadd.f32 1e-05, %v3720_v0 }
0x1611   :  { %4623 = vrsqrt.f32 %v3721_v41 }
0x161b   :  { %v4624_v42 = vpop.eup %4623 }
0x161c   :  { %v3724_v47 = vrot.slane %v4624_v42, 1  ;;  %v3725_v16 = vrot.slane %v4624_v42, 2  ;;  %v3726_v24 = vrot.slane %v4624_v42, 3  ;;  %v3731_v46 = vmul.f32 %v4624_v42, %v3698_v23 }
0x161e   :  { %v3732_v26 = vmul.f32 %v3724_v47, %v3699_v34  ;;  %v3733_v43 = vmul.f32 %v3725_v16, %v3700_v37  ;;  %v3734_v13 = vmul.f32 %v3726_v24, %v3701_v2  ;;  %v3739_v20 = vmul.f32 %v4046_v45, %v3731_v46 }
0x1620   :  { %v3740_v50 = vmul.f32 %v4046_v45, %v3732_v26  ;;  %v3741_v51 = vmul.f32 %v4046_v45, %v3733_v43  ;;  %v3742_v49 = vmul.f32 %v4046_v45, %v3734_v13  ;;  %v3747_v52 = vadd.f32 %v4047_v38, %v3739_v20 }
0x1622   :  { %v3748_v53 = vadd.f32 %v4047_v38, %v3740_v50  ;;  %v3749_v54 = vadd.f32 %v4047_v38, %v3741_v51  ;;  %v3750_v55 = vadd.f32 %v4047_v38, %v3742_v49  ;;  %v3755_v56 = vpack.c.bf16 %v3747_v52, %v3747_v52 }
0x1624   :  { %v3756_v57 = vpack.c.bf16 %v3748_v53, %v3748_v53  ;;  %v3757_v58 = vpack.c.bf16 %v3749_v54, %v3749_v54  ;;  %v3758_v59 = vpack.c.bf16 %v3750_v55, %v3750_v55  ;;  %v3763_v1 = vunpack.c.l.b16 %v3755_v56 }
0x1626   :  { %v3764_v60 = vunpack.c.l.b16 %v3756_v57  ;;  %v3765_v61 = vunpack.c.l.b16 %v3757_v58  ;;  %v3766_v63 = vunpack.c.l.b16 %v3758_v59 }
0x1628   :  { %v3767_v3 = vrot.slane %v3764_v60, 7  ;;  %v3769_v25 = vrot.slane %v3765_v61, 6  ;;  %v3771_v7 = vrot.slane %v3766_v63, 5 }
0x162a   :  { %v3768_v29 = vsel %vm3678_vm5, %v3767_v3, %v3763_v1 }
0x162b   :  { %v3770_v11 = vsel %vm3680_vm6, %v3769_v25, %v3768_v29 }
0x162c   :  { %v3772_v12 = vsel %vm3682_vm7, %v3771_v7, %v3770_v11 }
0x162d   :  { %v3773_v14 = vpack.c.b16 %v3772_v12, %v3772_v12 }
0x162f   :  { %4427 = vmatmul.mubr.msk.bf16.vlgmr.msra.gmra.mrb[84].mxu1 %vm153_vm0, %v3773_v14 }
0x1630   :  { %4432 = vmatprep.mubr.msk.f32.mxu1 %vm4876_vm1, %v4875_v62 }
0x1702   :  { %v3823_v9 = vpop.f32.mrb[84].mxu1 }
0x1703   :  { %v3830_v10 = vmul.f32 %v3823_v9, %v3823_v9  ;;  %v4428_v6 = vpop.f32.mrb[85].mxu1 }
0x1704   :  { %v3826_v17 = vpop.f32.mrb[86].mxu1 }
0x1705   :  { %v4429_v18 = vpop.f32.mrb[87].mxu1  ;;  %v3831_v44 = vsel %vm3685_vm8, %v3830_v10, 0.0 }
0x1706   :  { %3832 = vadd.xlane.f32.xlu1 %v3831_v44 }
0x170a   :  { %3839 = vadd.xlane.f32.xlu1 %v3838_v48 }
0x1793   :  { %v3833_v21 = vpop.xlane.xlu1 %3832 }
0x1794   :  { %4625 = vrsqrt.f32 %v3833_v21 }
0x1797   :  { %v3840_v23 = vpop.xlane.xlu1 %3839 }
0x1798   :  { %4627 = vrsqrt.f32 %v3840_v23 }
0x179e   :  { %v4626_v34 = vpop.eup %4625 }
0x179f   :  { %v3835_v37 = vmul.f32 %v4626_v34, %v3823_v9 }
0x17a1   :  { %3924 = vst.msk [vmem:[#allocation18] sm:$0xf] %vm3685_vm8, %v3835_v37  ;;  %4431 = vmatpush3.xpose.msk.msra.mxu1 %vm153_vm0, %v3835_v37 }
0x17a2   :  { %v4628_v62 = vpop.eup %4627 }
0x17a3   :  { %v3842_v2 = vmul.f32 %v4628_v62, %v3829_v15 }
0x17a5   :  { %4433 = vmatmul.mubr.msk.f32.vlgmr.msra.gmra.mrb[88].mxu1 %vm153_vm0, %v3842_v2 }
0x17a6   :  { %4816 = shalt.err (!%p4813_p12)
}
0x17a7   :  { %s4817_s15 = scalar_lea.hbm %s5707_s10, 64 }
0x17a8   :  { %p4818_p13 = scmp.ne.s32.totalorder %s5707_s10, %s4817_s15  ;;  %p4821_p0 = scmp.lt.u32.totalorder %s4817_s15, %s5707_s10 }
0x17aa   :  { %p4823_p1 = pnand %p4821_p0, %p4818_p13 }
0x17ac   :  { %4826 = shalt.err (!%p4823_p1)
}
0x17ad   :  { %3944 = dma.vmem_to_hbm [thread:$0]  %s3942_s30, 64, %s5707_s10, [#allocation19]   ;;  %v3920_v22 = vstv %s5697_s0  ;;  %vm3922_vm10 = vcmask 25600  }
0x17ae   :  { %s4882_s25 = smov [#allocation17]  }
0x17af   :  { %s3931_s26 = sshll.u32 %s4882_s25, 4  ;;  %s3932_s26 = int_to_ptr.vmem [resolvable:$true] %s3931_s26 }
0x17b0   :  { %s4827_s12 = scalar_lea.vmem %s3932_s26, 32  ;;  %p4832_p3 = scmp.lt.s32.totalorder %s3932_s26, %s3932_s26 }
0x17b1   :  { %p4828_p2 = scmp.ne.s32.totalorder %s3932_s26, %s4827_s12  ;;  %p4833_p4 = scmp.lt.s32.totalorder %s4827_s12, %s4827_s12 }
0x17b3   :  { %p4834_p5 = por %p4833_p4, %p4832_p3 }
0x17b5   :  { %p4835_p6 = pnand %p4834_p5, %p4828_p2 }
0x1878   :  { %v3915_v28 = vpop.f32.mrb[88].mxu1 }
0x1879   :  { %v3921_v30 = vmul.f32 %v3920_v22, %v3915_v28  ;;  %v4434_v19 = vpop.f32.mrb[89].mxu1 }
0x187b   :  { %3923 = vst.msk [vmem:[#allocation17] sm:$0x3] %vm3922_vm10, %v3921_v30 }
0x187c   :  { %4838 = shalt.err (!%p4835_p6)
}
0x187d   :  { %s4839_s27 = scalar_lea.hbm %s5706_s9, 32 }
0x187e   :  { %p4840_p7 = scmp.ne.s32.totalorder %s5706_s9, %s4839_s27  ;;  %p4843_p8 = scmp.lt.u32.totalorder %s4839_s27, %s5706_s9 }
0x1880   :  { %p4845_p9 = pnand %p4843_p8, %p4840_p7 }
0x1882   :  { %4848 = shalt.err (!%p4845_p9)
}
0x1883   :  { %3934 = dma.vmem_to_hbm [thread:$0]  %s3932_s26, 32, %s5706_s9, [#allocation5]  }
0x1884   :  { %4859 = dma.done.wait [#allocation5], 32  }
0x1885   :  { %4860 = vsyncadd [#allocation5], 4294967264 }
0x1886   :  { %4861 = dma.done.wait [#allocation19], 64  }
0x1887   :  { %4862 = vsyncadd [#allocation19], 4294967232 }
0x1888   :  { %3951 = vsyncpa [#allocation4], 1 }
0x1889   :  { %3952 = vsyncpa [#allocation7], 1 }
0x188a   :  { %3953 = vsyncpa [#allocation10], 1 }
0x188b   :  { %3954 = vsyncpa [#allocation13], 1 }
0x188c   :  { %3955 = vsyncpa [#allocation16], 1 }
0x188d   :  { %3956 = vsyncpa [#allocation5], 1 }
0x188e   :  { %3957 = vsyncpa [#allocation19], 1 }

</bundles_post_ra>
